<compile_context>
chip_gen: v7x
topology: tpu7x:2x2x1
jax: 0.10.0
libtpu: 0.0.40
codegen_flags: <defaults>
</compile_context>

<pallas_src>
import inspect
import math

import jax
import jax.numpy as jnp
import numpy as np
from jax.experimental import pallas as pl
from jax.experimental.pallas import tpu as pltpu


def _round_up(x, m):
    return ((x + m - 1) // m) * m


_HAS_PIPELINE_MODE = (hasattr(pl, "Buffered") and
                      "pipeline_mode" in inspect.signature(pl.BlockSpec).parameters)


def _resident(block_shape, index_map):
    """Constant-index-map ('resident') operand: DMA'd once and single-buffered."""
    if _HAS_PIPELINE_MODE:
        return pl.BlockSpec(block_shape, index_map, pipeline_mode=pl.Buffered(1))
    return pl.BlockSpec(block_shape, index_map)


def _vmem_limit_bytes():
    cap = 128 * 1024 * 1024
    try:
        cap = int(pltpu.get_tpu_info().vmem_capacity_bytes)
    except Exception:
        pass
    # ~48 MiB on 64 MiB v7x cores, 96 MiB on 128 MiB v5e/v6e cores.
    return int(min(96 * 1024 * 1024, cap * 3 // 4))


# -----------------------------------------------------------------------------
# Kernel 1: gridded per-sequence precompute (att1, h0, c0)
# -----------------------------------------------------------------------------
def precompute_kernel(enc_ref, w_ea_ref, b_ea_ref, w_init_ref, b_init_ref,
                      att1_ref, h0_ref, c0_ref):
    TB, P, E = enc_ref.shape
    enc = enc_ref[...]                                              # (TB, P, E) bf16
    # hoisted encoder projection as ONE (TB*P, E) @ (E, A) MXU matmul
    att1 = (jnp.dot(enc.reshape(TB * P, E), w_ea_ref[...],
                    preferred_element_type=jnp.float32) + b_ea_ref[...])
    att1_ref[...] = att1.reshape(TB, P, -1).astype(att1_ref.dtype)
    # fused init_h / init_c: one (E, 2D) matmul on the mean-pooled encoding
    mean_enc = jnp.mean(enc.astype(jnp.float32), axis=1)           # (TB, E)
    hc = (jnp.dot(mean_enc, w_init_ref[...],
                  preferred_element_type=jnp.float32) + b_init_ref[...])
    D = h0_ref.shape[-1]
    h0_ref[...] = hc[:, :D]
    c0_ref[...] = hc[:, D:]


# -----------------------------------------------------------------------------
# Kernel 2: the serial decode recurrence (attention + gate + LSTMCell)
# -----------------------------------------------------------------------------
def decode_kernel(dl_ref, enc_ref, att1_ref, emb_ref, h0_ref, c0_ref,
                  w_hcat_ref, b_hcat_ref, w_fa_ref,
                  w_ih_e_ref, w_ih_a_ref,
                  h_hist_ref, alpha_ref,
                  h_sc, c_sc):
    t = pl.program_id(0)
    A = att1_ref.shape[-1]
    E = enc_ref.shape[-1]
    D = h_sc.shape[-1]
    P = enc_ref.shape[1]
    Pa = alpha_ref.shape[-1]

    # recurrent state lives in VMEM scratch across the whole grid
    @pl.when(t == 0)
    def _():
        h_sc[...] = h0_ref[...]
        c_sc[...] = c0_ref[...]

    # rows still being decoded at step t (finished / padded rows -> zeroed outputs)
    active = (dl_ref[...] > t).astype(jnp.float32)                  # (Bp, 1)

    h = h_sc[...]
    c = c_sc[...]

    # every projection of h in ONE wide MXU matmul: [att2 | gate_pre | W_hh·h]
    hproj = (jnp.dot(h.astype(w_hcat_ref.dtype), w_hcat_ref[...],
                     preferred_element_type=jnp.float32) + b_hcat_ref[...])
    att2 = hproj[:, :A]                                             # (B, A)
    gate_pre = hproj[:, A:A + E]                                    # (B, E)
    hh_gates = hproj[:, A + E:]                                     # (B, 4D)

    # attention scores: VPU multiply + lane reduce (avoids a degenerate N=1 MXU pass).
    # b_full_att omitted — softmax is shift-invariant.
    att = jnp.maximum(att1_ref[...] + att2[:, None, :], 0.0)        # (B, P, A) f32
    scores = jnp.sum(att * w_fa_ref[...][None, :, :], axis=-1)      # (B, P)
    m = jnp.max(scores, axis=-1, keepdims=True)
    e = jnp.exp(scores - m)
    alpha = e * pl.reciprocal(jnp.sum(e, axis=-1, keepdims=True), approx=True)

    # attention-weighted encoding: VPU multiply + sublane reduce (alpha kept in f32,
    # avoids a degenerate M=1 MXU pass).
    awe = jnp.sum(alpha[:, :, None] * enc_ref[...], axis=1)         # (B, E) f32
    awe = jax.nn.sigmoid(gate_pre) * awe

    # LSTMCell(cat([emb, awe]), (h, c))
    emb = emb_ref[0]                                                # (B, Em)
    gates = (hh_gates
             + jnp.dot(emb.astype(w_ih_e_ref.dtype), w_ih_e_ref[...],
                       preferred_element_type=jnp.float32)
             + jnp.dot(awe.astype(w_ih_a_ref.dtype), w_ih_a_ref[...],
                       preferred_element_type=jnp.float32))         # (B, 4D)
    i_g = jax.nn.sigmoid(gates[:, 0 * D:1 * D])
    f_g = jax.nn.sigmoid(gates[:, 1 * D:2 * D])
    g_g = jnp.tanh(gates[:, 2 * D:3 * D])
    o_g = jax.nn.sigmoid(gates[:, 3 * D:4 * D])
    c_new = f_g * c + i_g * g_g
    h_new = o_g * jnp.tanh(c_new)

    h_sc[...] = h_new
    c_sc[...] = c_new
    h_hist_ref[0] = h_new.astype(h_hist_ref.dtype)                  # bf16 history for deferred FC

    alpha_out = alpha * active
    if Pa > P:  # pad to a lane-dense (multiple-of-128) store
        alpha_out = jnp.concatenate(
            [alpha_out, jnp.zeros((alpha_out.shape[0], Pa - P), jnp.float32)], axis=-1)
    alpha_ref[0] = alpha_out


# -----------------------------------------------------------------------------
# Kernel 3: deferred vocab projection (batched over all timesteps)
# -----------------------------------------------------------------------------
def fc_kernel(h_ref, w_fc_ref, b_fc_ref, mask_ref, pred_ref):
    # TODO(synk): nn.Dropout(p=0.5) before fc is treated as inference-mode identity.
    TB, T, D = h_ref.shape
    y = (jnp.dot(h_ref[...].reshape(TB * T, D), w_fc_ref[...],
                 preferred_element_type=jnp.float32) + b_fc_ref[...])
    pred_ref[...] = y.reshape(TB, T, -1) * mask_ref[...]


# -----------------------------------------------------------------------------
# Forward pass (wrapper) — fully jittable (no host sync)
# -----------------------------------------------------------------------------
def pure_attention_forward(p, encoder_out, encoded_captions, caption_lengths,
                           matmul_dtype=jnp.bfloat16):
    B = encoder_out.shape[0]
    E = encoder_out.shape[-1]
    enc = encoder_out.reshape(B, -1, E)                        # (B, P, E)
    P = enc.shape[1]
    A = p['w_enc_att'].shape[1]
    D = p['w_init_h'].shape[1]
    Em = p['embedding'].shape[1]
    V = p['w_fc'].shape[1]

    lens = caption_lengths[:, 0]
    sort_ind = jnp.argsort(-lens)                              # descending sort
    lens_sorted = lens[sort_ind]
    enc = enc[sort_ind]
    caps = encoded_captions[sort_ind]
    decode_lengths = lens_sorted - 1
    # Static time bound (max_caption_length - 1): removes the device->host sync; steps
    # past a row's decode length are masked to zero, matching the PyTorch loop whenever
    # max(caption_lengths) == max_caption_length.
    T = encoded_captions.shape[1] - 1

    vmem_limit = _vmem_limit_bytes()

    # ---- batch padding to a sublane multiple (>= 8) ----
    Bp = max(8, _round_up(B, 8))
    pad_b = Bp - B
    enc_bf = jnp.pad(enc, ((0, pad_b), (0, 0), (0, 0))).astype(matmul_dtype)  # single enc copy
    dl_p = jnp.pad(decode_lengths.astype(jnp.int32), (0, pad_b))[:, None]     # (Bp, 1)

    # ---- per-step embeddings laid out as (T, Bp, Em) ----
    emb = p['embedding'][caps]
    emb_steps = jnp.transpose(emb[:, :T, :], (1, 0, 2))
    emb_steps = jnp.pad(emb_steps, ((0, 0), (0, pad_b), (0, 0)))

    # ---- kernel 1: gridded precompute (att1 bf16, fused h0/c0) ----
    w_init = jnp.concatenate([p['w_init_h'], p['w_init_c']], axis=1)
    b_init = jnp.concatenate([p['b_init_h'], p['b_init_c']], axis=1)
    w_ea = p['w_enc_att'].astype(matmul_dtype)
    TB_pre = 8
    att1, h0, c0 = pl.pallas_call(
        precompute_kernel,
        out_shape=(jax.ShapeDtypeStruct((Bp, P, A), matmul_dtype),
                   jax.ShapeDtypeStruct((Bp, D), jnp.float32),
                   jax.ShapeDtypeStruct((Bp, D), jnp.float32)),
        grid_spec=pltpu.PrefetchScalarGridSpec(
            num_scalar_prefetch=0,
            grid=(Bp // TB_pre,),
            in_specs=[
                pl.BlockSpec((TB_pre, P, E), lambda i: (i, 0, 0)),
                _resident((E, A), lambda i: (0, 0)),
                _resident((1, A), lambda i: (0, 0)),
                _resident((E, 2 * D), lambda i: (0, 0)),
                _resident((1, 2 * D), lambda i: (0, 0)),
            ],
            out_specs=(
                pl.BlockSpec((TB_pre, P, A), lambda i: (i, 0, 0)),
                pl.BlockSpec((TB_pre, D), lambda i: (i, 0)),
                pl.BlockSpec((TB_pre, D), lambda i: (i, 0)),
            ),
        ),
        compiler_params=pltpu.CompilerParams(
            dimension_semantics=("parallel",),
            vmem_limit_bytes=vmem_limit,
        ),
    )(enc_bf, w_ea, p['b_enc_att'], w_init, b_init)

    # ---- kernel 2: decode recurrence ----
    w_hcat = jnp.concatenate([p['w_dec_att'], p['w_fbeta'], p['w_hh']],
                             axis=1).astype(matmul_dtype)
    b_hcat = jnp.concatenate([p['b_dec_att'], p['b_fbeta'], p['b_lstm']], axis=1)
    w_fa = p['w_full_att']                                     # (1, A)
    w_ih_e = p['w_ih_emb'].astype(matmul_dtype)
    w_ih_a = p['w_ih_awe'].astype(matmul_dtype)

    Acat = A + E + 4 * D
    Pa = _round_up(P, 128)                                     # lane-dense alphas store

    h_hist, alphas_tbp = pl.pallas_call(
        decode_kernel,
        out_shape=(jax.ShapeDtypeStruct((T, Bp, D), matmul_dtype),
                   jax.ShapeDtypeStruct((T, Bp, Pa), jnp.float32)),
        grid_spec=pltpu.PrefetchScalarGridSpec(
            num_scalar_prefetch=0,
            grid=(T,),
            in_specs=[
                _resident((Bp, 1), lambda t: (0, 0)),           # decode lengths
                _resident((Bp, P, E), lambda t: (0, 0, 0)),     # enc (bf16, resident)
                _resident((Bp, P, A), lambda t: (0, 0, 0)),     # att1 (bf16, resident)
                pl.BlockSpec((1, Bp, Em), lambda t: (t, 0, 0)),  # embeddings[t]
                _resident((Bp, D), lambda t: (0, 0)),           # h0
                _resident((Bp, D), lambda t: (0, 0)),           # c0
                _resident((D, Acat), lambda t: (0, 0)),         # fused h weights
                _resident((1, Acat), lambda t: (0, 0)),         # fused h biases
                _resident((1, A), lambda t: (0, 0)),            # full_att weight row
                _resident((Em, 4 * D), lambda t: (0, 0)),       # W_ih (emb half)
                _resident((E, 4 * D), lambda t: (0, 0)),        # W_ih (awe half)
            ],
            out_specs=(
                pl.BlockSpec((1, Bp, D), lambda t: (t, 0, 0)),   # h history (bf16)
                pl.BlockSpec((1, Bp, Pa), lambda t: (t, 0, 0)),  # alphas
            ),
            scratch_shapes=[pltpu.VMEM((Bp, D), jnp.float32),    # h state
                            pltpu.VMEM((Bp, D), jnp.float32)],   # c state
        ),
        compiler_params=pltpu.CompilerParams(
            dimension_semantics=("arbitrary",),
            vmem_limit_bytes=vmem_limit,
        ),
    )(dl_p, enc_bf, att1, emb_steps, h0, c0,
      w_hcat, b_hcat, w_fa, w_ih_e, w_ih_a)

    # ---- kernel 3: deferred vocab projection over all timesteps ----
    TILE_V = 512 if V >= 512 else 128
    Vp = _round_up(V, TILE_V)
    nV = Vp // TILE_V
    w_fc_p = jnp.pad(p['w_fc'], ((0, 0), (0, Vp - V))).astype(matmul_dtype)
    b_fc_p = jnp.pad(p['b_fc'], ((0, 0), (0, Vp - V)))

    # tiny XLA transpose of the bf16 h history -> the big predictions array is then
    # written directly in (B, T, V) layout (no full-size output transpose).
    h_bt = jnp.transpose(h_hist, (1, 0, 2))                     # (Bp, T, D) bf16
    mask_bt = (dl_p > jnp.arange(T, dtype=jnp.int32)[None, :]).astype(jnp.float32)
    mask_bt = mask_bt[:, :, None]                               # (Bp, T, 1)

    # whole batch in one tile when the h block is small; else 8-row batch tiles.
    TB_fc = Bp if Bp * T * D * 2 <= (8 << 20) else 8

    preds_btv = pl.pallas_call(
        fc_kernel,
        out_shape=jax.ShapeDtypeStruct((Bp, T, Vp), jnp.float32),
        grid_spec=pltpu.PrefetchScalarGridSpec(
            num_scalar_prefetch=0,
            grid=(Bp // TB_fc, nV),
            in_specs=[
                pl.BlockSpec((TB_fc, T, D), lambda b, v: (b, 0, 0)),
                pl.BlockSpec((D, TILE_V), lambda b, v: (0, v)),
                pl.BlockSpec((1, TILE_V), lambda b, v: (0, v)),
                pl.BlockSpec((TB_fc, T, 1), lambda b, v: (b, 0, 0)),
            ],
            out_specs=pl.BlockSpec((TB_fc, T, TILE_V), lambda b, v: (b, 0, v)),
        ),
        compiler_params=pltpu.CompilerParams(
            dimension_semantics=("parallel", "parallel"),
            vmem_limit_bytes=vmem_limit,
        ),
    )(h_bt, w_fc_p, b_fc_p, mask_bt)

    predictions = preds_btv[:B, :, :V]                          # (B, T, V) — no big transpose
    alphas = jnp.transpose(alphas_tbp[:, :B, :P], (1, 0, 2))    # (B, T, P) — small
    return predictions, caps, decode_lengths, alphas, sort_ind


# -----------------------------------------------------------------------------
# Pure-JAX reference (same math, no Pallas) for verification
# -----------------------------------------------------------------------------
def _ref_step(p, enc, emb_t, h, c):
    att1 = jnp.einsum('bpe,ea->bpa', enc, p['w_enc_att']) + p['b_enc_att']
    att2 = h @ p['w_dec_att'] + p['b_dec_att']
    att = jnp.maximum(att1 + att2[:, None, :], 0.0)
    scores = jnp.sum(att * p['w_full_att'][None, :, :], axis=-1) + p['b_full_att']
    alpha = jax.nn.softmax(scores, axis=1)
    awe = jnp.sum(enc * alpha[:, :, None], axis=1)
    gate = jax.nn.sigmoid(h @ p['w_fbeta'] + p['b_fbeta'])
    awe = gate * awe
    gates = emb_t @ p['w_ih_emb'] + awe @ p['w_ih_awe'] + h @ p['w_hh'] + p['b_lstm']
    D = h.shape[-1]
    i_g = jax.nn.sigmoid(gates[:, :D])
    f_g = jax.nn.sigmoid(gates[:, D:2 * D])
    g_g = jnp.tanh(gates[:, 2 * D:3 * D])
    o_g = jax.nn.sigmoid(gates[:, 3 * D:4 * D])
    c_new = f_g * c + i_g * g_g
    h_new = o_g * jnp.tanh(c_new)
    preds = h_new @ p['w_fc'] + p['b_fc']
    return h_new, c_new, preds, alpha


def reference_forward(p, encoder_out, encoded_captions, caption_lengths):
    B = encoder_out.shape[0]
    E = encoder_out.shape[-1]
    enc = encoder_out.reshape(B, -1, E)
    lens = caption_lengths[:, 0]
    sort_ind = jnp.argsort(-lens)
    lens_sorted = lens[sort_ind]
    enc = enc[sort_ind]
    caps = encoded_captions[sort_ind]
    embeddings = p['embedding'][caps]
    mean_enc = jnp.mean(enc, axis=1)
    h = mean_enc @ p['w_init_h'] + p['b_init_h']
    c = mean_enc @ p['w_init_c'] + p['b_init_c']
    decode_lengths = lens_sorted - 1
    max_dec = int(jnp.max(decode_lengths))
    preds_list, alphas_list = [], []
    for t in range(max_dec):
        h_new, c_new, preds, alpha = _ref_step(p, enc, embeddings[:, t, :], h, c)
        active = (decode_lengths > t)[:, None]
        preds_list.append(jnp.where(active, preds, 0.0))
        alphas_list.append(jnp.where(active, alpha, 0.0))
        h, c = h_new, c_new
    return (jnp.stack(preds_list, axis=1), caps, decode_lengths,
            jnp.stack(alphas_list, axis=1), sort_ind)


# -----------------------------------------------------------------------------
# Deterministic parameter construction (shapes from __init__)
# -----------------------------------------------------------------------------
def init_params(key, attention_dim, embed_dim, decoder_dim, vocab_size, encoder_dim):
    A, Em, D, V, E = attention_dim, embed_dim, decoder_dim, vocab_size, encoder_dim
    ks = jax.random.split(key, 20)

    def uni(k, shape, bound):
        return jax.random.uniform(k, shape, jnp.float32, -bound, bound)

    p = {}
    p['embedding'] = uni(ks[0], (V, Em), 0.1)                       # embedding.weight ~ U(-0.1, 0.1)
    b = 1.0 / math.sqrt(E)
    p['w_enc_att'] = uni(ks[1], (E, A), b); p['b_enc_att'] = uni(ks[2], (1, A), b)
    b = 1.0 / math.sqrt(D)
    p['w_dec_att'] = uni(ks[3], (D, A), b); p['b_dec_att'] = uni(ks[4], (1, A), b)
    b = 1.0 / math.sqrt(A)
    p['w_full_att'] = uni(ks[5], (1, A), b); p['b_full_att'] = uni(ks[6], (1, 1), b)
    b = 1.0 / math.sqrt(E)
    p['w_init_h'] = uni(ks[7], (E, D), b); p['b_init_h'] = uni(ks[8], (1, D), b)
    p['w_init_c'] = uni(ks[9], (E, D), b); p['b_init_c'] = uni(ks[10], (1, D), b)
    b = 1.0 / math.sqrt(D)
    p['w_fbeta'] = uni(ks[11], (D, E), b); p['b_fbeta'] = uni(ks[12], (1, E), b)
    # LSTMCell(embed_dim + encoder_dim -> decoder_dim); weight_ih split by input halves
    b = 1.0 / math.sqrt(D)
    p['w_ih_emb'] = uni(ks[13], (Em, 4 * D), b)
    p['w_ih_awe'] = uni(ks[14], (E, 4 * D), b)
    p['w_hh'] = uni(ks[15], (D, 4 * D), b)
    p['b_lstm'] = uni(ks[16], (1, 4 * D), b) + uni(ks[17], (1, 4 * D), b)   # b_ih + b_hh
    p['w_fc'] = uni(ks[18], (D, V), 0.1)                             # fc.weight ~ U(-0.1, 0.1)
    p['b_fc'] = jnp.zeros((1, V), jnp.float32)                       # fc.bias = 0
    return p


# -----------------------------------------------------------------------------
# Main
# -----------------------------------------------------------------------------
if __name__ == "__main__":
    attention_dim, embed_dim, decoder_dim, vocab_size, encoder_dim = 24, 16, 32, 48, 32
    batch, enc_image_size, max_cap_len = 3, 4, 8

    key = jax.random.PRNGKey(0)
    kp, kx, kc = jax.random.split(key, 3)
    params = init_params(kp, attention_dim, embed_dim, decoder_dim, vocab_size, encoder_dim)

    encoder_out = jax.random.normal(kx, (batch, enc_image_size, enc_image_size, encoder_dim),
                                    jnp.float32)
    encoded_captions = jax.random.randint(kc, (batch, max_cap_len), 0, vocab_size, jnp.int32)
    caption_lengths = jnp.array([[5], [8], [3]], dtype=jnp.int32)

    forward = jax.jit(pure_attention_forward)   # no host sync left -> end-to-end jittable
    preds, caps, dec_lens, alphas, sort_ind = forward(
        params, encoder_out, encoded_captions, caption_lengths)
    jax.block_until_ready((preds, caps, dec_lens, alphas, sort_ind))

    r_preds, r_caps, r_lens, r_alphas, r_sort = reference_forward(
        params, encoder_out, encoded_captions, caption_lengths)

    assert np.allclose(np.asarray(preds), np.asarray(r_preds), atol=2e-2, rtol=2e-2)
    assert np.allclose(np.asarray(alphas), np.asarray(r_alphas), atol=2e-2, rtol=2e-2)
    assert np.array_equal(np.asarray(caps), np.asarray(r_caps))
    assert np.array_equal(np.asarray(sort_ind), np.asarray(r_sort))

    print("KERNEL_OK")
</pallas_src>

<mosaic_0001>
module attributes {stable_mosaic.version = 11 : i64} {
  func.func @precompute_kernel(%arg0: i32, %arg1: memref<8x16x32xbf16, #tpu.memory_space<vmem>>, %arg2: memref<32x24xbf16, #tpu.memory_space<vmem>>, %arg3: memref<1x24xf32, #tpu.memory_space<vmem>>, %arg4: memref<32x64xf32, #tpu.memory_space<vmem>>, %arg5: memref<1x64xf32, #tpu.memory_space<vmem>>, %arg6: memref<8x16x24xbf16, #tpu.memory_space<vmem>>, %arg7: memref<8x32xf32, #tpu.memory_space<vmem>>, %arg8: memref<8x32xf32, #tpu.memory_space<vmem>>) attributes {dimension_semantics = [#tpu.dimension_semantics<parallel>], iteration_bounds = array<i64: 1>, scalar_prefetch = 0 : i64, scratch_operands = 0 : i64, tpu.core_type = #tpu.core_type<tc>, window_params = [{transform_indices = @transform_0, window_bounds = array<i64: 8, 16, 32>}, {pipeline_mode = #tpu.pipeline_mode<synchronous>, transform_indices = @transform_1, window_bounds = array<i64: 32, 24>}, {pipeline_mode = #tpu.pipeline_mode<synchronous>, transform_indices = @transform_2, window_bounds = array<i64: 1, 24>}, {pipeline_mode = #tpu.pipeline_mode<synchronous>, transform_indices = @transform_3, window_bounds = array<i64: 32, 64>}, {pipeline_mode = #tpu.pipeline_mode<synchronous>, transform_indices = @transform_4, window_bounds = array<i64: 1, 64>}, {transform_indices = @transform_5, window_bounds = array<i64: 8, 16, 24>}, {transform_indices = @transform_6, window_bounds = array<i64: 8, 32>}, {transform_indices = @transform_7, window_bounds = array<i64: 8, 32>}]} {
    %c0 = arith.constant 0 : index
    %c0_0 = arith.constant 0 : index
    %c0_1 = arith.constant 0 : index
    %0 = vector.load %arg1[%c0, %c0_0, %c0_1] : memref<8x16x32xbf16, #tpu.memory_space<vmem>>, vector<8x16x32xbf16>
    %1 = vector.shape_cast %0 : vector<8x16x32xbf16> to vector<128x32xbf16>
    %c0_2 = arith.constant 0 : index
    %c0_3 = arith.constant 0 : index
    %2 = vector.load %arg2[%c0_2, %c0_3] : memref<32x24xbf16, #tpu.memory_space<vmem>>, vector<32x24xbf16>
    %cst = arith.constant dense<0.000000e+00> : vector<128x24xf32>
    %3 = tpu.matmul %1, %2, %cst {dimension_numbers = #tpu.dot_dimension_numbers<[1], [0], [0], [1], [0, 0, 1, 1], [], []>} : vector<128x32xbf16>, vector<32x24xbf16>, vector<128x24xf32> -> vector<128x24xf32>
    %c0_4 = arith.constant 0 : index
    %c0_5 = arith.constant 0 : index
    %4 = vector.load %arg3[%c0_4, %c0_5] : memref<1x24xf32, #tpu.memory_space<vmem>>, vector<1x24xf32>
    %5 = vector.broadcast %4 : vector<1x24xf32> to vector<128x24xf32>
    %6 = arith.addf %3, %5 : vector<128x24xf32>
    %7 = vector.shape_cast %6 : vector<128x24xf32> to vector<8x16x24xf32>
    %8 = arith.truncf %7 : vector<8x16x24xf32> to vector<8x16x24xbf16>
    %c0_6 = arith.constant 0 : index
    %c0_7 = arith.constant 0 : index
    %c0_8 = arith.constant 0 : index
    %9 = vector.load %arg6[%c0_6, %c0_7, %c0_8] : memref<8x16x24xbf16, #tpu.memory_space<vmem>>, vector<8x16x24xbf16>
    tpu.vector_store %arg6[%c0_6, %c0_7, %c0_8], %8 {strides = array<i32>} : memref<8x16x24xbf16, #tpu.memory_space<vmem>>, vector<8x16x24xbf16>,
    %10 = arith.extf %0 : vector<8x16x32xbf16> to vector<8x16x32xf32>
    %cst_9 = arith.constant dense<0.000000e+00> : vector<8x32xf32>
    %11 = vector.multi_reduction <add>, %10, %cst_9 [1] : vector<8x16x32xf32> to vector<8x32xf32>
    %cst_10 = arith.constant 1.600000e+01 : f32
    %12 = vector.broadcast %cst_10 : f32 to vector<8x32xf32>
    %13 = arith.divf %11, %12 : vector<8x32xf32>
    %c0_11 = arith.constant 0 : index
    %c0_12 = arith.constant 0 : index
    %14 = vector.load %arg4[%c0_11, %c0_12] : memref<32x64xf32, #tpu.memory_space<vmem>>, vector<32x64xf32>
    %cst_13 = arith.constant dense<0.000000e+00> : vector<8x64xf32>
    %15 = tpu.matmul %13, %14, %cst_13 {dimension_numbers = #tpu.dot_dimension_numbers<[1], [0], [0], [1], [0, 0, 1, 1], [], []>} : vector<8x32xf32>, vector<32x64xf32>, vector<8x64xf32> -> vector<8x64xf32>
    %c0_14 = arith.constant 0 : index
    %c0_15 = arith.constant 0 : index
    %16 = vector.load %arg5[%c0_14, %c0_15] : memref<1x64xf32, #tpu.memory_space<vmem>>, vector<1x64xf32>
    %17 = vector.broadcast %16 : vector<1x64xf32> to vector<8x64xf32>
    %18 = arith.addf %15, %17 : vector<8x64xf32>
    %19 = vector.extract_strided_slice %18 {offsets = [0, 0], sizes = [8, 32], strides = [1, 1]} : vector<8x64xf32> to vector<8x32xf32>
    %c0_16 = arith.constant 0 : index
    %c0_17 = arith.constant 0 : index
    %20 = vector.load %arg7[%c0_16, %c0_17] : memref<8x32xf32, #tpu.memory_space<vmem>>, vector<8x32xf32>
    tpu.vector_store %arg7[%c0_16, %c0_17], %19 {strides = array<i32>} : memref<8x32xf32, #tpu.memory_space<vmem>>, vector<8x32xf32>,
    %21 = vector.extract_strided_slice %18 {offsets = [0, 32], sizes = [8, 32], strides = [1, 1]} : vector<8x64xf32> to vector<8x32xf32>
    %c0_18 = arith.constant 0 : index
    %c0_19 = arith.constant 0 : index
    %22 = vector.load %arg8[%c0_18, %c0_19] : memref<8x32xf32, #tpu.memory_space<vmem>>, vector<8x32xf32>
    tpu.vector_store %arg8[%c0_18, %c0_19], %21 {strides = array<i32>} : memref<8x32xf32, #tpu.memory_space<vmem>>, vector<8x32xf32>,
    return
  }
  func.func @transform_0(%arg0: i32) -> (i32, i32, i32) {
    %c0_i32 = arith.constant 0 : i32
    %c0_i32_0 = arith.constant 0 : i32
    %c0_i32_1 = arith.constant 0 : i32
    return %arg0, %c0_i32, %c0_i32_0 : i32, i32, i32
  }
  func.func @transform_1(%arg0: i32) -> (i32, i32) {
    %c0_i32 = arith.constant 0 : i32
    %c0_i32_0 = arith.constant 0 : i32
    %c0_i32_1 = arith.constant 0 : i32
    return %c0_i32, %c0_i32_0 : i32, i32
  }
  func.func @transform_2(%arg0: i32) -> (i32, i32) {
    %c0_i32 = arith.constant 0 : i32
    %c0_i32_0 = arith.constant 0 : i32
    %c0_i32_1 = arith.constant 0 : i32
    return %c0_i32, %c0_i32_0 : i32, i32
  }
  func.func @transform_3(%arg0: i32) -> (i32, i32) {
    %c0_i32 = arith.constant 0 : i32
    %c0_i32_0 = arith.constant 0 : i32
    %c0_i32_1 = arith.constant 0 : i32
    return %c0_i32, %c0_i32_0 : i32, i32
  }
  func.func @transform_4(%arg0: i32) -> (i32, i32) {
    %c0_i32 = arith.constant 0 : i32
    %c0_i32_0 = arith.constant 0 : i32
    %c0_i32_1 = arith.constant 0 : i32
    return %c0_i32, %c0_i32_0 : i32, i32
  }
  func.func @transform_5(%arg0: i32) -> (i32, i32, i32) {
    %c0_i32 = arith.constant 0 : i32
    %c0_i32_0 = arith.constant 0 : i32
    %c0_i32_1 = arith.constant 0 : i32
    return %arg0, %c0_i32, %c0_i32_0 : i32, i32, i32
  }
  func.func @transform_6(%arg0: i32) -> (i32, i32) {
    %c0_i32 = arith.constant 0 : i32
    %c0_i32_0 = arith.constant 0 : i32
    return %arg0, %c0_i32 : i32, i32
  }
  func.func @transform_7(%arg0: i32) -> (i32, i32) {
    %c0_i32 = arith.constant 0 : i32
    %c0_i32_0 = arith.constant 0 : i32
    return %arg0, %c0_i32 : i32, i32
  }
}

module attributes {stable_mosaic.version = 11 : i64} {
  func.func @decode_kernel(%arg0: i32, %arg1: memref<8x1xi32, #tpu.memory_space<vmem>>, %arg2: memref<8x16x32xbf16, #tpu.memory_space<vmem>>, %arg3: memref<8x16x24xbf16, #tpu.memory_space<vmem>>, %arg4: memref<1x8x16xf32, #tpu.memory_space<vmem>>, %arg5: memref<8x32xf32, #tpu.memory_space<vmem>>, %arg6: memref<8x32xf32, #tpu.memory_space<vmem>>, %arg7: memref<32x184xbf16, #tpu.memory_space<vmem>>, %arg8: memref<1x184xf32, #tpu.memory_space<vmem>>, %arg9: memref<1x24xf32, #tpu.memory_space<vmem>>, %arg10: memref<16x128xbf16, #tpu.memory_space<vmem>>, %arg11: memref<32x128xbf16, #tpu.memory_space<vmem>>, %arg12: memref<1x8x32xbf16, #tpu.memory_space<vmem>>, %arg13: memref<1x8x128xf32, #tpu.memory_space<vmem>>, %arg14: memref<8x32xf32, #tpu.memory_space<vmem>>, %arg15: memref<8x32xf32, #tpu.memory_space<vmem>>) attributes {dimension_semantics = [#tpu.dimension_semantics<arbitrary>], iteration_bounds = array<i64: 7>, scalar_prefetch = 0 : i64, scratch_operands = 2 : i64, tpu.core_type = #tpu.core_type<tc>, window_params = [{pipeline_mode = #tpu.pipeline_mode<synchronous>, transform_indices = @transform_0, window_bounds = array<i64: 8, 1>}, {pipeline_mode = #tpu.pipeline_mode<synchronous>, transform_indices = @transform_1, window_bounds = array<i64: 8, 16, 32>}, {pipeline_mode = #tpu.pipeline_mode<synchronous>, transform_indices = @transform_2, window_bounds = array<i64: 8, 16, 24>}, {transform_indices = @transform_3, window_bounds = array<i64: 1, 8, 16>}, {pipeline_mode = #tpu.pipeline_mode<synchronous>, transform_indices = @transform_4, window_bounds = array<i64: 8, 32>}, {pipeline_mode = #tpu.pipeline_mode<synchronous>, transform_indices = @transform_5, window_bounds = array<i64: 8, 32>}, {pipeline_mode = #tpu.pipeline_mode<synchronous>, transform_indices = @transform_6, window_bounds = array<i64: 32, 184>}, {pipeline_mode = #tpu.pipeline_mode<synchronous>, transform_indices = @transform_7, window_bounds = array<i64: 1, 184>}, {pipeline_mode = #tpu.pipeline_mode<synchronous>, transform_indices = @transform_8, window_bounds = array<i64: 1, 24>}, {pipeline_mode = #tpu.pipeline_mode<synchronous>, transform_indices = @transform_9, window_bounds = array<i64: 16, 128>}, {pipeline_mode = #tpu.pipeline_mode<synchronous>, transform_indices = @transform_10, window_bounds = array<i64: 32, 128>}, {transform_indices = @transform_11, window_bounds = array<i64: 1, 8, 32>}, {transform_indices = @transform_12, window_bounds = array<i64: 1, 8, 128>}]} {
    %c0_i32 = arith.constant 0 : i32
    %0 = arith.cmpi eq, %arg0, %c0_i32 : i32
    %1 = arith.extui %0 : i1 to i32
    %c0_i32_0 = arith.constant 0 : i32
    %2 = arith.cmpi ne, %1, %c0_i32_0 : i32
    scf.if %2 {
      %c0_47 = arith.constant 0 : index
      %c0_48 = arith.constant 0 : index
      %101 = vector.load %arg5[%c0_47, %c0_48] : memref<8x32xf32, #tpu.memory_space<vmem>>, vector<8x32xf32>
      %c0_49 = arith.constant 0 : index
      %c0_50 = arith.constant 0 : index
      %102 = vector.load %arg14[%c0_49, %c0_50] : memref<8x32xf32, #tpu.memory_space<vmem>>, vector<8x32xf32>
      tpu.vector_store %arg14[%c0_49, %c0_50], %101 {strides = array<i32>} : memref<8x32xf32, #tpu.memory_space<vmem>>, vector<8x32xf32>,
      %c0_51 = arith.constant 0 : index
      %c0_52 = arith.constant 0 : index
      %103 = vector.load %arg6[%c0_51, %c0_52] : memref<8x32xf32, #tpu.memory_space<vmem>>, vector<8x32xf32>
      %c0_53 = arith.constant 0 : index
      %c0_54 = arith.constant 0 : index
      %104 = vector.load %arg15[%c0_53, %c0_54] : memref<8x32xf32, #tpu.memory_space<vmem>>, vector<8x32xf32>
      tpu.vector_store %arg15[%c0_53, %c0_54], %103 {strides = array<i32>} : memref<8x32xf32, #tpu.memory_space<vmem>>, vector<8x32xf32>,
    } else {
    }
    %c0 = arith.constant 0 : index
    %c0_1 = arith.constant 0 : index
    %3 = vector.load %arg1[%c0, %c0_1] : memref<8x1xi32, #tpu.memory_space<vmem>>, vector<8x1xi32>
    %4 = vector.broadcast %arg0 : i32 to vector<8x1xi32>
    %5 = arith.cmpi sgt, %3, %4 : vector<8x1xi32>
    %6 = arith.extui %5 : vector<8x1xi1> to vector<8x1xi32>
    %7 = arith.sitofp %6 : vector<8x1xi32> to vector<8x1xf32>
    %c0_2 = arith.constant 0 : index
    %c0_3 = arith.constant 0 : index
    %8 = vector.load %arg14[%c0_2, %c0_3] : memref<8x32xf32, #tpu.memory_space<vmem>>, vector<8x32xf32>
    %c0_4 = arith.constant 0 : index
    %c0_5 = arith.constant 0 : index
    %9 = vector.load %arg15[%c0_4, %c0_5] : memref<8x32xf32, #tpu.memory_space<vmem>>, vector<8x32xf32>
    %10 = arith.truncf %8 : vector<8x32xf32> to vector<8x32xbf16>
    %c0_6 = arith.constant 0 : index
    %c0_7 = arith.constant 0 : index
    %11 = vector.load %arg7[%c0_6, %c0_7] : memref<32x184xbf16, #tpu.memory_space<vmem>>, vector<32x184xbf16>
    %cst = arith.constant dense<0.000000e+00> : vector<8x184xf32>
    %12 = tpu.matmul %10, %11, %cst {dimension_numbers = #tpu.dot_dimension_numbers<[1], [0], [0], [1], [0, 0, 1, 1], [], []>} : vector<8x32xbf16>, vector<32x184xbf16>, vector<8x184xf32> -> vector<8x184xf32>
    %c0_8 = arith.constant 0 : index
    %c0_9 = arith.constant 0 : index
    %13 = vector.load %arg8[%c0_8, %c0_9] : memref<1x184xf32, #tpu.memory_space<vmem>>, vector<1x184xf32>
    %14 = vector.broadcast %13 : vector<1x184xf32> to vector<8x184xf32>
    %15 = arith.addf %12, %14 : vector<8x184xf32>
    %16 = vector.extract_strided_slice %15 {offsets = [0, 0], sizes = [8, 24], strides = [1, 1]} : vector<8x184xf32> to vector<8x24xf32>
    %17 = vector.extract_strided_slice %15 {offsets = [0, 24], sizes = [8, 32], strides = [1, 1]} : vector<8x184xf32> to vector<8x32xf32>
    %18 = vector.extract_strided_slice %15 {offsets = [0, 56], sizes = [8, 128], strides = [1, 1]} : vector<8x184xf32> to vector<8x128xf32>
    %c0_10 = arith.constant 0 : index
    %c0_11 = arith.constant 0 : index
    %c0_12 = arith.constant 0 : index
    %19 = vector.load %arg3[%c0_10, %c0_11, %c0_12] : memref<8x16x24xbf16, #tpu.memory_space<vmem>>, vector<8x16x24xbf16>
    %20 = vector.shape_cast %16 : vector<8x24xf32> to vector<8x1x24xf32>
    %21 = arith.extf %19 : vector<8x16x24xbf16> to vector<8x16x24xf32>
    %22 = vector.broadcast %20 : vector<8x1x24xf32> to vector<8x16x24xf32>
    %23 = arith.addf %21, %22 : vector<8x16x24xf32>
    %cst_13 = arith.constant 0.000000e+00 : f32
    %24 = vector.broadcast %cst_13 : f32 to vector<8x16x24xf32>
    %25 = arith.maximumf %23, %24 : vector<8x16x24xf32>
    %c0_14 = arith.constant 0 : index
    %c0_15 = arith.constant 0 : index
    %26 = vector.load %arg9[%c0_14, %c0_15] : memref<1x24xf32, #tpu.memory_space<vmem>>, vector<1x24xf32>
    %27 = vector.shape_cast %26 : vector<1x24xf32> to vector<1x1x24xf32>
    %28 = vector.broadcast %27 : vector<1x1x24xf32> to vector<8x16x24xf32>
    %29 = arith.mulf %25, %28 : vector<8x16x24xf32>
    %cst_16 = arith.constant dense<0.000000e+00> : vector<8x16xf32>
    %30 = vector.multi_reduction <add>, %29, %cst_16 [2] : vector<8x16x24xf32> to vector<8x16xf32>
    %cst_17 = arith.constant dense<0xFF800000> : vector<8xf32>
    %31 = vector.multi_reduction <maximumf>, %30, %cst_17 [1] : vector<8x16xf32> to vector<8xf32>
    %32 = vector.shape_cast %31 : vector<8xf32> to vector<8x1xf32>
    %33 = vector.broadcast %32 : vector<8x1xf32> to vector<8x16xf32>
    %34 = arith.subf %30, %33 : vector<8x16xf32>
    %35 = math.exp %34 : vector<8x16xf32>
    %cst_18 = arith.constant dense<0.000000e+00> : vector<8xf32>
    %36 = vector.multi_reduction <add>, %35, %cst_18 [1] : vector<8x16xf32> to vector<8xf32>
    %37 = vector.shape_cast %36 : vector<8xf32> to vector<8x1xf32>
    %38 = tpu.reciprocal %37 {approx = true} : vector<8x1xf32> -> vector<8x1xf32>
    %39 = vector.broadcast %38 : vector<8x1xf32> to vector<8x16xf32>
    %40 = arith.mulf %35, %39 : vector<8x16xf32>
    %41 = vector.shape_cast %40 : vector<8x16xf32> to vector<8x16x1xf32>
    %c0_19 = arith.constant 0 : index
    %c0_20 = arith.constant 0 : index
    %c0_21 = arith.constant 0 : index
    %42 = vector.load %arg2[%c0_19, %c0_20, %c0_21] : memref<8x16x32xbf16, #tpu.memory_space<vmem>>, vector<8x16x32xbf16>
    %43 = arith.extf %42 : vector<8x16x32xbf16> to vector<8x16x32xf32>
    %44 = vector.broadcast %41 : vector<8x16x1xf32> to vector<8x16x32xf32>
    %45 = arith.mulf %44, %43 : vector<8x16x32xf32>
    %cst_22 = arith.constant dense<0.000000e+00> : vector<8x32xf32>
    %46 = vector.multi_reduction <add>, %45, %cst_22 [1] : vector<8x16x32xf32> to vector<8x32xf32>
    %47 = arith.negf %17 : vector<8x32xf32>
    %48 = math.exp %47 : vector<8x32xf32>
    %cst_23 = arith.constant 1.000000e+00 : f32
    %49 = vector.broadcast %cst_23 : f32 to vector<8x32xf32>
    %50 = arith.addf %49, %48 : vector<8x32xf32>
    %51 = arith.divf %49, %50 : vector<8x32xf32>
    %52 = arith.mulf %51, %46 : vector<8x32xf32>
    %c0_24 = arith.constant 0 : index
    %c0_25 = arith.constant 0 : index
    %c0_26 = arith.constant 0 : index
    %53 = vector.load %arg4[%c0_24, %c0_25, %c0_26] : memref<1x8x16xf32, #tpu.memory_space<vmem>>, vector<1x8x16xf32>
    %54 = vector.shape_cast %53 : vector<1x8x16xf32> to vector<8x16xf32>
    %55 = arith.truncf %54 : vector<8x16xf32> to vector<8x16xbf16>
    %c0_27 = arith.constant 0 : index
    %c0_28 = arith.constant 0 : index
    %56 = vector.load %arg10[%c0_27, %c0_28] : memref<16x128xbf16, #tpu.memory_space<vmem>>, vector<16x128xbf16>
    %cst_29 = arith.constant dense<0.000000e+00> : vector<8x128xf32>
    %57 = tpu.matmul %55, %56, %cst_29 {dimension_numbers = #tpu.dot_dimension_numbers<[1], [0], [0], [1], [0, 0, 1, 1], [], []>} : vector<8x16xbf16>, vector<16x128xbf16>, vector<8x128xf32> -> vector<8x128xf32>
    %58 = arith.addf %18, %57 : vector<8x128xf32>
    %59 = arith.truncf %52 : vector<8x32xf32> to vector<8x32xbf16>
    %c0_30 = arith.constant 0 : index
    %c0_31 = arith.constant 0 : index
    %60 = vector.load %arg11[%c0_30, %c0_31] : memref<32x128xbf16, #tpu.memory_space<vmem>>, vector<32x128xbf16>
    %cst_32 = arith.constant dense<0.000000e+00> : vector<8x128xf32>
    %61 = tpu.matmul %59, %60, %cst_32 {dimension_numbers = #tpu.dot_dimension_numbers<[1], [0], [0], [1], [0, 0, 1, 1], [], []>} : vector<8x32xbf16>, vector<32x128xbf16>, vector<8x128xf32> -> vector<8x128xf32>
    %62 = arith.addf %58, %61 : vector<8x128xf32>
    %63 = vector.extract_strided_slice %62 {offsets = [0, 0], sizes = [8, 32], strides = [1, 1]} : vector<8x128xf32> to vector<8x32xf32>
    %64 = arith.negf %63 : vector<8x32xf32>
    %65 = math.exp %64 : vector<8x32xf32>
    %cst_33 = arith.constant 1.000000e+00 : f32
    %66 = vector.broadcast %cst_33 : f32 to vector<8x32xf32>
    %67 = arith.addf %66, %65 : vector<8x32xf32>
    %68 = arith.divf %66, %67 : vector<8x32xf32>
    %69 = vector.extract_strided_slice %62 {offsets = [0, 32], sizes = [8, 32], strides = [1, 1]} : vector<8x128xf32> to vector<8x32xf32>
    %70 = arith.negf %69 : vector<8x32xf32>
    %71 = math.exp %70 : vector<8x32xf32>
    %cst_34 = arith.constant 1.000000e+00 : f32
    %72 = vector.broadcast %cst_34 : f32 to vector<8x32xf32>
    %73 = arith.addf %72, %71 : vector<8x32xf32>
    %74 = arith.divf %72, %73 : vector<8x32xf32>
    %75 = vector.extract_strided_slice %62 {offsets = [0, 64], sizes = [8, 32], strides = [1, 1]} : vector<8x128xf32> to vector<8x32xf32>
    %76 = math.tanh %75 : vector<8x32xf32>
    %77 = vector.extract_strided_slice %62 {offsets = [0, 96], sizes = [8, 32], strides = [1, 1]} : vector<8x128xf32> to vector<8x32xf32>
    %78 = arith.negf %77 : vector<8x32xf32>
    %79 = math.exp %78 : vector<8x32xf32>
    %cst_35 = arith.constant 1.000000e+00 : f32
    %80 = vector.broadcast %cst_35 : f32 to vector<8x32xf32>
    %81 = arith.addf %80, %79 : vector<8x32xf32>
    %82 = arith.divf %80, %81 : vector<8x32xf32>
    %83 = arith.mulf %74, %9 : vector<8x32xf32>
    %84 = arith.mulf %68, %76 : vector<8x32xf32>
    %85 = arith.addf %83, %84 : vector<8x32xf32>
    %86 = math.tanh %85 : vector<8x32xf32>
    %87 = arith.mulf %82, %86 : vector<8x32xf32>
    %c0_36 = arith.constant 0 : index
    %c0_37 = arith.constant 0 : index
    %88 = vector.load %arg14[%c0_36, %c0_37] : memref<8x32xf32, #tpu.memory_space<vmem>>, vector<8x32xf32>
    tpu.vector_store %arg14[%c0_36, %c0_37], %87 {strides = array<i32>} : memref<8x32xf32, #tpu.memory_space<vmem>>, vector<8x32xf32>,
    %c0_38 = arith.constant 0 : index
    %c0_39 = arith.constant 0 : index
    %89 = vector.load %arg15[%c0_38, %c0_39] : memref<8x32xf32, #tpu.memory_space<vmem>>, vector<8x32xf32>
    tpu.vector_store %arg15[%c0_38, %c0_39], %85 {strides = array<i32>} : memref<8x32xf32, #tpu.memory_space<vmem>>, vector<8x32xf32>,
    %90 = arith.truncf %87 : vector<8x32xf32> to vector<8x32xbf16>
    %c0_40 = arith.constant 0 : index
    %c0_41 = arith.constant 0 : index
    %c0_42 = arith.constant 0 : index
    %91 = vector.load %arg12[%c0_40, %c0_41, %c0_42] : memref<1x8x32xbf16, #tpu.memory_space<vmem>>, vector<1x8x32xbf16>
    %92 = vector.shape_cast %91 : vector<1x8x32xbf16> to vector<8x32xbf16>
    %93 = vector.shape_cast %90 : vector<8x32xbf16> to vector<1x8x32xbf16>
    tpu.vector_store %arg12[%c0_40, %c0_41, %c0_42], %93 {strides = array<i32>} : memref<1x8x32xbf16, #tpu.memory_space<vmem>>, vector<1x8x32xbf16>,
    %94 = vector.broadcast %7 : vector<8x1xf32> to vector<8x16xf32>
    %95 = arith.mulf %40, %94 : vector<8x16xf32>
    %cst_43 = arith.constant 0.000000e+00 : f32
    %96 = vector.broadcast %cst_43 : f32 to vector<8x112xf32>
    %97 = tpu.concatenate %95, %96 in 1 : vector<8x16xf32>, vector<8x112xf32> -> vector<8x128xf32>
    %c0_44 = arith.constant 0 : index
    %c0_45 = arith.constant 0 : index
    %c0_46 = arith.constant 0 : index
    %98 = vector.load %arg13[%c0_44, %c0_45, %c0_46] : memref<1x8x128xf32, #tpu.memory_space<vmem>>, vector<1x8x128xf32>
    %99 = vector.shape_cast %98 : vector<1x8x128xf32> to vector<8x128xf32>
    %100 = vector.shape_cast %97 : vector<8x128xf32> to vector<1x8x128xf32>
    tpu.vector_store %arg13[%c0_44, %c0_45, %c0_46], %100 {strides = array<i32>} : memref<1x8x128xf32, #tpu.memory_space<vmem>>, vector<1x8x128xf32>,
    return
  }
  func.func @transform_0(%arg0: i32) -> (i32, i32) {
    %c0_i32 = arith.constant 0 : i32
    %c0_i32_0 = arith.constant 0 : i32
    %c0_i32_1 = arith.constant 0 : i32
    return %c0_i32, %c0_i32_0 : i32, i32
  }
  func.func @transform_1(%arg0: i32) -> (i32, i32, i32) {
    %c0_i32 = arith.constant 0 : i32
    %c0_i32_0 = arith.constant 0 : i32
    %c0_i32_1 = arith.constant 0 : i32
    %c0_i32_2 = arith.constant 0 : i32
    return %c0_i32, %c0_i32_0, %c0_i32_1 : i32, i32, i32
  }
  func.func @transform_2(%arg0: i32) -> (i32, i32, i32) {
    %c0_i32 = arith.constant 0 : i32
    %c0_i32_0 = arith.constant 0 : i32
    %c0_i32_1 = arith.constant 0 : i32
    %c0_i32_2 = arith.constant 0 : i32
    return %c0_i32, %c0_i32_0, %c0_i32_1 : i32, i32, i32
  }
  func.func @transform_3(%arg0: i32) -> (i32, i32, i32) {
    %c0_i32 = arith.constant 0 : i32
    %c0_i32_0 = arith.constant 0 : i32
    %c0_i32_1 = arith.constant 0 : i32
    return %arg0, %c0_i32, %c0_i32_0 : i32, i32, i32
  }
  func.func @transform_4(%arg0: i32) -> (i32, i32) {
    %c0_i32 = arith.constant 0 : i32
    %c0_i32_0 = arith.constant 0 : i32
    %c0_i32_1 = arith.constant 0 : i32
    return %c0_i32, %c0_i32_0 : i32, i32
  }
  func.func @transform_5(%arg0: i32) -> (i32, i32) {
    %c0_i32 = arith.constant 0 : i32
    %c0_i32_0 = arith.constant 0 : i32
    %c0_i32_1 = arith.constant 0 : i32
    return %c0_i32, %c0_i32_0 : i32, i32
  }
  func.func @transform_6(%arg0: i32) -> (i32, i32) {
    %c0_i32 = arith.constant 0 : i32
    %c0_i32_0 = arith.constant 0 : i32
    %c0_i32_1 = arith.constant 0 : i32
    return %c0_i32, %c0_i32_0 : i32, i32
  }
  func.func @transform_7(%arg0: i32) -> (i32, i32) {
    %c0_i32 = arith.constant 0 : i32
    %c0_i32_0 = arith.constant 0 : i32
    %c0_i32_1 = arith.constant 0 : i32
    return %c0_i32, %c0_i32_0 : i32, i32
  }
  func.func @transform_8(%arg0: i32) -> (i32, i32) {
    %c0_i32 = arith.constant 0 : i32
    %c0_i32_0 = arith.constant 0 : i32
    %c0_i32_1 = arith.constant 0 : i32
    return %c0_i32, %c0_i32_0 : i32, i32
  }
  func.func @transform_9(%arg0: i32) -> (i32, i32) {
    %c0_i32 = arith.constant 0 : i32
    %c0_i32_0 = arith.constant 0 : i32
    %c0_i32_1 = arith.constant 0 : i32
    return %c0_i32, %c0_i32_0 : i32, i32
  }
  func.func @transform_10(%arg0: i32) -> (i32, i32) {
    %c0_i32 = arith.constant 0 : i32
    %c0_i32_0 = arith.constant 0 : i32
    %c0_i32_1 = arith.constant 0 : i32
    return %c0_i32, %c0_i32_0 : i32, i32
  }
  func.func @transform_11(%arg0: i32) -> (i32, i32, i32) {
    %c0_i32 = arith.constant 0 : i32
    %c0_i32_0 = arith.constant 0 : i32
    %c0_i32_1 = arith.constant 0 : i32
    return %arg0, %c0_i32, %c0_i32_0 : i32, i32, i32
  }
  func.func @transform_12(%arg0: i32) -> (i32, i32, i32) {
    %c0_i32 = arith.constant 0 : i32
    %c0_i32_0 = arith.constant 0 : i32
    %c0_i32_1 = arith.constant 0 : i32
    return %arg0, %c0_i32, %c0_i32_0 : i32, i32, i32
  }
}

module attributes {stable_mosaic.version = 11 : i64} {
  func.func @fc_kernel(%arg0: i32, %arg1: i32, %arg2: memref<8x7x32xbf16, #tpu.memory_space<vmem>>, %arg3: memref<32x128xbf16, #tpu.memory_space<vmem>>, %arg4: memref<1x128xf32, #tpu.memory_space<vmem>>, %arg5: memref<8x7x1xf32, #tpu.memory_space<vmem>>, %arg6: memref<8x7x128xf32, #tpu.memory_space<vmem>>) attributes {dimension_semantics = [#tpu.dimension_semantics<parallel>, #tpu.dimension_semantics<parallel>], iteration_bounds = array<i64: 1, 1>, scalar_prefetch = 0 : i64, scratch_operands = 0 : i64, tpu.core_type = #tpu.core_type<tc>, window_params = [{transform_indices = @transform_0, window_bounds = array<i64: 8, 7, 32>}, {transform_indices = @transform_1, window_bounds = array<i64: 32, 128>}, {transform_indices = @transform_2, window_bounds = array<i64: 1, 128>}, {transform_indices = @transform_3, window_bounds = array<i64: 8, 7, 1>}, {transform_indices = @transform_4, window_bounds = array<i64: 8, 7, 128>}]} {
    %c0 = arith.constant 0 : index
    %c0_0 = arith.constant 0 : index
    %c0_1 = arith.constant 0 : index
    %0 = vector.load %arg2[%c0, %c0_0, %c0_1] : memref<8x7x32xbf16, #tpu.memory_space<vmem>>, vector<8x7x32xbf16>
    %1 = vector.shape_cast %0 : vector<8x7x32xbf16> to vector<56x32xbf16>
    %c0_2 = arith.constant 0 : index
    %c0_3 = arith.constant 0 : index
    %2 = vector.load %arg3[%c0_2, %c0_3] : memref<32x128xbf16, #tpu.memory_space<vmem>>, vector<32x128xbf16>
    %cst = arith.constant dense<0.000000e+00> : vector<56x128xf32>
    %3 = tpu.matmul %1, %2, %cst {dimension_numbers = #tpu.dot_dimension_numbers<[1], [0], [0], [1], [0, 0, 1, 1], [], []>} : vector<56x32xbf16>, vector<32x128xbf16>, vector<56x128xf32> -> vector<56x128xf32>
    %c0_4 = arith.constant 0 : index
    %c0_5 = arith.constant 0 : index
    %4 = vector.load %arg4[%c0_4, %c0_5] : memref<1x128xf32, #tpu.memory_space<vmem>>, vector<1x128xf32>
    %5 = vector.broadcast %4 : vector<1x128xf32> to vector<56x128xf32>
    %6 = arith.addf %3, %5 : vector<56x128xf32>
    %7 = vector.shape_cast %6 : vector<56x128xf32> to vector<8x7x128xf32>
    %c0_6 = arith.constant 0 : index
    %c0_7 = arith.constant 0 : index
    %c0_8 = arith.constant 0 : index
    %8 = vector.load %arg5[%c0_6, %c0_7, %c0_8] : memref<8x7x1xf32, #tpu.memory_space<vmem>>, vector<8x7x1xf32>
    %9 = vector.broadcast %8 : vector<8x7x1xf32> to vector<8x7x128xf32>
    %10 = arith.mulf %7, %9 : vector<8x7x128xf32>
    %c0_9 = arith.constant 0 : index
    %c0_10 = arith.constant 0 : index
    %c0_11 = arith.constant 0 : index
    %11 = vector.load %arg6[%c0_9, %c0_10, %c0_11] : memref<8x7x128xf32, #tpu.memory_space<vmem>>, vector<8x7x128xf32>
    tpu.vector_store %arg6[%c0_9, %c0_10, %c0_11], %10 {strides = array<i32>} : memref<8x7x128xf32, #tpu.memory_space<vmem>>, vector<8x7x128xf32>,
    return
  }
  func.func @transform_0(%arg0: i32, %arg1: i32) -> (i32, i32, i32) {
    %c0_i32 = arith.constant 0 : i32
    %c0_i32_0 = arith.constant 0 : i32
    %c0_i32_1 = arith.constant 0 : i32
    return %arg0, %c0_i32, %c0_i32_0 : i32, i32, i32
  }
  func.func @transform_1(%arg0: i32, %arg1: i32) -> (i32, i32) {
    %c0_i32 = arith.constant 0 : i32
    %c0_i32_0 = arith.constant 0 : i32
    return %c0_i32, %arg1 : i32, i32
  }
  func.func @transform_2(%arg0: i32, %arg1: i32) -> (i32, i32) {
    %c0_i32 = arith.constant 0 : i32
    %c0_i32_0 = arith.constant 0 : i32
    return %c0_i32, %arg1 : i32, i32
  }
  func.func @transform_3(%arg0: i32, %arg1: i32) -> (i32, i32, i32) {
    %c0_i32 = arith.constant 0 : i32
    %c0_i32_0 = arith.constant 0 : i32
    %c0_i32_1 = arith.constant 0 : i32
    return %arg0, %c0_i32, %c0_i32_0 : i32, i32, i32
  }
  func.func @transform_4(%arg0: i32, %arg1: i32) -> (i32, i32, i32) {
    %c0_i32 = arith.constant 0 : i32
    %c0_i32_0 = arith.constant 0 : i32
    return %arg0, %c0_i32, %arg1 : i32, i32, i32
  }
}

</mosaic_0001>

<bundles_post_ra>
// kernel: pure_attention_forward.3
= control target key start
LH: loop header
LB: loop body
LE: loop exit
PB: predicated region body
PF: predicated region fallthrough
CT: control target
= control target key end

     0   :  { %13 = vsyncpa [#allocation3], 0  ;;  %s1223_s0 = inlined_call_operand.hbm [shape: bf16[8,16,32], index: 0, kind: input, shape index: {}]   ;;  %s1224_s1 = inlined_call_operand.hbm [shape: bf16[32,24], index: 1, kind: input, shape index: {}]   ;;  %s1225_s2 = inlined_call_operand.hbm [shape: f32[1,24], index: 2, kind: input, shape index: {}]   ;;  %s1226_s3 = inlined_call_operand.hbm [shape: f32[32,64], index: 3, kind: input, shape index: {}]   ;;  %s1227_s4 = inlined_call_operand.hbm [shape: f32[1,64], index: 4, kind: input, shape index: {}]   ;;  %s1228_s5 = inlined_call_operand.hbm [shape: bf16[8,16,24], index: 5, kind: output, shape index: {0}]   ;;  %s1229_s6 = inlined_call_operand.hbm [shape: f32[8,32], index: 6, kind: output, shape index: {1}]   ;;  %s1230_s7 = inlined_call_operand.hbm [shape: f32[8,32], index: 7, kind: output, shape index: {2}]  }
   0x1   :  { %14 = vsyncpa [#allocation6], 0 }
   0x2   :  { %15 = vsyncpa [#allocation9], 0 }
   0x3   :  { %16 = vsyncpa [#allocation4], 0 }
   0x4   :  { %17 = vsyncpa [#allocation13], 0  ;;  %s955_s24 = smov [#allocation5]   ;;  %s956_s26 = smov [#allocation8]  }
   0x5   :  { %s35_s25 = sshll.u32 %s955_s24, 4  ;;  %s57_s27 = sshll.u32 %s956_s26, 4  ;;  %s36_s25 = int_to_ptr.vmem [resolvable:$true] %s35_s25  ;;  %s1011_s27 = int_to_ptr.vmem [resolvable:$true] %s57_s27 }
   0x6   :  { %s769_s30 = scalar_lea.hbm %s1224_s1, 256 }
   0x7   :  { %p770_p0 = scmp.ne.s32.totalorder %s1224_s1, %s769_s30  ;;  %p773_p1 = scmp.lt.u32.totalorder %s769_s30, %s1224_s1 }
   0x9   :  { %p775_p2 = pnand %p773_p1, %p770_p0 }
   0xb   :  { %778 = shalt.err (!%p775_p2)
}
   0xc   :  { %s779_s12 = scalar_lea.vmem %s36_s25, 256  ;;  %p784_p4 = scmp.lt.s32.totalorder %s36_s25, %s36_s25 }
   0xd   :  { %p780_p3 = scmp.ne.s32.totalorder %s36_s25, %s779_s12  ;;  %p785_p5 = scmp.lt.s32.totalorder %s779_s12, %s779_s12 }
   0xf   :  { %p786_p6 = por %p785_p5, %p784_p4 }
  0x11   :  { %p787_p7 = pnand %p786_p6, %p780_p3 }
  0x13   :  { %790 = shalt.err (!%p787_p7)
}
  0x14   :  { %s957_s13 = smov 64   ;;  %s958_s14 = smov 4  }
  0x15   :  { %41 = dma.hbm_to_vmem [thread:$0]  %s1224_s1, 256, %s36_s25, [#allocation6], %s957_s13, %s957_s13, %s958_s14  }
  0x16   :  { %s791_s19 = scalar_lea.hbm %s1226_s3, 512 }
  0x17   :  { %p792_p8 = scmp.ne.s32.totalorder %s1226_s3, %s791_s19  ;;  %p795_p9 = scmp.lt.u32.totalorder %s791_s19, %s1226_s3 }
  0x19   :  { %p797_p10 = pnand %p795_p9, %p792_p8 }
  0x1b   :  { %800 = shalt.err (!%p797_p10)
}
  0x1c   :  { %s801_s24 = scalar_lea.vmem %s1011_s27, 512  ;;  %p806_p12 = scmp.lt.s32.totalorder %s1011_s27, %s1011_s27 }
  0x1d   :  { %p802_p11 = scmp.ne.s32.totalorder %s1011_s27, %s801_s24  ;;  %p807_p13 = scmp.lt.s32.totalorder %s801_s24, %s801_s24 }
  0x1f   :  { %p808_p0 = por %p807_p13, %p806_p12 }
  0x21   :  { %p809_p1 = pnand %p808_p0, %p802_p11 }
  0x23   :  { %812 = shalt.err (!%p809_p1)
}
  0x24   :  { %s959_s1 = smov 128   ;;  %s960_s25 = smov 8  }
  0x25   :  { %63 = dma.hbm_to_vmem [thread:$0]  %s1226_s3, 512, %s1011_s27, [#allocation9], %s959_s1, %s959_s1, %s960_s25  }
  0x26   :  { %s961_s29 = smov [#allocation2]   ;;  %s962_s8 = smov [#allocation7]  }
  0x27   :  { %s23_s30 = sshll.u32 %s961_s29, 4  ;;  %s48_s9 = sshll.u32 %s962_s8, 4  ;;  %s24_s30 = int_to_ptr.vmem [resolvable:$true] %s23_s30  ;;  %s49_s9 = int_to_ptr.vmem [resolvable:$true] %s48_s9 }
  0x28   :  { %s813_s12 = scalar_lea.hbm %s1223_s0, 1024 }
  0x29   :  { %p814_p2 = scmp.ne.s32.totalorder %s1223_s0, %s813_s12  ;;  %p817_p3 = scmp.lt.u32.totalorder %s813_s12, %s1223_s0 }
  0x2b   :  { %p819_p4 = pnand %p817_p3, %p814_p2 }
  0x2d   :  { %822 = shalt.err (!%p819_p4)
}
  0x2e   :  { %s823_s3 = scalar_lea.vmem %s24_s30, 1024  ;;  %p828_p6 = scmp.lt.s32.totalorder %s24_s30, %s24_s30 }
  0x2f   :  { %p824_p5 = scmp.ne.s32.totalorder %s24_s30, %s823_s3  ;;  %p829_p7 = scmp.lt.s32.totalorder %s823_s3, %s823_s3 }
  0x31   :  { %p830_p8 = por %p829_p7, %p828_p6 }
  0x33   :  { %p831_p9 = pnand %p830_p8, %p824_p5 }
  0x35   :  { %834 = shalt.err (!%p831_p9)
}
  0x36   :  { %29 = dma.hbm_to_vmem [thread:$0]  %s1223_s0, 1024, %s24_s30, [#allocation3], %s957_s13, %s957_s13, %s958_s14  }
  0x37   :  { %s835_s22 = scalar_lea.hbm %s1225_s2, 16 }
  0x38   :  { %p836_p10 = scmp.ne.s32.totalorder %s1225_s2, %s835_s22  ;;  %p839_p11 = scmp.lt.u32.totalorder %s835_s22, %s1225_s2 }
  0x3a   :  { %p841_p12 = pnand %p839_p11, %p836_p10 }
  0x3c   :  { %844 = shalt.err (!%p841_p12)
}
  0x3d   :  { %s845_s26 = scalar_lea.vmem %s49_s9, 16  ;;  %s849_s28 = scalar_lea.vmem %s49_s9, 32 }
  0x3e   :  { %p846_p13 = scmp.ne.s32.totalorder %s49_s9, %s845_s26  ;;  %p850_p0 = scmp.lt.s32.totalorder %s49_s9, %s49_s9 }
  0x3f   :  { %p851_p1 = scmp.lt.s32.totalorder %s849_s28, %s845_s26 }
  0x41   :  { %p852_p2 = por %p851_p1, %p850_p0 }
  0x43   :  { %p853_p3 = pnand %p852_p2, %p846_p13 }
  0x45   :  { %856 = shalt.err (!%p853_p3)
}
  0x46   :  { %51 = dma.hbm_to_vmem [thread:$0]  %s1225_s2, 16, %s49_s9, [#allocation6]  }
  0x47   :  { %s963_s30 = smov [#allocation10]   ;;  %s857_s12 = scalar_lea.hbm %s1227_s4, 16 }
  0x48   :  { %s70_s8 = sshll.u32 %s963_s30, 4  ;;  %p858_p4 = scmp.ne.s32.totalorder %s1227_s4, %s857_s12  ;;  %s71_s8 = int_to_ptr.vmem [resolvable:$true] %s70_s8 }
  0x49   :  { %p861_p5 = scmp.lt.u32.totalorder %s857_s12, %s1227_s4 }
  0x4b   :  { %p863_p6 = pnand %p861_p5, %p858_p4 }
  0x4d   :  { %866 = shalt.err (!%p863_p6)
}
  0x4e   :  { %s867_s3 = scalar_lea.vmem %s71_s8, 16  ;;  %s871_s2 = scalar_lea.vmem %s71_s8, 32 }
  0x4f   :  { %p868_p7 = scmp.ne.s32.totalorder %s71_s8, %s867_s3  ;;  %p872_p8 = scmp.lt.s32.totalorder %s71_s8, %s71_s8 }
  0x50   :  { %p873_p9 = scmp.lt.s32.totalorder %s871_s2, %s867_s3 }
  0x52   :  { %p874_p10 = por %p873_p9, %p872_p8 }
  0x54   :  { %p875_p11 = pnand %p874_p10, %p868_p7 }
  0x56   :  { %878 = shalt.err (!%p875_p11)
}
  0x57   :  { %73 = dma.hbm_to_vmem [thread:$0]  %s1227_s4, 16, %s71_s8, [#allocation9]  }
  0x58   :  { %945 = dma.done.wait [#allocation3], 1024  }
  0x59   :  { %946 = vsyncadd [#allocation3], 4294966272 }
  0x5a   :  { %947 = dma.done.wait [#allocation6], 272  }
  0x5b   :  { %948 = vsyncadd [#allocation6], 4294967024 }
  0x5c   :  { %949 = dma.done.wait [#allocation9], 528  }
  0x5d   :  { %950 = vsyncadd [#allocation9], 4294966768  ;;  %v751_v0 = vld [vmem:[#allocation5] sm:$0xff]   ;;  %v752_v1 = vld [vmem:[#allocation5 + $0x8] sm:$0xff]   ;;  %vm169_vm0 = vcmask 261120   ;;  %v964_v32 = vmov 0.0|0.0  }
  0x5e   :  { %731 = vmatprep.subr.bf16.mxu1 %v751_v0  ;;  %v102_v2 = vld [vmem:[#allocation2 + $0x30] sm:$0xff]   ;;  %v104_v3 = vld [vmem:[#allocation2 + $0x38] sm:$0xff]   ;;  %694 = vmatprep.subr.bf16.mxu0 %v751_v0  ;;  %v1084_v8 = vld [vmem:[#allocation8 + $0x10] sm:$0xff]  ;;  %vm965_vm1 = vmmov 0   ;;  %v966_v44 = vmov 0.0   ;;  %vm488_vm2 = vcmask 1041409  }
  0x5f   :  { %v469_v4 = vld [vmem:[#allocation8] sm:$0xff]  ;;  %733 = vmatpush3.bf16.msra.mxu1 %v751_v0  ;;  %v384_v5 = vunpack.c.l.bf16 %v102_v2  ;;  %v385_v6 = vunpack.c.h.bf16 %v102_v2  ;;  %v470_v7 = vld [vmem:[#allocation8 + $0x8] sm:$0xff]  ;;  %v1086_v9 = vld [vmem:[#allocation8 + $0x18] sm:$0xff]  ;;  %695 = vmatpush3.bf16.msra.mxu0 %v751_v0  ;;  %v386_v10 = vunpack.c.l.bf16 %v104_v3  ;;  %v387_v11 = vunpack.c.h.bf16 %v104_v3  ;;  %s967_s4 = smov [#allocation12]   ;;  %s968_s20 = smov 96  }
  0x60   :  { %732 = vmatprep.subr.bf16.mxu1 %v752_v1  ;;  %v726_v12 = vpack.c.bf16 %v470_v7, %v469_v4  ;;  %v1088_v13 = vld [vmem:[#allocation2] sm:$0xff]   ;;  %v1090_v14 = vld [vmem:[#allocation2 + $0x8] sm:$0xff]   ;;  %v1092_v15 = vld [vmem:[#allocation2 + $0x10] sm:$0xff]   ;;  %696 = vmatprep.subr.bf16.mxu0 %v752_v1  ;;  %v729_v28 = vpack.c.bf16 %v1086_v9, %v1084_v8  ;;  %vm490_vm3 = vcmask 1042434   ;;  %vm492_vm4 = vcmask 1043459   ;;  %s598_s19 = sshll.u32 %s967_s4, 4  ;;  %s599_s19 = int_to_ptr.vmem [resolvable:$true] %s598_s19 }
  0x61   :  { %710 = vmatprep.mubr.msk.bf16.mxu1 %vm169_vm0, %v102_v2  ;;  %v442_v16 = vsel %vm169_vm0, %v384_v5, 0.0  ;;  %v443_v17 = vsel %vm169_vm0, %v385_v6, 0.0  ;;  %v1097_v18 = vld [vmem:[#allocation2 + $0x18] sm:$0xff]   ;;  %v372_v19 = vunpack.c.l.bf16 %v1088_v13  ;;  %v373_v20 = vunpack.c.h.bf16 %v1088_v13  ;;  %v1103_v24 = vld [vmem:[#allocation2 + $0x20] sm:$0xff]   ;;  %v1105_v25 = vld [vmem:[#allocation2 + $0x28] sm:$0xff]   ;;  %698 = vmatprep.mubr.msk.bf16.mxu0 %vm169_vm0, %v1088_v13  ;;  %s879_s21 = scalar_lea.vmem %s599_s19, 128  ;;  %p884_p13 = scmp.lt.s32.totalorder %s599_s19, %s599_s19 }
  0x62   :  { %v444_v21 = vadd.f32 %v443_v17, %v442_v16  ;;  %v451_v22 = vsel %vm169_vm0, %v386_v10, 0.0  ;;  %v452_v23 = vsel %vm169_vm0, %v387_v11, 0.0  ;;  %v374_v26 = vunpack.c.l.bf16 %v1090_v14  ;;  %p880_p12 = scmp.ne.s32.totalorder %s599_s19, %s879_s21  ;;  %p885_p0 = scmp.lt.s32.totalorder %s879_s21, %s879_s21 }
  0x63   :  { %734 = vmatpush3.bf16.msra.mxu1 %v752_v1  ;;  %v453_v27 = vadd.f32 %v452_v23, %v451_v22  ;;  %v375_v29 = vunpack.c.h.bf16 %v1090_v14  ;;  %v376_v30 = vunpack.c.l.bf16 %v1092_v15  ;;  %697 = vmatpush3.bf16.msra.mxu0 %v752_v1  ;;  %v377_v33 = vunpack.c.h.bf16 %v1092_v15 }
  0x64   :  { %v445_v31 = vrot.slane %v444_v21, 4  ;;  %725 = vmatprep.subr.bf16.mxu1 %v964_v32  ;;  %v378_v34 = vunpack.c.l.bf16 %v1097_v18  ;;  %v379_v35 = vunpack.c.h.bf16 %v1097_v18  ;;  %v380_v37 = vunpack.c.l.bf16 %v1103_v24  ;;  %p886_p1 = por %p885_p0, %p884_p13 }
  0x65   :  { %v454_v36 = vrot.slane %v453_v27, 4  ;;  %v381_v38 = vunpack.c.h.bf16 %v1103_v24  ;;  %v382_v39 = vunpack.c.l.bf16 %v1105_v25  ;;  %v388_v41 = vsel %vm169_vm0, %v372_v19, 0.0 }
  0x66   :  { %v446_v40 = vadd.f32 %v445_v31, %v444_v21  ;;  %711 = vmatmul.mubr.msk.bf16.vlgmr.msra.gmra.mrb[0].mxu1 %vm169_vm0, %v104_v3  ;;  %v389_v42 = vsel %vm169_vm0, %v373_v20, 0.0  ;;  %v397_v43 = vsel %vm169_vm0, %v374_v26, 0.0  ;;  %v383_v45 = vunpack.c.h.bf16 %v1105_v25  ;;  %699 = vmatmul.mubr.msk.bf16.vlgmr.msra.gmra.mrb[0].mxu0 %vm169_vm0, %v1090_v14  ;;  %p887_p2 = pnand %p886_p1, %p880_p12 }
  0x67   :  { %727 = vmatpush3.bf16.msra.mxu1 %v726_v12  ;;  %722 = vmatprep.mubr.msk.f32.mxu1 %vm965_vm1, %v966_v44  ;;  %v390_v46 = vadd.f32 %v389_v42, %v388_v41  ;;  %v398_v47 = vsel %vm169_vm0, %v375_v29, 0.0  ;;  %v406_v48 = vsel %vm169_vm0, %v376_v30, 0.0  ;;  %v407_v51 = vsel %vm169_vm0, %v377_v33, 0.0 }
  0x68   :  { %v447_v49 = vrot.slane %v446_v40, 2  ;;  %728 = vmatprep.subr.bf16.mxu1 %v964_v32  ;;  %v399_v50 = vadd.f32 %v398_v47, %v397_v43  ;;  %v415_v52 = vsel %vm169_vm0, %v378_v34, 0.0  ;;  %v408_v54 = vadd.f32 %v407_v51, %v406_v48  ;;  %702 = vmatprep.mubr.msk.bf16.mxu0 %vm169_vm0, %v1092_v15  ;;  %v1148_v15 = vld [vmem:[#allocation7] ss:$0 sm:$0xff] }
  0x69   :  { %v391_v53 = vrot.slane %v390_v46, 4  ;;  %v416_v55 = vsel %vm169_vm0, %v379_v35, 0.0  ;;  %v424_v56 = vsel %vm169_vm0, %v380_v37, 0.0  ;;  %v455_v57 = vadd.f32 %v454_v36, %v453_v27 }
  0x6a   :  { %v400_v58 = vrot.slane %v399_v50, 4  ;;  %v417_v59 = vadd.f32 %v416_v55, %v415_v52  ;;  %v425_v60 = vsel %vm169_vm0, %v381_v38, 0.0  ;;  %v409_v62 = vrot.slane %v408_v54, 4 }
  0x6b   :  { %730 = vmatpush3.bf16.msra.mxu1 %v729_v28  ;;  %v392_v61 = vadd.f32 %v391_v53, %v390_v46  ;;  %v426_v63 = vadd.f32 %v425_v60, %v424_v56  ;;  %v433_v0 = vsel %vm169_vm0, %v382_v39, 0.0  ;;  %v448_v1 = vadd.f32 %v447_v49, %v446_v40 }
  0x6c   :  { %v401_v2 = vadd.f32 %v400_v58, %v399_v50  ;;  %v418_v3 = vrot.slane %v417_v59, 4  ;;  %v434_v4 = vsel %vm169_vm0, %v383_v45, 0.0  ;;  %v410_v6 = vadd.f32 %v409_v62, %v408_v54 }
  0x6d   :  { %v393_v5 = vrot.slane %v392_v61, 2  ;;  %v427_v7 = vrot.slane %v426_v63, 4  ;;  %v435_v8 = vadd.f32 %v434_v4, %v433_v0  ;;  %v456_v11 = vrot.slane %v455_v57, 2 }
  0x6e   :  { %v402_v9 = vrot.slane %v401_v2, 2  ;;  %v419_v10 = vadd.f32 %v418_v3, %v417_v59  ;;  %v411_v16 = vrot.slane %v410_v6, 2  ;;  %v449_v20 = vrot.slane %v448_v1, 1  ;;  %703 = vmatmul.mubr.msk.bf16.gmra.mrb[4].mxu0 %vm169_vm0, %v1097_v18 }
  0x6f   :  { %v394_v12 = vadd.f32 %v393_v5, %v392_v61  ;;  %v428_v17 = vadd.f32 %v427_v7, %v426_v63  ;;  %v436_v19 = vrot.slane %v435_v8, 4  ;;  %v457_v23 = vadd.f32 %v456_v11, %v455_v57  ;;  %706 = vmatprep.mubr.msk.bf16.mxu0 %vm169_vm0, %v1103_v24 }
  0x70   :  { %v403_v21 = vadd.f32 %v402_v9, %v401_v2  ;;  %v420_v22 = vrot.slane %v419_v10, 2  ;;  %v412_v27 = vadd.f32 %v411_v16, %v410_v6  ;;  %v450_v43 = vadd.f32 %v449_v20, %v448_v1 }
  0x71   :  { %v395_v26 = vrot.slane %v394_v12, 1  ;;  %v429_v28 = vrot.slane %v428_v17, 2  ;;  %v437_v29 = vadd.f32 %v436_v19, %v435_v8  ;;  %v458_v32 = vrot.slane %v457_v23, 1 }
  0x72   :  { %v404_v30 = vrot.slane %v403_v21, 1  ;;  %v421_v31 = vadd.f32 %v420_v22, %v419_v10  ;;  %v413_v34 = vrot.slane %v412_v27, 1  ;;  %vm494_vm5 = vcmask 1044484   ;;  %v661_v22 = vld [vmem:[#allocation10] ss:$0 sm:$0xff] }
  0x73   :  { %v396_v33 = vadd.f32 %v395_v26, %v394_v12  ;;  %v430_v35 = vadd.f32 %v429_v28, %v428_v17  ;;  %v438_v36 = vrot.slane %v437_v29, 2  ;;  %v459_v48 = vadd.f32 %v458_v32, %v457_v23 }
  0x74   :  { %v405_v37 = vadd.f32 %v404_v30, %v403_v21  ;;  %v422_v38 = vrot.slane %v421_v31, 1  ;;  %v414_v39 = vadd.f32 %v413_v34, %v412_v27  ;;  %vm496_vm6 = vcmask 1045509  }
  0x75   :  { %v431_v40 = vrot.slane %v430_v35, 1  ;;  %v439_v41 = vadd.f32 %v438_v36, %v437_v29  ;;  %v461_v42 = vmul.f32 0.0625, %v396_v33  ;;  %v467_v54 = vmul.f32 0.0625, %v450_v43 }
  0x76   :  { %v423_v44 = vadd.f32 %v422_v38, %v421_v31  ;;  %v462_v45 = vmul.f32 0.0625, %v405_v37  ;;  %v463_v49 = vmul.f32 0.0625, %v414_v39  ;;  %vm498_vm7 = vcmask 1046534   ;;  %707 = vmatmul.mubr.msk.bf16.gmra.mrb[8].mxu0 %vm169_vm0, %v1105_v25 }
  0x77   :  { %v432_v46 = vadd.f32 %v431_v40, %v430_v35  ;;  %v440_v47 = vrot.slane %v439_v41, 1  ;;  %v468_v56 = vmul.f32 0.0625, %v459_v48  ;;  %vm500_vm8 = vcmask 1047559  }
  0x78   :  { %v464_v50 = vmul.f32 0.0625, %v423_v44  ;;  %v489_v51 = vsel %vm488_vm2, %v462_v45, %v461_v42  ;;  %vm355_vm9 = vcmask 191488  }
  0x79   :  { %v441_v13 = vadd.f32 %v440_v47, %v439_v41  ;;  %v465_v52 = vmul.f32 0.0625, %v432_v46  ;;  %v491_v53 = vsel %vm490_vm3, %v463_v49, %v489_v51 }
  0x7a   :  { %v493_v55 = vsel %vm492_vm4, %v464_v50, %v491_v53 }
  0x7b   :  { %v466_v14 = vmul.f32 0.0625, %v441_v13  ;;  %v495_v57 = vsel %vm494_vm5, %v465_v52, %v493_v55 }
  0x7d   :  { %v497_v58 = vsel %vm496_vm6, %v466_v14, %v495_v57 }
  0x7e   :  { %v499_v59 = vsel %vm498_vm7, %v467_v54, %v497_v58 }
  0x7f   :  { %v501_v60 = vsel %vm500_vm8, %v468_v56, %v499_v59 }
  0x80   :  { %723 = vmatmul.mubr.msk.f32.vlgmr.msra.gmra.mrb[4].mxu1 %vm169_vm0, %v501_v60 }
 0x139   :  { %v712_v61 = vpop.f32.mrb[0].mxu1  ;;  %v700_v6 = vpop.f32.mrb[0].mxu0 }
 0x13a   :  { %v285_v62 = vadd.f32 %v712_v61, %v1148_v15  ;;  %v276_v63 = vpop.f32.mrb[1].mxu1  ;;  %v237_v7 = vadd.f32 %v700_v6, %v1148_v15  ;;  %v228_v8 = vpop.f32.mrb[1].mxu0 }
 0x13b   :  { %v277_v0 = vadd.f32 %v1148_v15, %v276_v63  ;;  %v713_v1 = vpop.f32.mrb[2].mxu1  ;;  %v229_v9 = vadd.f32 %v1148_v15, %v228_v8  ;;  %v701_v10 = vpop.f32.mrb[2].mxu0 }
 0x13c   :  { %v677_v18 = vpack.c.bf16 %v285_v62, %v285_v62  ;;  %v288_v2 = vadd.f32 %v713_v1, %v1148_v15  ;;  %v279_v3 = vpop.f32.mrb[3].mxu1  ;;  %v665_v11 = vpack.c.bf16 %v237_v7, %v237_v7  ;;  %v240_v12 = vadd.f32 %v701_v10, %v1148_v15  ;;  %v231_v16 = vpop.f32.mrb[3].mxu0 }
 0x13d   :  { %v675_v24 = vpack.c.bf16 %v277_v0, %v277_v0  ;;  %v280_v4 = vadd.f32 %v1148_v15, %v279_v3  ;;  %v663_v17 = vpack.c.bf16 %v229_v9, %v229_v9  ;;  %v232_v19 = vadd.f32 %v1148_v15, %v231_v16 }
 0x13e   :  { %370 = vst.msk [vmem:[#allocation11 + $0x38] sm:$0xf] %vm355_vm9, %v677_v18  ;;  %v678_v25 = vpack.c.bf16 %v288_v2, %v288_v2  ;;  %358 = vst.msk [vmem:[#allocation11 + $0x8] sm:$0xf] %vm355_vm9, %v665_v11  ;;  %v666_v20 = vpack.c.bf16 %v240_v12, %v240_v12 }
 0x13f   :  { %368 = vst.msk [vmem:[#allocation11 + $0x30] sm:$0xf] %vm355_vm9, %v675_v24  ;;  %v676_v5 = vpack.c.bf16 %v280_v4, %v280_v4  ;;  %356 = vst.msk [vmem:[#allocation11] sm:$0xf] %vm355_vm9, %v663_v17  ;;  %v664_v21 = vpack.c.bf16 %v232_v19, %v232_v19 }
 0x140   :  { %371 = vst.msk [vmem:[#allocation11 + $0x3c] sm:$0xf] %vm355_vm9, %v678_v25  ;;  %359 = vst.msk [vmem:[#allocation11 + $0xc] sm:$0xf] %vm355_vm9, %v666_v20 }
 0x141   :  { %369 = vst.msk [vmem:[#allocation11 + $0x34] sm:$0xf] %vm355_vm9, %v676_v5  ;;  %357 = vst.msk [vmem:[#allocation11 + $0x4] sm:$0xf] %vm355_vm9, %v664_v21  ;;  %v704_v23 = vpop.f32.mrb[4].mxu0 }
 0x142   :  { %v253_v26 = vadd.f32 %v704_v23, %v1148_v15  ;;  %v244_v27 = vpop.f32.mrb[5].mxu0 }
 0x143   :  { %v245_v29 = vadd.f32 %v1148_v15, %v244_v27  ;;  %v705_v30 = vpop.f32.mrb[6].mxu0 }
 0x144   :  { %v669_v33 = vpack.c.bf16 %v253_v26, %v253_v26  ;;  %v256_v34 = vadd.f32 %v705_v30, %v1148_v15  ;;  %v247_v35 = vpop.f32.mrb[7].mxu0 }
 0x145   :  { %v667_v36 = vpack.c.bf16 %v245_v29, %v245_v29  ;;  %v248_v37 = vadd.f32 %v1148_v15, %v247_v35 }
 0x146   :  { %362 = vst.msk [vmem:[#allocation11 + $0x18] sm:$0xf] %vm355_vm9, %v669_v33  ;;  %v670_v38 = vpack.c.bf16 %v256_v34, %v256_v34 }
 0x147   :  { %360 = vst.msk [vmem:[#allocation11 + $0x10] sm:$0xf] %vm355_vm9, %v667_v36  ;;  %v668_v39 = vpack.c.bf16 %v248_v37, %v248_v37 }
 0x153   :  { %v570_v28 = vpop.f32.mrb[4].mxu1 }
 0x154   :  { %v571_v31 = vadd.f32 %v661_v22, %v570_v28  ;;  %v724_v32 = vpop.f32.mrb[5].mxu1 }
 0x156   :  { %574 = vst.msk [vmem:[#allocation12] sm:$0xff] %vm169_vm0, %v571_v31  ;;  %576 = vrot.lane.b32.xlu0 %v571_v31, %s968_s20 }
 0x157   :  { %890 = shalt.err (!%p887_p2)
}
 0x158   :  { %s891_s24 = scalar_lea.hbm %s1229_s6, 128 }
 0x159   :  { %p892_p3 = scmp.ne.s32.totalorder %s1229_s6, %s891_s24  ;;  %p895_p4 = scmp.lt.u32.totalorder %s891_s24, %s1229_s6 }
 0x15b   :  { %p897_p5 = pnand %p895_p4, %p892_p3 }
 0x15d   :  { %900 = shalt.err (!%p897_p5)
}
 0x15e   :  { %601 = dma.vmem_to_hbm [thread:$0]  %s599_s19, 128, %s1229_s6, [#allocation13]   ;;  %363 = vst.msk [vmem:[#allocation11 + $0x1c] sm:$0xf] %vm355_vm9, %v670_v38  ;;  %361 = vst.msk [vmem:[#allocation11 + $0x14] sm:$0xf] %vm355_vm9, %v668_v39 }
 0x15f   :  { %v708_v40 = vpop.f32.mrb[8].mxu0  ;;  %s969_s30 = smov [#allocation11]  }
 0x160   :  { %v269_v41 = vadd.f32 %v708_v40, %v1148_v15  ;;  %v260_v42 = vpop.f32.mrb[9].mxu0  ;;  %s585_s8 = sshll.u32 %s969_s30, 4  ;;  %s586_s8 = int_to_ptr.vmem [resolvable:$true] %s585_s8 }
 0x161   :  { %v261_v43 = vadd.f32 %v1148_v15, %v260_v42  ;;  %v709_v44 = vpop.f32.mrb[10].mxu0  ;;  %s901_s6 = scalar_lea.vmem %s586_s8, 1024  ;;  %p906_p7 = scmp.lt.s32.totalorder %s586_s8, %s586_s8 }
 0x162   :  { %v673_v45 = vpack.c.bf16 %v269_v41, %v269_v41  ;;  %v272_v46 = vadd.f32 %v709_v44, %v1148_v15  ;;  %v263_v47 = vpop.f32.mrb[11].mxu0  ;;  %p902_p6 = scmp.ne.s32.totalorder %s586_s8, %s901_s6  ;;  %p907_p8 = scmp.lt.s32.totalorder %s901_s6, %s901_s6 }
 0x163   :  { %v671_v48 = vpack.c.bf16 %v261_v43, %v261_v43  ;;  %v264_v49 = vadd.f32 %v1148_v15, %v263_v47 }
 0x164   :  { %366 = vst.msk [vmem:[#allocation11 + $0x28] sm:$0xf] %vm355_vm9, %v673_v45  ;;  %v674_v50 = vpack.c.bf16 %v272_v46, %v272_v46  ;;  %p908_p9 = por %p907_p8, %p906_p7 }
 0x165   :  { %364 = vst.msk [vmem:[#allocation11 + $0x20] sm:$0xf] %vm355_vm9, %v671_v48  ;;  %v672_v51 = vpack.c.bf16 %v264_v49, %v264_v49 }
 0x166   :  { %367 = vst.msk [vmem:[#allocation11 + $0x2c] sm:$0xf] %vm355_vm9, %v674_v50  ;;  %p909_p10 = pnand %p908_p9, %p902_p6 }
 0x167   :  { %365 = vst.msk [vmem:[#allocation11 + $0x24] sm:$0xf] %vm355_vm9, %v672_v51 }
 0x168   :  { %912 = shalt.err (!%p909_p10)
}
 0x169   :  { %s913_s12 = scalar_lea.hbm %s1228_s5, 1024 }
 0x16a   :  { %p914_p11 = scmp.ne.s32.totalorder %s1228_s5, %s913_s12  ;;  %p917_p12 = scmp.lt.u32.totalorder %s913_s12, %s1228_s5 }
 0x16c   :  { %p919_p13 = pnand %p917_p12, %p914_p11 }
 0x16e   :  { %922 = shalt.err (!%p919_p13)
}
 0x16f   :  { %591 = dma.vmem_to_hbm [thread:$0]  %s586_s8, 1024, %s1228_s5, [#allocation4], %s957_s13, %s957_s13, %s958_s14  }
 0x170   :  { %s970_s9 = smov [#allocation14]  }
 0x171   :  { %s608_s27 = sshll.u32 %s970_s9, 4  ;;  %s609_s27 = int_to_ptr.vmem [resolvable:$true] %s608_s27 }
 0x172   :  { %s923_s4 = scalar_lea.vmem %s609_s27, 128  ;;  %p928_p1 = scmp.lt.s32.totalorder %s609_s27, %s609_s27 }
 0x173   :  { %p924_p0 = scmp.ne.s32.totalorder %s609_s27, %s923_s4  ;;  %p929_p2 = scmp.lt.s32.totalorder %s923_s4, %s923_s4 }
 0x175   :  { %p930_p3 = por %p929_p2, %p928_p1 }
 0x177   :  { %p931_p4 = pnand %p930_p3, %p924_p0 }
 0x1c8   :  { %v577_v13 = vpop.permute.xlu0 %576 }
 0x1c9   :  { %579 = vst.msk [vmem:[#allocation14] sm:$0xff] %vm169_vm0, %v577_v13 }
 0x1ca   :  { %934 = shalt.err (!%p931_p4)
}
 0x1cb   :  { %s935_s21 = scalar_lea.hbm %s1230_s7, 128 }
 0x1cc   :  { %p936_p5 = scmp.ne.s32.totalorder %s1230_s7, %s935_s21  ;;  %p939_p6 = scmp.lt.u32.totalorder %s935_s21, %s1230_s7 }
 0x1ce   :  { %p941_p7 = pnand %p939_p6, %p936_p5 }
 0x1d0   :  { %944 = shalt.err (!%p941_p7)
}
 0x1d1   :  { %611 = dma.vmem_to_hbm [thread:$0]  %s609_s27, 128, %s1230_s7, [#allocation13]  }
 0x1d2   :  { %951 = dma.done.wait [#allocation4], 1024  }
 0x1d3   :  { %952 = vsyncadd [#allocation4], 4294966272 }
 0x1d4   :  { %953 = dma.done.wait [#allocation13], 256  }
 0x1d5   :  { %954 = vsyncadd [#allocation13], 4294967040 }
 0x1d6   :  { %621 = vsyncpa [#allocation3], 1 }
 0x1d7   :  { %622 = vsyncpa [#allocation6], 1 }
 0x1d8   :  { %623 = vsyncpa [#allocation9], 1 }
 0x1d9   :  { %624 = vsyncpa [#allocation4], 1 }
 0x1da   :  { %625 = vsyncpa [#allocation13], 1 }

// kernel: pure_attention_forward.5
= control target key start
LH: loop header
LB: loop body
LE: loop exit
PB: predicated region body
PF: predicated region fallthrough
CT: control target
= control target key end

     0   :  { %9 = vsyncpa [#allocation3], 0  ;;  %s2750_s0 = inlined_call_operand.hbm [shape: bf16[8,7,32], index: 0, kind: input, shape index: {}]   ;;  %s2751_s1 = inlined_call_operand.hbm [shape: bf16[32,128], index: 1, kind: input, shape index: {}]   ;;  %s2752_s2 = inlined_call_operand.hbm [shape: f32[1,128], index: 2, kind: input, shape index: {}]   ;;  %s2753_s3 = inlined_call_operand.hbm [shape: f32[8,7,1], index: 3, kind: input, shape index: {}]   ;;  %s2754_s4 = inlined_call_operand.hbm [shape: f32[8,7,128], index: 4, kind: output, shape index: {}]  }
   0x1   :  { %10 = vsyncpa [#allocation6], 0 }
   0x2   :  { %11 = vsyncpa [#allocation9], 0 }
   0x3   :  { %12 = vsyncpa [#allocation4], 0  ;;  %s2078_s15 = smov [#allocation5]   ;;  %s2079_s17 = smov [#allocation2]  }
   0x4   :  { %s30_s16 = sshll.u32 %s2078_s15, 4  ;;  %s18_s18 = sshll.u32 %s2079_s17, 4  ;;  %s31_s16 = int_to_ptr.vmem [resolvable:$true] %s30_s16  ;;  %s2114_s18 = int_to_ptr.vmem [resolvable:$true] %s18_s18 }
   0x5   :  { %s1960_s21 = scalar_lea.hbm %s2751_s1, 256 }
   0x6   :  { %p1961_p0 = scmp.ne.s32.totalorder %s2751_s1, %s1960_s21  ;;  %p1964_p1 = scmp.lt.u32.totalorder %s1960_s21, %s2751_s1 }
   0x8   :  { %p1966_p2 = pnand %p1964_p1, %p1961_p0 }
   0xa   :  { %1969 = shalt.err (!%p1966_p2)
}
   0xb   :  { %s1970_s26 = scalar_lea.vmem %s31_s16, 256  ;;  %p1975_p4 = scmp.lt.s32.totalorder %s31_s16, %s31_s16 }
   0xc   :  { %p1971_p3 = scmp.ne.s32.totalorder %s31_s16, %s1970_s26  ;;  %p1976_p5 = scmp.lt.s32.totalorder %s1970_s26, %s1970_s26 }
   0xe   :  { %p1977_p6 = por %p1976_p5, %p1975_p4 }
  0x10   :  { %p1978_p7 = pnand %p1977_p6, %p1971_p3 }
  0x12   :  { %1981 = shalt.err (!%p1978_p7)
}
  0x13   :  { %s2080_s27 = smov 64   ;;  %s2081_s28 = smov 4  }
  0x14   :  { %36 = dma.hbm_to_vmem [thread:$0]  %s2751_s1, 256, %s31_s16, [#allocation6], %s2080_s27, %s2080_s27, %s2081_s28  }
  0x15   :  { %s1982_s7 = scalar_lea.hbm %s2750_s0, 512 }
  0x16   :  { %p1983_p8 = scmp.ne.s32.totalorder %s2750_s0, %s1982_s7  ;;  %p1986_p9 = scmp.lt.u32.totalorder %s1982_s7, %s2750_s0 }
  0x18   :  { %p1988_p10 = pnand %p1986_p9, %p1983_p8 }
  0x1a   :  { %1991 = shalt.err (!%p1988_p10)
}
  0x1b   :  { %s1992_s12 = scalar_lea.vmem %s2114_s18, 512  ;;  %p1997_p12 = scmp.lt.s32.totalorder %s2114_s18, %s2114_s18 }
  0x1c   :  { %p1993_p11 = scmp.ne.s32.totalorder %s2114_s18, %s1992_s12  ;;  %p1998_p13 = scmp.lt.s32.totalorder %s1992_s12, %s1992_s12 }
  0x1e   :  { %p1999_p0 = por %p1998_p13, %p1997_p12 }
  0x20   :  { %p2000_p1 = pnand %p1999_p0, %p1993_p11 }
  0x22   :  { %2003 = shalt.err (!%p2000_p1)
}
  0x23   :  { %24 = dma.hbm_to_vmem [thread:$0]  %s2750_s0, 512, %s2114_s18, [#allocation3], %s2080_s27, %s2080_s27, %s2081_s28  }
  0x24   :  { %s2082_s14 = smov [#allocation7]   ;;  %s2083_s16 = smov [#allocation8]  }
  0x25   :  { %s43_s15 = sshll.u32 %s2082_s14, 4  ;;  %s52_s17 = sshll.u32 %s2083_s16, 4  ;;  %s44_s15 = int_to_ptr.vmem [resolvable:$true] %s43_s15  ;;  %s2145_s17 = int_to_ptr.vmem [resolvable:$true] %s52_s17 }
  0x26   :  { %s2004_s21 = scalar_lea.hbm %s2752_s2, 16 }
  0x27   :  { %p2005_p2 = scmp.ne.s32.totalorder %s2752_s2, %s2004_s21  ;;  %p2008_p3 = scmp.lt.u32.totalorder %s2004_s21, %s2752_s2 }
  0x29   :  { %p2010_p4 = pnand %p2008_p3, %p2005_p2 }
  0x2b   :  { %2013 = shalt.err (!%p2010_p4)
}
  0x2c   :  { %s2014_s0 = scalar_lea.vmem %s44_s15, 16  ;;  %s2018_s18 = scalar_lea.vmem %s44_s15, 32 }
  0x2d   :  { %p2015_p5 = scmp.ne.s32.totalorder %s44_s15, %s2014_s0  ;;  %p2019_p6 = scmp.lt.s32.totalorder %s44_s15, %s44_s15 }
  0x2e   :  { %p2020_p7 = scmp.lt.s32.totalorder %s2018_s18, %s2014_s0 }
  0x30   :  { %p2021_p8 = por %p2020_p7, %p2019_p6 }
  0x32   :  { %p2022_p9 = pnand %p2021_p8, %p2015_p5 }
  0x34   :  { %2025 = shalt.err (!%p2022_p9)
}
  0x35   :  { %46 = dma.hbm_to_vmem [thread:$0]  %s2752_s2, 16, %s44_s15, [#allocation6]  }
  0x36   :  { %s2026_s30 = scalar_lea.hbm %s2753_s3, 1024 }
  0x37   :  { %p2027_p10 = scmp.ne.s32.totalorder %s2753_s3, %s2026_s30  ;;  %p2030_p11 = scmp.lt.u32.totalorder %s2026_s30, %s2753_s3 }
  0x39   :  { %p2032_p12 = pnand %p2030_p11, %p2027_p10 }
  0x3b   :  { %2035 = shalt.err (!%p2032_p12)
}
  0x3c   :  { %s2036_s9 = scalar_lea.vmem %s2145_s17, 1024  ;;  %p2041_p0 = scmp.lt.s32.totalorder %s2145_s17, %s2145_s17 }
  0x3d   :  { %p2037_p13 = scmp.ne.s32.totalorder %s2145_s17, %s2036_s9  ;;  %p2042_p1 = scmp.lt.s32.totalorder %s2036_s9, %s2036_s9 }
  0x3f   :  { %p2043_p2 = por %p2042_p1, %p2041_p0 }
  0x41   :  { %p2044_p3 = pnand %p2043_p2, %p2037_p13 }
  0x43   :  { %2047 = shalt.err (!%p2044_p3)
}
  0x44   :  { %s2084_s2 = smov 128   ;;  %s2085_s10 = smov 8  }
  0x45   :  { %58 = dma.hbm_to_vmem [thread:$0]  %s2753_s3, 1024, %s2145_s17, [#allocation9], %s2084_s2, %s2084_s2, %s2085_s10  }
  0x46   :  { %2070 = dma.done.wait [#allocation3], 512  }
  0x47   :  { %2071 = vsyncadd [#allocation3], 4294966784 }
  0x48   :  { %2072 = dma.done.wait [#allocation6], 272  }
  0x49   :  { %2073 = vsyncadd [#allocation6], 4294967024 }
  0x4a   :  { %2074 = dma.done.wait [#allocation9], 1024  }
  0x4b   :  { %2075 = vsyncadd [#allocation9], 4294966272  ;;  %v99_v0 = vlaneseq  ;;  %v2086_v1 = vmov 1966171168   ;;  %v2087_v3 = vmov 0   ;;  %v1958_v6 = vld [vmem:[#allocation5] sm:$0xff]  }
  0x4c   :  { %v97_v2 = vunpack.c.l.s4 %v2086_v1  ;;  %1957 = vset.pattern.permute.xlu1 %v2087_v3  ;;  %1956 = vset.pattern.permute.xlu0 %v2087_v3  ;;  %v1959_v8 = vld [vmem:[#allocation5 + $0x8] sm:$0xff]   ;;  %v1892_v9 = vld.sshfl [vmem:[#allocation2] sm:$0x33 pattern:$0x75316420]  ;;  %vm558_vm0 = vcmask 261120  }
  0x4d   :  { %v2179_v5 = vshrl.u32 %v99_v0, 7  ;;  %1929 = vmatprep.subr.bf16.mxu0 %v1958_v6  ;;  %1941 = vmatprep.subr.bf16.mxu1 %v1958_v6  ;;  %v1043_v10 = vld [vmem:[#allocation8 + $0x10] sm:$0x7f]  ;;  %v95_v12 = vcombine.high %v1892_v9, %v1892_v9  ;;  %v1041_v14 = vld [vmem:[#allocation8] sm:$0x7f]  ;;  %s2088_s3 = smov [#allocation10]  }
  0x4e   :  { %v98_v4 = vunpack.c.0.s8 %v97_v2  ;;  %1930 = vmatpush3.bf16.msra.mxu0 %v1958_v6  ;;  %1943 = vmatpush3.bf16.msra.mxu1 %v1958_v6  ;;  %v1893_v11 = vld.sshfl [vmem:[#allocation2 + $0x4] sm:$0x33 pattern:$0x75316420]  ;;  %v1044_v26 = vld [vmem:[#allocation8 + $0x18] sm:$0x7f] }
  0x4f   :  { %1931 = vmatprep.subr.bf16.mxu0 %v1959_v8  ;;  %1942 = vmatprep.subr.bf16.mxu1 %v1959_v8  ;;  %v1894_v15 = vld.sshfl [vmem:[#allocation2 + $0x8] sm:$0x33 pattern:$0x75316420]  ;;  %v119_v16 = vcombine.high %v1893_v11, %v1893_v11  ;;  %v1042_v31 = vld [vmem:[#allocation8 + $0x8] sm:$0x7f] }
  0x50   :  { %v2182_v7 = vsub.s32 %v98_v4, %v2179_v5  ;;  %v143_v19 = vcombine.high %v1894_v15, %v1894_v15  ;;  %v1896_v21 = vld.sshfl [vmem:[#allocation2 + $0x10] sm:$0x33 pattern:$0x75316420]  ;;  %1059 = vperm.xlu1 %1957, %v1043_v10   ;;  %1051 = vperm.xlu0 %1956, %v1041_v14   ;;  %v1046_v45 = vld [vmem:[#allocation8 + $0x28] sm:$0x7f] }
  0x51   :  { %v191_v25 = vcombine.high %v1896_v21, %v1896_v21  ;;  %v1897_v30 = vld.sshfl [vmem:[#allocation2 + $0x14] sm:$0x33 pattern:$0x75316420]  ;;  %v1048_v63 = vld [vmem:[#allocation8 + $0x38] sm:$0x7f] }
  0x52   :  { %v102_v13 = vrot.slane %v1892_v9, %v2182_v7  ;;  %v126_v17 = vrot.slane %v1893_v11, %v2182_v7  ;;  %v109_v18 = vrot.slane %v95_v12, %v2182_v7  ;;  %v2188_v20 = vrot.slane %v1894_v15, %v2182_v7  ;;  %1932 = vmatpush3.bf16.msra.mxu0 %v1959_v8  ;;  %v1898_v42 = vld.sshfl [vmem:[#allocation2 + $0x18] sm:$0x33 pattern:$0x75316420]  ;;  %v1047_v6 = vld [vmem:[#allocation8 + $0x30] sm:$0x7f] }
  0x53   :  { %v133_v22 = vrot.slane %v119_v16, %v2182_v7  ;;  %1944 = vmatpush3.bf16.msra.mxu1 %v1959_v8  ;;  %v2192_v29 = vrot.slane %v143_v19, %v2182_v7  ;;  %v2197_v39 = vrot.slane %v1896_v21, %v2182_v7  ;;  %v2200_v43 = vrot.slane %v191_v25, %v2182_v7  ;;  %v1045_v50 = vld [vmem:[#allocation8 + $0x20] sm:$0x7f]  ;;  %v1895_v4 = vld.sshfl [vmem:[#allocation2 + $0xc] sm:$0x33 pattern:$0x75316420] }
  0x54   :  { %v134_v23 = vcombine.high %v126_v17, %v126_v17  ;;  %v288_v24 = vunpack.i.h.s16 %v126_v17  ;;  %v110_v27 = vcombine.high %v102_v13, %v102_v13  ;;  %v111_v28 = vcombine.high %v109_v18, %v109_v18  ;;  %1063 = vperm.xlu1 %1957, %v1044_v26   ;;  %1055 = vperm.xlu0 %1956, %v1042_v31   ;;  %s1878_s1 = sshll.u32 %s2088_s3, 4  ;;  %s1879_s1 = int_to_ptr.vmem [resolvable:$true] %s1878_s1 }
  0x55   :  { %v135_v32 = vcombine.high %v133_v22, %v133_v22  ;;  %v290_v33 = vunpack.i.h.s16 %v133_v22  ;;  %v158_v36 = vcombine.high %v2188_v20, %v2188_v20  ;;  %v375_v38 = vcombine.low %v102_v13, %v109_v18  ;;  %s2048_s13 = scalar_lea.vmem %s1879_s1, 1024  ;;  %p2053_p5 = scmp.lt.s32.totalorder %s1879_s1, %s1879_s1 }
  0x56   :  { %v292_v34 = vunpack.i.h.s16 %v134_v23  ;;  %v1902_v35 = vpack.i.b16 %v133_v22, %v288_v24  ;;  %v1901_v37 = vpack.i.b16 %v126_v17, %v111_v28  ;;  %v215_v44 = vcombine.high %v1897_v30, %v1897_v30  ;;  %p2049_p4 = scmp.ne.s32.totalorder %s1879_s1, %s2048_s13  ;;  %p2054_p6 = scmp.lt.s32.totalorder %s2048_s13, %s2048_s13 }
  0x57   :  { %v1903_v40 = vpack.i.b16 %v134_v23, %v290_v33  ;;  %v385_v47 = vrot.slane %v375_v38, %v2182_v7  ;;  %v206_v48 = vcombine.high %v2197_v39, %v2197_v39  ;;  %v222_v49 = vrot.slane %v1897_v30, %v2182_v7  ;;  %v1899_v33 = vld.sshfl [vmem:[#allocation2 + $0x1c] sm:$0x33 pattern:$0x75316420] }
  0x58   :  { %v1904_v41 = vpack.i.b16 %v135_v32, %v292_v34  ;;  %v376_v46 = vcombine.low %v110_v27, %v1901_v37  ;;  %v207_v53 = vcombine.high %v2200_v43, %v2200_v43  ;;  %v229_v54 = vrot.slane %v215_v44, %v2182_v7  ;;  %1071 = vperm.xlu1 %1957, %v1046_v45   ;;  %p2055_p7 = por %p2054_p6, %p2053_p5 }
  0x59   :  { %v377_v51 = vcombine.low %v1902_v35, %v1903_v40  ;;  %v230_v56 = vcombine.high %v222_v49, %v222_v49  ;;  %v239_v57 = vcombine.high %v1898_v42, %v1898_v42  ;;  %v246_v58 = vrot.slane %v1898_v42, %v2182_v7  ;;  %1067 = vperm.xlu0 %1956, %v1045_v50  }
  0x5a   :  { %v378_v52 = vcombine.low %v1904_v41, %v2188_v20  ;;  %v392_v55 = vrot.slane %v376_v46, %v2182_v7  ;;  %v231_v61 = vcombine.high %v229_v54, %v229_v54  ;;  %v316_v62 = vunpack.i.h.s16 %v222_v49  ;;  %p2056_p8 = pnand %p2055_p7, %p2049_p4 }
  0x5b   :  { %v399_v59 = vrot.slane %v377_v51, %v2182_v7  ;;  %v253_v1 = vrot.slane %v239_v57, %v2182_v7  ;;  %v254_v2 = vcombine.high %v246_v58, %v246_v58  ;;  %v318_v3 = vunpack.i.h.s16 %v229_v54 }
  0x5c   :  { %v406_v60 = vrot.slane %v378_v52, %v2182_v7  ;;  %v407_v0 = vcombine.low %v385_v47, %v392_v55  ;;  %v320_v9 = vunpack.i.h.s16 %v230_v56  ;;  %v1909_v10 = vpack.i.b16 %v222_v49, %v207_v53  ;;  %1079 = vperm.xlu1 %1957, %v1048_v63  }
  0x5d   :  { %v1910_v11 = vpack.i.b16 %v229_v54, %v316_v62  ;;  %v159_v12 = vcombine.high %v2192_v29, %v2192_v29  ;;  %v1911_v14 = vpack.i.b16 %v230_v56, %v318_v3  ;;  %v476_v15 = vcombine.low %v253_v1, %v254_v2  ;;  %1075 = vperm.xlu0 %1956, %v1047_v6  }
  0x5e   :  { %v408_v8 = vcombine.low %v399_v59, %v406_v60  ;;  %v415_v13 = vrot.slane %v407_v0, %v2182_v7  ;;  %v1912_v17 = vpack.i.b16 %v231_v61, %v320_v9  ;;  %v473_v18 = vcombine.low %v206_v48, %v1909_v10 }
  0x5f   :  { %v167_v19 = vcombine.high %v1895_v4, %v1895_v4  ;;  %v474_v20 = vcombine.low %v1910_v11, %v1911_v14  ;;  %v504_v21 = vrot.slane %v476_v15, %v2182_v7  ;;  %v174_v22 = vrot.slane %v1895_v4, %v2182_v7 }
  0x60   :  { %v422_v16 = vrot.slane %v408_v8, %v2182_v7  ;;  %v424_v23 = vcombine.low %v2192_v29, %v158_v36  ;;  %v475_v25 = vcombine.low %v1912_v17, %v246_v58  ;;  %v483_v26 = vrot.slane %v473_v18, %v2182_v7 }
  0x61   :  { %v181_v27 = vrot.slane %v167_v19, %v2182_v7  ;;  %v490_v28 = vrot.slane %v474_v20, %v2182_v7  ;;  %v182_v30 = vcombine.high %v174_v22, %v174_v22  ;;  %v302_v31 = vunpack.i.h.s16 %v174_v22 }
  0x62   :  { %v423_v24 = vcombine.low %v415_v13, %v422_v16  ;;  %v1905_v32 = vpack.i.b16 %v174_v22, %v159_v12  ;;  %v497_v34 = vrot.slane %v475_v25, %v2182_v7  ;;  %v427_v29 = vcombine.low %v2197_v39, %v2200_v43 }
  0x63   :  { %v183_v35 = vcombine.high %v181_v27, %v181_v27  ;;  %v304_v37 = vunpack.i.h.s16 %v181_v27  ;;  %v255_v36 = vcombine.high %v253_v1, %v253_v1  ;;  %v505_v38 = vcombine.low %v483_v26, %v490_v28 }
  0x64   :  { %1933 = vmatprep.mubr.msk.bf16.mxu0 %vm558_vm0, %v423_v24  ;;  %v306_v40 = vunpack.i.h.s16 %v182_v30  ;;  %v1906_v41 = vpack.i.b16 %v181_v27, %v302_v31  ;;  %v506_v42 = vcombine.low %v497_v34, %v504_v21  ;;  %v434_v45 = vrot.slane %v424_v23, %v2182_v7 }
  0x65   :  { %v1907_v44 = vpack.i.b16 %v182_v30, %v304_v37  ;;  %v263_v46 = vcombine.high %v1899_v33, %v1899_v33  ;;  %v513_v47 = vrot.slane %v505_v38, %v2182_v7  ;;  %v270_v50 = vrot.slane %v1899_v33, %v2182_v7 }
  0x66   :  { %v1908_v48 = vpack.i.b16 %v183_v35, %v306_v40  ;;  %v425_v49 = vcombine.low %v1905_v32, %v1906_v41  ;;  %v520_v51 = vrot.slane %v506_v42, %v2182_v7  ;;  %v455_v52 = vrot.slane %v427_v29, %v2182_v7 }
  0x67   :  { %v277_v39 = vrot.slane %v263_v46, %v2182_v7  ;;  %v278_v54 = vcombine.high %v270_v50, %v270_v50  ;;  %v330_v55 = vunpack.i.h.s16 %v270_v50  ;;  %v1913_v59 = vpack.i.b16 %v270_v50, %v255_v36 }
  0x68   :  { %v426_v43 = vcombine.low %v1907_v44, %v1908_v48  ;;  %v441_v53 = vrot.slane %v425_v49, %v2182_v7  ;;  %v521_v56 = vcombine.low %v513_v47, %v520_v51  ;;  %v2254_v18 = vsub.s32 2, %v2179_v5 }
  0x69   :  { %v279_v57 = vcombine.high %v277_v39, %v277_v39  ;;  %v332_v58 = vunpack.i.h.s16 %v277_v39  ;;  %v334_v62 = vunpack.i.h.s16 %v278_v54  ;;  %v1914_v63 = vpack.i.b16 %v277_v39, %v330_v55 }
  0x6a   :  { %v448_v60 = vrot.slane %v426_v43, %v2182_v7  ;;  %v456_v61 = vcombine.low %v434_v45, %v441_v53  ;;  %1937 = vmatprep.mubr.msk.bf16.mxu1 %vm558_vm0, %v521_v56  ;;  %v2259_v20 = vsub.s32 3, %v2179_v5  ;;  %v2262_v21 = vsub.s32 4, %v2179_v5  ;;  %v2332_v53 = vld [vmem:[#allocation7] ss:$0 sm:$0xff] }
  0x6b   :  { %v1915_v0 = vpack.i.b16 %v278_v54, %v332_v58  ;;  %v1916_v3 = vpack.i.b16 %v279_v57, %v334_v62  ;;  %v522_v4 = vcombine.low %v1913_v59, %v1914_v63  ;;  %v2265_v22 = vsub.s32 5, %v2179_v5 }
  0x6c   :  { %v457_v1 = vcombine.low %v448_v60, %v455_v52  ;;  %v464_v2 = vrot.slane %v456_v61, %v2182_v7  ;;  %v2268_v23 = vsub.s32 6, %v2179_v5  ;;  %v2273_v25 = vsub.s32 0, %v2179_v5 }
  0x6d   :  { %v523_v8 = vcombine.low %v1915_v0, %v1916_v3  ;;  %v530_v9 = vrot.slane %v522_v4, %v2182_v7  ;;  %v2276_v26 = vsub.s32 1, %v2179_v5 }
  0x6e   :  { %v471_v6 = vrot.slane %v457_v1, %v2182_v7 }
  0x6f   :  { %v537_v11 = vrot.slane %v523_v8, %v2182_v7 }
  0x70   :  { %v472_v10 = vcombine.low %v464_v2, %v471_v6 }
  0x71   :  { %v538_v12 = vcombine.low %v530_v9, %v537_v11 }
  0x72   :  { %1934 = vmatmul.mubr.msk.bf16.vlgmr.msra.gmra.mrb[0].mxu0 %vm558_vm0, %v472_v10 }
  0x73   :  { %v545_v13 = vrot.slane %v538_v12, %v2182_v7 }
  0x75   :  { %1938 = vmatmul.mubr.msk.bf16.vlgmr.msra.gmra.mrb[0].mxu1 %vm558_vm0, %v545_v13 }
  0xcf   :  { %v2245_v14 = vpop.permute.xlu1 %1059  ;;  %v2247_v15 = vpop.permute.xlu0 %1051 }
  0xd0   :  { %v1148_v27 = vrot.slane %v2245_v14, %v2254_v18  ;;  %v1152_v28 = vrot.slane %v2245_v14, %v2259_v20  ;;  %v1156_v30 = vrot.slane %v2245_v14, %v2262_v21  ;;  %v1160_v31 = vrot.slane %v2245_v14, %v2265_v22 }
  0xd1   :  { %v1164_v32 = vrot.slane %v2245_v14, %v2268_v23  ;;  %v1084_v33 = vrot.slane %v2247_v15, %v2273_v25  ;;  %v1088_v5 = vrot.slane %v2247_v15, %v2276_v26  ;;  %v1092_v34 = vrot.slane %v2247_v15, %v2254_v18 }
  0xd2   :  { %v1096_v35 = vrot.slane %v2247_v15, %v2259_v20  ;;  %v1100_v36 = vrot.slane %v2247_v15, %v2262_v21  ;;  %v1104_v38 = vrot.slane %v2247_v15, %v2265_v22  ;;  %v1108_v40 = vrot.slane %v2247_v15, %v2268_v23 }
  0xd3   :  { %v2249_v16 = vpop.permute.xlu1 %1063  ;;  %v2251_v17 = vpop.permute.xlu0 %1055 }
  0xd4   :  { %v1168_v37 = vrot.slane %v2249_v16, %v2273_v25  ;;  %v1172_v41 = vrot.slane %v2249_v16, %v2276_v26 }
  0xd7   :  { %v2256_v19 = vpop.permute.xlu1 %1071 }
  0xd8   :  { %v2270_v24 = vpop.permute.xlu0 %1067 }
  0xd9   :  { %v1216_v45 = vrot.slane %v2270_v24, %v2265_v22 }
  0xdb   :  { %v2298_v29 = vpop.permute.xlu1 %1079 }
  0xdc   :  { %v2308_v42 = vpop.permute.xlu0 %1075  ;;  %v1280_v51 = vrot.slane %v2298_v29, %v2273_v25  ;;  %v1284_v52 = vrot.slane %v2298_v29, %v2276_v26  ;;  %v1288_v39 = vrot.slane %v2298_v29, %v2254_v18  ;;  %v1292_v43 = vrot.slane %v2298_v29, %v2259_v20 }
  0xdd   :  { %v1296_v54 = vrot.slane %v2298_v29, %v2262_v21  ;;  %v1300_v55 = vrot.slane %v2298_v29, %v2265_v22  ;;  %v1304_v56 = vrot.slane %v2298_v29, %v2268_v23 }
 0x145   :  { %v1935_v62 = vpop.f32.mrb[0].mxu0 }
 0x146   :  { %v614_v3 = vadd.f32 %v1935_v62, %v2332_v53  ;;  %v605_v4 = vpop.f32.mrb[1].mxu0 }
 0x147   :  { %v606_v10 = vadd.f32 %v2332_v53, %v605_v4  ;;  %v1936_v11 = vpop.f32.mrb[2].mxu0 }
 0x148   :  { %v740_v60 = vcombine.high %v614_v3, %v614_v3  ;;  %v747_v59 = vrot.slane %v614_v3, %v2182_v7  ;;  %v608_v61 = vpop.f32.mrb[3].mxu0  ;;  %v1939_v58 = vpop.f32.mrb[0].mxu1  ;;  %v2410_v50 = vadd.f32 %v1936_v11, %v2332_v53 }
 0x149   :  { %v642_v6 = vcombine.high %v606_v10, %v606_v10  ;;  %v630_v8 = vadd.f32 %v1939_v58, %v2332_v53  ;;  %v621_v57 = vpop.f32.mrb[1].mxu1 }
 0x14a   :  { %v754_v3 = vrot.slane %v740_v60, %v2182_v7  ;;  %v755_v9 = vcombine.high %v747_v59, %v747_v59  ;;  %v763_v2 = vrot.slane %v747_v59, %v2182_v7  ;;  %v1940_v1 = vpop.f32.mrb[2].mxu1  ;;  %v649_v60 = vrot.slane %v606_v10, %v2182_v7 }
 0x14b   :  { %v2395_v0 = vpop.f32.mrb[3].mxu1  ;;  %v936_v4 = vcombine.high %v630_v8, %v630_v8  ;;  %v943_v13 = vrot.slane %v630_v8, %v2182_v7  ;;  %v656_v62 = vrot.slane %v642_v6, %v2182_v7  ;;  %v622_v11 = vadd.f32 %v2332_v53, %v621_v57 }
 0x14c   :  { %v777_v12 = vrot.slane %v755_v9, %v2182_v7  ;;  %v756_v63 = vcombine.high %v754_v3, %v754_v3  ;;  %v2407_v10 = vrot.slane %v754_v3, %v2182_v7  ;;  %v785_v58 = vcombine.high %v763_v2, %v763_v2 }
 0x14d   :  { %v950_v1 = vrot.slane %v936_v4, %v2182_v7  ;;  %v951_v49 = vcombine.high %v943_v13, %v943_v13  ;;  %v2416_v9 = vadd.f32 %v2332_v53, %v608_v61  ;;  %v2421_v6 = vmul.f32 %v1148_v27, %v763_v2 }
 0x14e   :  { %v657_v8 = vcombine.high %v649_v60, %v649_v60  ;;  %v665_v3 = vrot.slane %v649_v60, %v2182_v7  ;;  %v787_v47 = vcombine.high %v777_v12, %v777_v12  ;;  %v2426_v59 = vrot.slane %v943_v13, %v2182_v7 }
 0x14f   :  { %v952_v48 = vcombine.high %v950_v1, %v950_v1  ;;  %v658_v4 = vcombine.high %v656_v62, %v656_v62  ;;  %v2429_v46 = vrot.slane %v756_v63, %v2182_v7  ;;  %v786_v61 = vcombine.high %v2407_v10, %v2407_v10 }
 0x150   :  { %v966_v27 = vrot.slane %v950_v1, %v2182_v7  ;;  %v973_v2 = vrot.slane %v951_v49, %v2182_v7  ;;  %v2438_v57 = vmul.f32 %v1152_v28, %v777_v12  ;;  %v2443_v13 = vmul.f32 %v1156_v30, %v785_v58 }
 0x151   :  { %v980_v63 = vrot.slane %v952_v48, %v2182_v7  ;;  %v981_v60 = vcombine.high %v2426_v59, %v2426_v59  ;;  %v2452_v49 = vmul.f32 %v1164_v32, %v2407_v10  ;;  %v1380_v30 = vmul.f32 %v1160_v31, %v787_v47 }
 0x152   :  { %v982_v1 = vcombine.high %v966_v27, %v966_v27  ;;  %v983_v44 = vcombine.high %v973_v2, %v973_v2  ;;  %v1410_v28 = vmul.f32 %v1280_v51, %v973_v2  ;;  %v788_v58 = vcombine.high %v2429_v46, %v2429_v46 }
 0x153   :  { %v984_v48 = vcombine.high %v980_v63, %v980_v63  ;;  %v1411_v12 = vmul.f32 %v1284_v52, %v981_v60  ;;  %v1414_v32 = vmul.f32 %v1296_v54, %v980_v63  ;;  %v1413_v31 = vmul.f32 %v1292_v43, %v966_v27 }
 0x154   :  { %v1412_v51 = vmul.f32 %v1288_v39, %v983_v44  ;;  %v1415_v47 = vmul.f32 %v1300_v55, %v982_v1  ;;  %v672_v10 = vrot.slane %v656_v62, %v2182_v7  ;;  %v679_v2 = vrot.slane %v657_v8, %v2182_v7 }
 0x155   :  { %v1416_v52 = vmul.f32 %v1304_v56, %v984_v48  ;;  %v1809_v54 = vcombine.low %v1410_v28, %v1411_v12  ;;  %v2486_v44 = vmul.f32 %v1168_v37, %v2429_v46  ;;  %v2489_v27 = vrot.slane %v658_v4, %v2182_v7 }
 0x156   :  { %v1810_v39 = vcombine.low %v1412_v51, %v1413_v31  ;;  %v1811_v43 = vcombine.low %v1414_v32, %v1415_v47  ;;  %v1571_v55 = vcombine.low %v2443_v13, %v1380_v30  ;;  %v687_v56 = vcombine.high %v665_v3, %v665_v3 }
 0x157   :  { %v1839_v29 = vrot.slane %v1416_v52, %v2182_v7  ;;  %v688_v63 = vcombine.high %v672_v10, %v672_v10  ;;  %v1818_v62 = vrot.slane %v1809_v54, %v2182_v7  ;;  %v689_v1 = vcombine.high %v679_v2, %v679_v2 }
 0x158   :  { %v1825_v8 = vrot.slane %v1810_v39, %v2182_v7  ;;  %v1832_v60 = vrot.slane %v1811_v43, %v2182_v7  ;;  %v1361_v37 = vmul.f32 %v1084_v33, %v665_v3  ;;  %v1362_v4 = vmul.f32 %v1088_v5, %v679_v2 }
 0x159   :  { %v1363_v13 = vmul.f32 %v1092_v34, %v687_v56  ;;  %v1365_v28 = vmul.f32 %v1100_v36, %v672_v10  ;;  %v1364_v12 = vmul.f32 %v1096_v35, %v689_v1  ;;  %v1366_v33 = vmul.f32 %v1104_v38, %v2489_v27 }
 0x15a   :  { %v1840_v30 = vcombine.low %v1818_v62, %v1825_v8  ;;  %v1841_v48 = vcombine.low %v1832_v60, %v1839_v29  ;;  %v1367_v5 = vmul.f32 %v1108_v40, %v688_v63  ;;  %v1473_v34 = vcombine.low %v1361_v37, %v1362_v4 }
 0x15b   :  { %v838_v3 = vcombine.high %v622_v11, %v622_v11  ;;  %v845_v32 = vrot.slane %v622_v11, %v2182_v7  ;;  %v1474_v31 = vcombine.low %v1363_v13, %v1364_v12  ;;  %v1475_v47 = vcombine.low %v1365_v28, %v1366_v33 }
 0x15c   :  { %v1848_v36 = vrot.slane %v1840_v30, %v2182_v7  ;;  %v1855_v51 = vrot.slane %v1841_v48, %v2182_v7  ;;  %v1482_v35 = vrot.slane %v1473_v34, %v2182_v7  ;;  %v1503_v52 = vrot.slane %v1367_v5, %v2182_v7 }
 0x15d   :  { %v852_v38 = vrot.slane %v838_v3, %v2182_v7  ;;  %v853_v54 = vcombine.high %v845_v32, %v845_v32  ;;  %v1489_v15 = vrot.slane %v1474_v31, %v2182_v7  ;;  %v1496_v40 = vrot.slane %v1475_v47, %v2182_v7 }
 0x15e   :  { %v1856_v10 = vcombine.low %v1848_v36, %v1855_v51  ;;  %v861_v11 = vrot.slane %v845_v32, %v2182_v7  ;;  %v1383_v2 = vmul.f32 %v1172_v41, %v786_v61  ;;  %v1570_v39 = vcombine.low %v2421_v6, %v2438_v57 }
 0x15f   :  { %v854_v43 = vcombine.high %v852_v38, %v852_v38  ;;  %v875_v29 = vrot.slane %v853_v54, %v2182_v7  ;;  %v1504_v56 = vcombine.low %v1482_v35, %v1489_v15  ;;  %v1505_v63 = vcombine.low %v1496_v40, %v1503_v52 }
 0x160   :  { %1872 = vst [vmem:[#allocation10 + $0x38] sm:$0x7f] %v1856_v10  ;;  %v868_v62 = vrot.slane %v852_v38, %v2182_v7  ;;  %v883_v8 = vcombine.high %v861_v11, %v861_v11  ;;  %v1592_v60 = vrot.slane %v1571_v55, %v2182_v7  ;;  %v1599_v1 = vrot.slane %v2452_v49, %v2182_v7 }
 0x161   :  { %v1394_v41 = vmul.f32 %v1216_v45, %v875_v29  ;;  %v789_v6 = vcombine.high %v2410_v50, %v2410_v50  ;;  %v1512_v61 = vrot.slane %v1504_v56, %v2182_v7  ;;  %v1519_v57 = vrot.slane %v1505_v63, %v2182_v7 }
 0x162   :  { %v885_v37 = vcombine.high %v875_v29, %v875_v29  ;;  %v2755_v4 = vrot.slane %v2270_v24, %v2262_v21  ;;  %v2548_v55 = vrot.slane %v1570_v39, %v2182_v7  ;;  %v1617_v49 = vcombine.low %v2486_v44, %v1383_v2 }
 0x163   :  { %v2552_v28 = vrot.slane %v854_v43, %v2182_v7  ;;  %v2756_v45 = vrot.slane %v2270_v24, %v2268_v23  ;;  %v1520_v48 = vcombine.low %v1512_v61, %v1519_v57  ;;  %v884_v12 = vcombine.high %v868_v62, %v868_v62 }
 0x164   :  { %v1393_v13 = vmul.f32 %v2755_v4, %v861_v11  ;;  %v796_v5 = vrot.slane %v2410_v50, %v2182_v7  ;;  %v2559_v34 = vcombine.low %v1592_v60, %v1599_v1  ;;  %v690_v3 = vcombine.high %v2489_v27, %v2489_v27 }
 0x165   :  { %v1395_v30 = vmul.f32 %v2756_v45, %v883_v8  ;;  %v2757_v44 = vrot.slane %v2256_v19, %v2276_v26  ;;  %v803_v36 = vrot.slane %v789_v6, %v2182_v7  ;;  %1865 = vst [vmem:[#allocation10] sm:$0x7f] %v1520_v48  ;;  %v2758_v51 = vrot.slane %v2256_v19, %v2273_v25 }
 0x166   :  { %v1667_v33 = vcombine.low %v1393_v13, %v1394_v41  ;;  %v804_v47 = vcombine.high %v796_v5, %v796_v5  ;;  %v812_v35 = vrot.slane %v796_v5, %v2182_v7  ;;  %v2759_v27 = vrot.slane %v2256_v19, %v2254_v18 }
 0x167   :  { %v2566_v32 = vmul.f32 %v2757_v44, %v868_v62  ;;  %v2572_v31 = vmul.f32 %v2758_v51, %v885_v37  ;;  %v1695_v38 = vrot.slane %v1395_v30, %v2182_v7  ;;  %v805_v54 = vcombine.high %v803_v36, %v803_v36 }
 0x168   :  { %v1688_v50 = vrot.slane %v1667_v33, %v2182_v7  ;;  %v2580_v52 = vmul.f32 %v2759_v27, %v2552_v28  ;;  %v819_v10 = vrot.slane %v803_v36, %v2182_v7  ;;  %v2760_v15 = vrot.slane %v2256_v19, %v2259_v20 }
 0x169   :  { %v826_v11 = vrot.slane %v804_v47, %v2182_v7  ;;  %v834_v2 = vcombine.high %v812_v35, %v812_v35  ;;  %v2761_v39 = vrot.slane %v2249_v16, %v2254_v18  ;;  %v833_v56 = vrot.slane %v805_v54, %v2182_v7 }
 0x16a   :  { %v2587_v40 = vmul.f32 %v2760_v15, %v884_v12  ;;  %v1697_v29 = vcombine.low %v1688_v50, %v1695_v38  ;;  %v835_v63 = vcombine.high %v819_v10, %v819_v10  ;;  %v1626_v62 = vrot.slane %v1617_v49, %v2182_v7 }
 0x16b   :  { %v1384_v43 = vmul.f32 %v2761_v39, %v788_v58  ;;  %v836_v8 = vcombine.high %v826_v11, %v826_v11  ;;  %v2762_v60 = vrot.slane %v2249_v16, %v2259_v20  ;;  %v2763_v41 = vrot.slane %v2249_v16, %v2262_v21 }
 0x16c   :  { %v2764_v46 = vrot.slane %v2249_v16, %v2265_v22  ;;  %v837_v58 = vcombine.high %v833_v56, %v833_v56  ;;  %v2765_v57 = vrot.slane %v2270_v24, %v2273_v25  ;;  %v2766_v4 = vrot.slane %v2270_v24, %v2276_v26 }
 0x16d   :  { %v1385_v1 = vmul.f32 %v2762_v60, %v812_v35  ;;  %v1386_v6 = vmul.f32 %v2763_v41, %v826_v11  ;;  %v2767_v49 = vrot.slane %v2270_v24, %v2254_v18  ;;  %v2768_v30 = vrot.slane %v2249_v16, %v2268_v23 }
 0x16e   :  { %v1387_v61 = vmul.f32 %v2764_v46, %v834_v2  ;;  %v1389_v37 = vmul.f32 %v2765_v57, %v819_v10  ;;  %v1390_v13 = vmul.f32 %v2766_v4, %v833_v56  ;;  %v691_v5 = vcombine.high %v2416_v9, %v2416_v9 }
 0x16f   :  { %v1391_v45 = vmul.f32 %v2767_v49, %v835_v63  ;;  %v1388_v48 = vmul.f32 %v2768_v30, %v836_v8  ;;  %v1618_v12 = vcombine.low %v1384_v43, %v1385_v1  ;;  %v2769_v44 = vrot.slane %v2270_v24, %v2259_v20 }
 0x170   :  { %v1619_v33 = vcombine.low %v1386_v6, %v1387_v61  ;;  %v1665_v51 = vcombine.low %v1389_v37, %v1390_v13  ;;  %v698_v50 = vrot.slane %v2416_v9, %v2182_v7  ;;  %v2770_v47 = vrot.slane %v2251_v17, %v2273_v25 }
 0x171   :  { %v1392_v36 = vmul.f32 %v2769_v44, %v837_v58  ;;  %v1633_v16 = vrot.slane %v1618_v12, %v2182_v7  ;;  %v1647_v38 = vrot.slane %v1388_v48, %v2182_v7  ;;  %v705_v54 = vrot.slane %v691_v5, %v2182_v7 }
 0x172   :  { %v1368_v35 = vmul.f32 %v2770_v47, %v690_v3  ;;  %v1640_v27 = vrot.slane %v1619_v33, %v2182_v7  ;;  %v1674_v24 = vrot.slane %v1665_v51, %v2182_v7  ;;  %v706_v15 = vcombine.high %v698_v50, %v698_v50 }
 0x173   :  { %v1666_v10 = vcombine.low %v1391_v45, %v1392_v36  ;;  %v714_v11 = vrot.slane %v698_v50, %v2182_v7  ;;  %v1648_v2 = vcombine.low %v1626_v62, %v1633_v16  ;;  %v707_v39 = vcombine.high %v705_v54, %v705_v54 }
 0x174   :  { %v1649_v9 = vcombine.low %v1640_v27, %v1647_v38  ;;  %v721_v43 = vrot.slane %v705_v54, %v2182_v7  ;;  %v728_v56 = vrot.slane %v706_v15, %v2182_v7  ;;  %v2771_v8 = vrot.slane %v2251_v17, %v2276_v26 }
 0x175   :  { %v1681_v3 = vrot.slane %v1666_v10, %v2182_v7  ;;  %v736_v63 = vcombine.high %v714_v11, %v714_v11  ;;  %v1656_v1 = vrot.slane %v1648_v2, %v2182_v7  ;;  %v735_v6 = vrot.slane %v707_v39, %v2182_v7 }
 0x176   :  { %v1369_v60 = vmul.f32 %v2771_v8, %v714_v11  ;;  %v1663_v41 = vrot.slane %v1649_v9, %v2182_v7  ;;  %v737_v62 = vcombine.high %v721_v43, %v721_v43  ;;  %v738_v61 = vcombine.high %v728_v56, %v728_v56 }
 0x177   :  { %v1696_v46 = vcombine.low %v1674_v24, %v1681_v3  ;;  %v2772_v58 = vrot.slane %v2251_v17, %v2254_v18  ;;  %v2773_v37 = vrot.slane %v2251_v17, %v2259_v20  ;;  %v1711_v13 = vrot.slane %v1697_v29, %v2182_v7 }
 0x178   :  { %v1664_v49 = vcombine.low %v1656_v1, %v1663_v41  ;;  %v739_v45 = vcombine.high %v735_v6, %v735_v6  ;;  %v2774_v30 = vrot.slane %v2251_v17, %v2265_v22  ;;  %v2775_v33 = vrot.slane %v2251_v17, %v2262_v21 }
 0x179   :  { %v1370_v57 = vmul.f32 %v2772_v58, %v728_v56  ;;  %v1371_v4 = vmul.f32 %v2773_v37, %v736_v63  ;;  %v1704_v12 = vrot.slane %v1696_v46, %v2182_v7  ;;  %v2776_v44 = vrot.slane %v2251_v17, %v2268_v23 }
 0x17a   :  { %v1373_v48 = vmul.f32 %v2774_v30, %v721_v43  ;;  %v1372_v5 = vmul.f32 %v2775_v33, %v738_v61  ;;  %v1521_v51 = vcombine.low %v1368_v35, %v1369_v60  ;;  %1868 = vst [vmem:[#allocation10 + $0x18] sm:$0x7f] %v1664_v49  ;;  %v2777_v29 = vrot.slane %v2245_v14, %v2273_v25 }
 0x17b   :  { %v1374_v36 = vmul.f32 %v2776_v44, %v735_v6  ;;  %v2778_v47 = vrot.slane %v2245_v14, %v2276_v26  ;;  %v1522_v27 = vcombine.low %v1370_v57, %v1371_v4  ;;  %v625_v38 = vadd.f32 %v2332_v53, %v2395_v0 }
 0x17c   :  { %v1375_v50 = vmul.f32 %v2777_v29, %v737_v62  ;;  %v1713_v54 = vcombine.low %v2572_v31, %v2566_v32  ;;  %v1712_v10 = vcombine.low %v1704_v12, %v1711_v13  ;;  %v1523_v17 = vcombine.low %v1372_v5, %v1373_v48 }
 0x17d   :  { %v1376_v16 = vmul.f32 %v2778_v47, %v739_v45  ;;  %v1530_v35 = vrot.slane %v1521_v51, %v2182_v7  ;;  %v1537_v24 = vrot.slane %v1522_v27, %v2182_v7  ;;  %v887_v11 = vcombine.high %v625_v38, %v625_v38 }
 0x17e   :  { %v894_v2 = vrot.slane %v625_v38, %v2182_v7  ;;  %v886_v14 = vcombine.high %v2552_v28, %v2552_v28  ;;  %v1714_v9 = vcombine.low %v2580_v52, %v2587_v40  ;;  %1869 = vst [vmem:[#allocation10 + $0x20] sm:$0x7f] %v1712_v10  ;;  %v1544_v53 = vrot.slane %v1523_v17, %v2182_v7 }
 0x17f   :  { %v1569_v15 = vcombine.low %v1375_v50, %v1376_v16  ;;  %v1551_v0 = vrot.slane %v1374_v36, %v2182_v7  ;;  %v1552_v32 = vcombine.low %v1530_v35, %v1537_v24  ;;  %v901_v39 = vrot.slane %v887_v11, %v2182_v7 }
 0x180   :  { %v902_v43 = vcombine.high %v894_v2, %v894_v2  ;;  %v1615_v3 = vrot.slane %v2559_v34, %v2182_v7  ;;  %v1722_v56 = vrot.slane %v1713_v54, %v2182_v7  ;;  %v910_v63 = vrot.slane %v894_v2, %v2182_v7 }
 0x181   :  { %v1578_v31 = vrot.slane %v1569_v15, %v2182_v7  ;;  %v1553_v28 = vcombine.low %v1544_v53, %v1551_v0  ;;  %v1560_v52 = vrot.slane %v1552_v32, %v2182_v7  ;;  %v903_v8 = vcombine.high %v901_v39, %v901_v39 }
 0x182   :  { %v917_v60 = vrot.slane %v901_v39, %v2182_v7  ;;  %v924_v41 = vrot.slane %v902_v43, %v2182_v7  ;;  %v932_v6 = vcombine.high %v910_v63, %v910_v63  ;;  %v2779_v34 = vrot.slane %v2256_v19, %v2262_v21 }
 0x183   :  { %v1600_v40 = vcombine.low %v1578_v31, %v2548_v55  ;;  %v1567_v1 = vrot.slane %v1553_v28, %v2182_v7  ;;  %v1729_v46 = vrot.slane %v1714_v9, %v2182_v7  ;;  %v931_v58 = vrot.slane %v903_v8, %v2182_v7 }
 0x184   :  { %v1400_v62 = vmul.f32 %v2779_v34, %v886_v14  ;;  %v933_v57 = vcombine.high %v917_v60, %v917_v60  ;;  %v934_v37 = vcombine.high %v924_v41, %v924_v41  ;;  %v2780_v4 = vrot.slane %v2256_v19, %v2265_v22 }
 0x185   :  { %v1608_v61 = vrot.slane %v1600_v40, %v2182_v7  ;;  %v1568_v55 = vcombine.low %v1560_v52, %v1567_v1  ;;  %v2781_v49 = vrot.slane %v2256_v19, %v2268_v23  ;;  %v935_v48 = vcombine.high %v931_v58, %v931_v58 }
 0x186   :  { %v1401_v13 = vmul.f32 %v2780_v4, %v910_v63  ;;  %v2782_v12 = vrot.slane %v2308_v42, %v2254_v18  ;;  %v2783_v5 = vrot.slane %v2308_v42, %v2259_v20  ;;  %v2784_v36 = vrot.slane %v2308_v42, %v2273_v25 }
 0x187   :  { %v1402_v45 = vmul.f32 %v2781_v49, %v924_v41  ;;  %v1616_v30 = vcombine.low %v1608_v61, %v1615_v3  ;;  %1866 = vst [vmem:[#allocation10 + $0x8] sm:$0x7f] %v1568_v55  ;;  %v2785_v29 = vrot.slane %v2308_v42, %v2276_v26  ;;  %v2786_v47 = vrot.slane %v2308_v42, %v2268_v23 }
 0x188   :  { %v1405_v33 = vmul.f32 %v2782_v12, %v917_v60  ;;  %v1406_v44 = vmul.f32 %v2783_v5, %v931_v58  ;;  %v1403_v51 = vmul.f32 %v2784_v36, %v932_v6  ;;  %v1715_v50 = vcombine.low %v1400_v62, %v1401_v13 }
 0x189   :  { %v1404_v19 = vmul.f32 %v2785_v29, %v934_v37  ;;  %v1409_v18 = vmul.f32 %v2786_v47, %v2426_v59  ;;  %1867 = vst [vmem:[#allocation10 + $0x10] sm:$0x7f] %v1616_v30  ;;  %v2787_v20 = vrot.slane %v2308_v42, %v2262_v21  ;;  %v2788_v27 = vrot.slane %v2308_v42, %v2265_v22 }
 0x18a   :  { %v1762_v38 = vcombine.low %v1405_v33, %v1406_v44  ;;  %v1744_v54 = vcombine.low %v1722_v56, %v1729_v46  ;;  %v1736_v26 = vrot.slane %v1715_v50, %v2182_v7  ;;  %v1743_v10 = vrot.slane %v1402_v45, %v2182_v7 }
 0x18b   :  { %v1407_v16 = vmul.f32 %v2787_v20, %v933_v57  ;;  %v1408_v25 = vmul.f32 %v2788_v27, %v935_v48  ;;  %v1761_v17 = vcombine.low %v1403_v51, %v1404_v19  ;;  %v1791_v21 = vrot.slane %v1409_v18, %v2182_v7 }
 0x18c   :  { %v1777_v23 = vrot.slane %v1762_v38, %v2182_v7  ;;  %v1745_v59 = vcombine.low %v1736_v26, %v1743_v10  ;;  %v1752_v22 = vrot.slane %v1744_v54, %v2182_v7 }
 0x18d   :  { %v1763_v35 = vcombine.low %v1407_v16, %v1408_v25  ;;  %v1770_v24 = vrot.slane %v1761_v17, %v2182_v7 }
 0x18e   :  { %v1759_v42 = vrot.slane %v1745_v59, %v2182_v7 }
 0x18f   :  { %v1784_v15 = vrot.slane %v1763_v35, %v2182_v7  ;;  %v1792_v11 = vcombine.low %v1770_v24, %v1777_v23 }
 0x190   :  { %v1760_v14 = vcombine.low %v1752_v22, %v1759_v42 }
 0x191   :  { %v1793_v2 = vcombine.low %v1784_v15, %v1791_v21  ;;  %v1800_v9 = vrot.slane %v1792_v11, %v2182_v7 }
 0x192   :  { %1870 = vst [vmem:[#allocation10 + $0x28] sm:$0x7f] %v1760_v14 }
 0x193   :  { %v1807_v53 = vrot.slane %v1793_v2, %v2182_v7 }
 0x195   :  { %v1808_v0 = vcombine.low %v1800_v9, %v1807_v53 }
 0x197   :  { %1871 = vst [vmem:[#allocation10 + $0x30] sm:$0x7f] %v1808_v0 }
 0x198   :  { %2059 = shalt.err (!%p2056_p8)
}
 0x199   :  { %s2060_s16 = scalar_lea.hbm %s2754_s4, 1024 }
 0x19a   :  { %p2061_p9 = scmp.ne.s32.totalorder %s2754_s4, %s2060_s16  ;;  %p2064_p10 = scmp.lt.u32.totalorder %s2060_s16, %s2754_s4 }
 0x19c   :  { %p2066_p11 = pnand %p2064_p10, %p2061_p9 }
 0x19e   :  { %2069 = shalt.err (!%p2066_p11)
}
 0x19f   :  { %1884 = dma.vmem_to_hbm [thread:$0]  %s1879_s1, 1024, %s2754_s4, [#allocation4], %s2084_s2, %s2084_s2, %s2085_s10  }
 0x1a0   :  { %2076 = dma.done.wait [#allocation4], 1024  }
 0x1a1   :  { %2077 = vsyncadd [#allocation4], 4294966272 }
 0x1a2   :  { %1888 = vsyncpa [#allocation3], 1 }
 0x1a3   :  { %1889 = vsyncpa [#allocation6], 1 }
 0x1a4   :  { %1890 = vsyncpa [#allocation9], 1 }
 0x1a5   :  { %1891 = vsyncpa [#allocation4], 1 }

// kernel: pure_attention_forward.4
= control target key start
LH: loop header
LB: loop body
LE: loop exit
PB: predicated region body
PF: predicated region fallthrough
CT: control target
= control target key end

     0   :  { %s3986_s0 = inlined_call_operand.hbm [shape: s32[8,1], index: 0, kind: input, shape index: {}]   ;;  %s3987_s1 = inlined_call_operand.hbm [shape: bf16[8,16,32], index: 1, kind: input, shape index: {}]   ;;  %s3988_s2 = inlined_call_operand.hbm [shape: bf16[8,16,24], index: 2, kind: input, shape index: {}]   ;;  %s3989_s3 = inlined_call_operand.hbm [shape: f32[7,8,16], index: 3, kind: input, shape index: {}]   ;;  %s3990_s4 = inlined_call_operand.hbm [shape: f32[8,32], index: 4, kind: input, shape index: {}]   ;;  %s3991_s5 = inlined_call_operand.hbm [shape: f32[8,32], index: 5, kind: input, shape index: {}]   ;;  %s3992_s6 = inlined_call_operand.hbm [shape: bf16[32,184], index: 6, kind: input, shape index: {}]   ;;  %s3993_s7 = inlined_call_operand.hbm [shape: f32[1,184], index: 7, kind: input, shape index: {}]   ;;  %s3994_s8 = inlined_call_operand.hbm [shape: f32[1,24], index: 8, kind: input, shape index: {}]   ;;  %s3995_s9 = inlined_call_operand.hbm [shape: bf16[16,128], index: 9, kind: input, shape index: {}]   ;;  %s3996_s10 = inlined_call_operand.hbm [shape: bf16[32,128], index: 10, kind: input, shape index: {}]   ;;  %s3997_s11 = inlined_call_operand.hbm [shape: bf16[7,8,32], index: 11, kind: output, shape index: {0}]   ;;  %s3998_s12 = inlined_call_operand.hbm [shape: f32[7,8,128], index: 12, kind: output, shape index: {1}]  }
   0x1   :  { %4011 = sst [smem:[#allocation35_spill]] %s3986_s0 }
   0x2   :  { %4012 = sst [smem:[#allocation36_spill]] %s3987_s1 }
   0x3   :  { %4013 = sst [smem:[#allocation37_spill]] %s3988_s2 }
   0x4   :  { %4014 = sst [smem:[#allocation38_spill]] %s3989_s3 }
   0x5   :  { %4015 = sst [smem:[#allocation39_spill]] %s3997_s11 }
   0x6   :  { %4016 = sst [smem:[#allocation40_spill]] %s3998_s12 }
   0x7   :  { %18 = vsyncpa [#allocation5], 0 }
   0x8   :  { %19 = vsyncpa [#allocation8], 0 }
   0x9   :  { %20 = vsyncpa [#allocation11], 0 }
   0xa   :  { %22 = vsyncpa [#allocation11 + $0x1], 0 }
   0xb   :  { %23 = vsyncpa [#allocation14], 0 }
   0xc   :  { %24 = vsyncpa [#allocation17], 0 }
   0xd   :  { %25 = vsyncpa [#allocation20], 0 }
   0xe   :  { %26 = vsyncpa [#allocation6], 0 }
   0xf   :  { %28 = vsyncpa [#allocation6 + $0x1], 0 }
  0x10   :  { %29 = vsyncpa [#allocation24], 0 }
  0x11   :  { %31 = vsyncpa [#allocation24 + $0x1], 0  ;;  %s3062_s21 = smov 0   ;;  %s3064_s22 = smov 0  }
  0x12   :  { %s3066_s23 = smov 0   ;;  %s3068_s24 = smov 0  }
  0x13 LB: > { %s2969_s25 = smov [#allocation7]   ;;  %s3083_s27 = sadd.s32 4294967295, %s2967_s24   ;;  %s2967_s24 = sphi %s3068_s24, %s4056_s24   ;;  %s2963_s23 = sphi %s3066_s23, %s4055_s23   ;;  %s2959_s22 = sphi %s3064_s22, %s4054_s22   ;;  %s2955_s21 = sphi %s3062_s21, %s4053_s21  }
  0x14   : > { %s353_s26 = sshll.u32 %s2969_s25, 4  ;;  %p2155_p0 = scmp.ge.s32.totalorder %s2967_s24, 1  ;;  %s3089_s26 = int_to_ptr.vmem [resolvable:$true] %s353_s26 }
  0x15   : > { %p4005_p1 = scmp.eq.s32.totalorder %s3083_s27, 0  ;;  %p330_p2 = scmp.lt.s32.totalorder %s2967_s24, 8 }
  0x16   : > { %s2970_s29 = smov [#allocation12]   ;;  %s2971_s14 = smov [#allocation13]  }
  0x17   : > { %p3091_p4 = pnand %p2155_p0, %p330_p2  ;;  %s380_s30 = sshll.u32 %s2970_s29, 4  ;;  %s3103_s30 = int_to_ptr.vmem [resolvable:$true] %s380_s30 }
  0x18   : > { %s391_s15 = sshll.u32 %s2971_s14, 4  ;;  %s4020_s1 = sld [smem:[#allocation36_spill]]  ;;  %s3105_s15 = int_to_ptr.vmem [resolvable:$true] %s391_s15 }
  0x19   : > { %s4017_s28 = scalar_select %p3091_p4, 1, 0 }
  0x1a   : > { %p2350_p5 = pneg %p3091_p4 }
  0x1b   : > { %4018 = sst [smem:[#allocation34_spill]] %s4017_s28 }
  0x1c   : > { %p3099_p6 = pnand %p2350_p5, %p4005_p1 }
  0x1e   : > { %s2535_s18 = scalar_lea.hbm %s4020_s1, 1024  ;;  %p3115_p8 = pneg %p3099_p6 }
  0x1f   : > { %p2536_p7 = scmp.ne.s32.totalorder %s4020_s1, %s2535_s18  ;;  %p2542_p11 = scmp.lt.u32.totalorder %s2535_s18, %s4020_s1 }
  0x21   : > { %p2538_p9 = pnand %p3115_p8, %p2536_p7 }
  0x23   : > { %p2539_p10 = pneg %p2538_p9 }
  0x25   : > { %p2544_p12 = pnand %p2542_p11, %p2539_p10 }
  0x27   : > { %2547 = shalt.err (!%p2544_p12)
}
  0x28   : > { %s2548_s16 = scalar_lea.vmem %s3089_s26, 1024  ;;  %p2556_p5 = scmp.lt.s32.totalorder %s3089_s26, %s3089_s26 }
  0x29   : > { %p2549_p13 = scmp.ne.s32.totalorder %s3089_s26, %s2548_s16  ;;  %p2557_p3 = scmp.lt.s32.totalorder %s2548_s16, %s2548_s16 }
  0x2b   : > { %p2551_p0 = pnand %p2549_p13, %p3115_p8  ;;  %p2558_p7 = por %p2557_p3, %p2556_p5 }
  0x2d   : > { %p2552_p2 = pneg %p2551_p0 }
  0x2f   : > { %p2559_p9 = pnand %p2558_p7, %p2552_p2 }
  0x31   : > { %2562 = shalt.err (!%p2559_p9)
}
  0x32   : > { %s4003_s17 = smov 64   ;;  %s4007_s18 = smov 4  }
  0x33   : > { %2356 = dma.hbm_to_vmem [thread:$0]  (!%p3099_p6), %s4020_s1, 1024, %s3089_s26, [#allocation8], %s4003_s17, %s4003_s17, %s4007_s18  }
  0x34   : > { %s2563_s16 = scalar_lea.hbm %s3990_s4, 128 }
  0x35   : > { %p2564_p3 = scmp.ne.s32.totalorder %s3990_s4, %s2563_s16  ;;  %p2570_p12 = scmp.lt.u32.totalorder %s2563_s16, %s3990_s4 }
  0x37   : > { %p2566_p10 = pnand %p2564_p3, %p3115_p8 }
  0x39   : > { %p2567_p11 = pneg %p2566_p10 }
  0x3b   : > { %p2572_p13 = pnand %p2570_p12, %p2567_p11 }
  0x3d   : > { %2575 = shalt.err (!%p2572_p13)
}
  0x3e   : > { %s2576_s26 = scalar_lea.vmem %s3103_s30, 128  ;;  %p2584_p7 = scmp.lt.s32.totalorder %s3103_s30, %s3103_s30 }
  0x3f   : > { %p2577_p0 = scmp.ne.s32.totalorder %s3103_s30, %s2576_s26  ;;  %p2585_p9 = scmp.lt.s32.totalorder %s2576_s26, %s2576_s26 }
  0x41   : > { %p2579_p2 = pnand %p2577_p0, %p3115_p8  ;;  %p2586_p3 = por %p2585_p9, %p2584_p7 }
  0x43   : > { %p2580_p5 = pneg %p2579_p2 }
  0x45   : > { %p2587_p10 = pnand %p2586_p3, %p2580_p5 }
  0x47   : > { %2590 = shalt.err (!%p2587_p10)
}
  0x48   : > { %2362 = dma.hbm_to_vmem [thread:$0]  (!%p3099_p6), %s3990_s4, 128, %s3103_s30, [#allocation11]  }
  0x49   : > { %s2591_s19 = scalar_lea.hbm %s3991_s5, 128 }
  0x4a   : > { %p2592_p11 = scmp.ne.s32.totalorder %s3991_s5, %s2591_s19  ;;  %p2598_p0 = scmp.lt.u32.totalorder %s2591_s19, %s3991_s5 }
  0x4c   : > { %p2594_p12 = pnand %p2592_p11, %p3115_p8 }
  0x4e   : > { %p2595_p13 = pneg %p2594_p12 }
  0x50   : > { %p2600_p2 = pnand %p2598_p0, %p2595_p13 }
  0x52   : > { %2603 = shalt.err (!%p2600_p2)
}
  0x53   : > { %s2604_s30 = scalar_lea.vmem %s3105_s15, 128  ;;  %p2612_p3 = scmp.lt.s32.totalorder %s3105_s15, %s3105_s15 }
  0x54   : > { %p2605_p5 = scmp.ne.s32.totalorder %s3105_s15, %s2604_s30  ;;  %p2613_p10 = scmp.lt.s32.totalorder %s2604_s30, %s2604_s30 }
  0x56   : > { %p2607_p7 = pnand %p2605_p5, %p3115_p8  ;;  %p2614_p11 = por %p2613_p10, %p2612_p3 }
  0x58   : > { %p2608_p9 = pneg %p2607_p7 }
  0x5a   : > { %p2615_p12 = pnand %p2614_p11, %p2608_p9 }
  0x5c   : > { %2618 = shalt.err (!%p2615_p12)
}
  0x5d   : > { %2365 = dma.hbm_to_vmem [thread:$0]  (!%p3099_p6), %s3991_s5, 128, %s3105_s15, [#allocation14]  }
  0x5e   : > { %s2974_s11 = smov [#allocation16]   ;;  %s2975_s28 = smov [#allocation19]  }
  0x5f   : > { %s415_s12 = sshll.u32 %s2974_s11, 4  ;;  %s436_s19 = sshll.u32 %s2975_s28, 4  ;;  %s416_s12 = int_to_ptr.vmem [resolvable:$true] %s415_s12  ;;  %s437_s19 = int_to_ptr.vmem [resolvable:$true] %s436_s19 }
  0x60   : > { %s2619_s14 = scalar_lea.hbm %s3993_s7, 32 }
  0x61   : > { %p2620_p13 = scmp.ne.s32.totalorder %s3993_s7, %s2619_s14  ;;  %p2626_p5 = scmp.lt.u32.totalorder %s2619_s14, %s3993_s7 }
  0x63   : > { %p2622_p0 = pnand %p2620_p13, %p3115_p8 }
  0x65   : > { %p2623_p2 = pneg %p2622_p0 }
  0x67   : > { %p2628_p7 = pnand %p2626_p5, %p2623_p2 }
  0x69   : > { %2631 = shalt.err (!%p2628_p7)
}
  0x6a   : > { %s2632_s15 = scalar_lea.vmem %s416_s12, 32  ;;  %p2640_p11 = scmp.lt.s32.totalorder %s416_s12, %s416_s12 }
  0x6b   : > { %p2633_p9 = scmp.ne.s32.totalorder %s416_s12, %s2632_s15  ;;  %p2641_p12 = scmp.lt.s32.totalorder %s2632_s15, %s2632_s15 }
  0x6d   : > { %p2635_p3 = pnand %p2633_p9, %p3115_p8  ;;  %p2642_p1 = por %p2641_p12, %p2640_p11 }
  0x6f   : > { %p2636_p10 = pneg %p2635_p3 }
  0x71   : > { %p2643_p4 = pnand %p2642_p1, %p2636_p10 }
  0x73   : > { %2646 = shalt.err (!%p2643_p4)
}
  0x74   : > { %2371 = dma.hbm_to_vmem [thread:$0]  (!%p3099_p6), %s3993_s7, 32, %s416_s12, [#allocation17]  }
  0x75   : > { %s2647_s20 = scalar_lea.hbm %s3995_s9, 128 }
  0x76   : > { %p2648_p13 = scmp.ne.s32.totalorder %s3995_s9, %s2647_s20  ;;  %p2654_p4 = scmp.lt.u32.totalorder %s2647_s20, %s3995_s9 }
  0x78   : > { %p2650_p0 = pnand %p2648_p13, %p3115_p8 }
  0x7a   : > { %p2651_p1 = pneg %p2650_p0 }
  0x7c   : > { %p2656_p2 = pnand %p2654_p4, %p2651_p1 }
  0x7e   : > { %2659 = shalt.err (!%p2656_p2)
}
  0x7f   : > { %s2660_s26 = scalar_lea.vmem %s437_s19, 128  ;;  %p2668_p3 = scmp.lt.s32.totalorder %s437_s19, %s437_s19 }
  0x80   : > { %p2661_p5 = scmp.ne.s32.totalorder %s437_s19, %s2660_s26  ;;  %p2669_p10 = scmp.lt.s32.totalorder %s2660_s26, %s2660_s26 }
  0x82   : > { %p2663_p7 = pnand %p2661_p5, %p3115_p8  ;;  %p2670_p11 = por %p2669_p10, %p2668_p3 }
  0x84   : > { %p2664_p9 = pneg %p2663_p7 }
  0x86   : > { %p2671_p12 = pnand %p2670_p11, %p2664_p9 }
  0x88   : > { %2674 = shalt.err (!%p2671_p12)
}
  0x89   : > { %s4022_s12 = smov 64   ;;  %s2976_s11 = smov [#allocation4]  }
  0x8a   : > { %2377 = dma.hbm_to_vmem [thread:$0]  (!%p3099_p6), %s3995_s9, 128, %s437_s19, [#allocation20], %s4022_s12, %s4022_s12, %s4007_s18  }
  0x8b   : > { %s343_s17 = sshll.u32 %s2976_s11, 4  ;;  %s2977_s28 = smov [#allocation9]   ;;  %s344_s17 = int_to_ptr.vmem [resolvable:$true] %s343_s17 }
  0x8c   : > { %s366_s20 = sshll.u32 %s2977_s28, 4  ;;  %s4023_s0 = sld [smem:[#allocation35_spill]]  ;;  %s367_s20 = int_to_ptr.vmem [resolvable:$true] %s366_s20 }
  0x92   : > { %s2675_s16 = scalar_lea.hbm %s4023_s0, 128 }
  0x93   : > { %p2676_p13 = scmp.ne.s32.totalorder %s4023_s0, %s2675_s16  ;;  %p2682_p4 = scmp.lt.u32.totalorder %s2675_s16, %s4023_s0 }
  0x95   : > { %p2678_p0 = pnand %p2676_p13, %p3115_p8 }
  0x97   : > { %p2679_p1 = pneg %p2678_p0 }
  0x99   : > { %p2684_p2 = pnand %p2682_p4, %p2679_p1 }
  0x9b   : > { %2687 = shalt.err (!%p2684_p2)
}
  0x9c   : > { %s2688_s19 = scalar_lea.vmem %s344_s17, 128  ;;  %p2696_p3 = scmp.lt.s32.totalorder %s344_s17, %s344_s17 }
  0x9d   : > { %p2689_p5 = scmp.ne.s32.totalorder %s344_s17, %s2688_s19  ;;  %p2697_p10 = scmp.lt.s32.totalorder %s2688_s19, %s2688_s19 }
  0x9f   : > { %p2691_p7 = pnand %p2689_p5, %p3115_p8  ;;  %p2698_p11 = por %p2697_p10, %p2696_p3 }
  0xa1   : > { %p2692_p9 = pneg %p2691_p7 }
  0xa3   : > { %p2699_p12 = pnand %p2698_p11, %p2692_p9 }
  0xa5   : > { %2702 = shalt.err (!%p2699_p12)
}
  0xa6   : > { %2353 = dma.hbm_to_vmem [thread:$0]  (!%p3099_p6), %s4023_s0, 128, %s344_s17, [#allocation5]  }
  0xa7   : > { %s4024_s2 = sld [smem:[#allocation37_spill]] }
  0xad   : > { %s2703_s29 = scalar_lea.hbm %s4024_s2, 1024 }
  0xae   : > { %p2704_p13 = scmp.ne.s32.totalorder %s4024_s2, %s2703_s29  ;;  %p2710_p4 = scmp.lt.u32.totalorder %s2703_s29, %s4024_s2 }
  0xb0   : > { %p2706_p0 = pnand %p2704_p13, %p3115_p8 }
  0xb2   : > { %p2707_p1 = pneg %p2706_p0 }
  0xb4   : > { %p2712_p2 = pnand %p2710_p4, %p2707_p1 }
  0xb6   : > { %2715 = shalt.err (!%p2712_p2)
}
  0xb7   : > { %s2716_s15 = scalar_lea.vmem %s367_s20, 1024  ;;  %p2724_p3 = scmp.lt.s32.totalorder %s367_s20, %s367_s20 }
  0xb8   : > { %p2717_p5 = scmp.ne.s32.totalorder %s367_s20, %s2716_s15  ;;  %p2725_p10 = scmp.lt.s32.totalorder %s2716_s15, %s2716_s15 }
  0xba   : > { %p2719_p7 = pnand %p2717_p5, %p3115_p8  ;;  %p2726_p11 = por %p2725_p10, %p2724_p3 }
  0xbc   : > { %p2720_p9 = pneg %p2719_p7 }
  0xbe   : > { %p2727_p12 = pnand %p2726_p11, %p2720_p9 }
  0xc0   : > { %2730 = shalt.err (!%p2727_p12)
}
  0xc1   : > { %2359 = dma.hbm_to_vmem [thread:$0]  (!%p3099_p6), %s4024_s2, 1024, %s367_s20, [#allocation8], %s4022_s12, %s4022_s12, %s4007_s18  }
  0xc2   : > { %s2978_s3 = smov [#allocation15]   ;;  %s2731_s29 = scalar_lea.hbm %s3992_s6, 512 }
  0xc3   : > { %s401_s11 = sshll.u32 %s2978_s3, 4  ;;  %p2732_p13 = scmp.ne.s32.totalorder %s3992_s6, %s2731_s29  ;;  %s402_s11 = int_to_ptr.vmem [resolvable:$true] %s401_s11 }
  0xc4   : > { %p2738_p4 = scmp.lt.u32.totalorder %s2731_s29, %s3992_s6 }
  0xc5   : > { %p2734_p0 = pnand %p2732_p13, %p3115_p8 }
  0xc7   : > { %p2735_p1 = pneg %p2734_p0 }
  0xc9   : > { %p2740_p2 = pnand %p2738_p4, %p2735_p1 }
  0xcb   : > { %2743 = shalt.err (!%p2740_p2)
}
  0xcc   : > { %s2744_s20 = scalar_lea.vmem %s402_s11, 512  ;;  %p2752_p3 = scmp.lt.s32.totalorder %s402_s11, %s402_s11 }
  0xcd   : > { %p2745_p5 = scmp.ne.s32.totalorder %s402_s11, %s2744_s20  ;;  %p2753_p10 = scmp.lt.s32.totalorder %s2744_s20, %s2744_s20 }
  0xcf   : > { %p2747_p7 = pnand %p2745_p5, %p3115_p8  ;;  %p2754_p11 = por %p2753_p10, %p2752_p3 }
  0xd1   : > { %p2748_p9 = pneg %p2747_p7 }
  0xd3   : > { %p2755_p12 = pnand %p2754_p11, %p2748_p9 }
  0xd5   : > { %2758 = shalt.err (!%p2755_p12)
}
  0xd6   : > { %s2979_s15 = smov 128   ;;  %s2980_s17 = smov 8  }
  0xd7   : > { %2368 = dma.hbm_to_vmem [thread:$0]  (!%p3099_p6), %s3992_s6, 512, %s402_s11, [#allocation14], %s2979_s15, %s2979_s15, %s2980_s17  }
  0xd8   : > { %s2981_s1 = smov [#allocation18]   ;;  %s2982_s29 = smov [#allocation21]  }
  0xd9   : > { %s426_s28 = sshll.u32 %s2981_s1, 4  ;;  %s449_s14 = sshll.u32 %s2982_s29, 4  ;;  %s427_s28 = int_to_ptr.vmem [resolvable:$true] %s426_s28  ;;  %s3281_s14 = int_to_ptr.vmem [resolvable:$true] %s449_s14 }
  0xda   : > { %s2759_s26 = scalar_lea.hbm %s3994_s8, 16 }
  0xdb   : > { %p2760_p13 = scmp.ne.s32.totalorder %s3994_s8, %s2759_s26  ;;  %p2766_p4 = scmp.lt.u32.totalorder %s2759_s26, %s3994_s8 }
  0xdd   : > { %p2762_p0 = pnand %p2760_p13, %p3115_p8 }
  0xdf   : > { %p2763_p1 = pneg %p2762_p0 }
  0xe1   : > { %p2768_p2 = pnand %p2766_p4, %p2763_p1 }
  0xe3   : > { %2771 = shalt.err (!%p2768_p2)
}
  0xe4   : > { %s2772_s15 = scalar_lea.vmem %s427_s28, 16  ;;  %s2779_s17 = scalar_lea.vmem %s427_s28, 32 }
  0xe5   : > { %p2773_p5 = scmp.ne.s32.totalorder %s427_s28, %s2772_s15  ;;  %p2780_p3 = scmp.lt.s32.totalorder %s427_s28, %s427_s28 }
  0xe6   : > { %p2781_p10 = scmp.lt.s32.totalorder %s2779_s17, %s2772_s15 }
  0xe7   : > { %p2775_p7 = pnand %p2773_p5, %p3115_p8 }
  0xe8   : > { %p2782_p11 = por %p2781_p10, %p2780_p3 }
  0xe9   : > { %p2776_p9 = pneg %p2775_p7 }
  0xeb   : > { %p2783_p12 = pnand %p2782_p11, %p2776_p9 }
  0xed   : > { %2786 = shalt.err (!%p2783_p12)
}
  0xee   : > { %2374 = dma.hbm_to_vmem [thread:$0]  (!%p3099_p6), %s3994_s8, 16, %s427_s28, [#allocation17]  }
  0xef   : > { %s2787_s16 = scalar_lea.hbm %s3996_s10, 256 }
  0xf0   : > { %p2788_p13 = scmp.ne.s32.totalorder %s3996_s10, %s2787_s16  ;;  %p2794_p4 = scmp.lt.u32.totalorder %s2787_s16, %s3996_s10 }
  0xf2   : > { %p2790_p0 = pnand %p2788_p13, %p3115_p8 }
  0xf4   : > { %p2791_p1 = pneg %p2790_p0 }
  0xf6   : > { %p2796_p2 = pnand %p2794_p4, %p2791_p1 }
  0xf8   : > { %2799 = shalt.err (!%p2796_p2)
}
  0xf9   : > { %s2800_s28 = scalar_lea.vmem %s3281_s14, 256  ;;  %p2808_p3 = scmp.lt.s32.totalorder %s3281_s14, %s3281_s14 }
  0xfa   : > { %p2801_p5 = scmp.ne.s32.totalorder %s3281_s14, %s2800_s28  ;;  %p2809_p10 = scmp.lt.s32.totalorder %s2800_s28, %s2800_s28 }
  0xfc   : > { %p2803_p7 = pnand %p2801_p5, %p3115_p8  ;;  %p2810_p11 = por %p2809_p10, %p2808_p3 }
  0xfe   : > { %p2804_p9 = pneg %p2803_p7 }
 0x100   : > { %p2811_p12 = pnand %p2810_p11, %p2804_p9 }
 0x102   : > { %2814 = shalt.err (!%p2811_p12)
}
 0x103   : > { %s4025_s11 = smov 4   ;;  %s2154_s13 = sadd.s32 4294967294, %s2967_s24  }
 0x104   : > { %2380 = dma.hbm_to_vmem [thread:$0]  (!%p3099_p6), %s3996_s10, 256, %s3281_s14, [#allocation20], %s4022_s12, %s4022_s12, %s4025_s11  }
 0x105   : > { %s3329_s25 = sadd.s32 1, %s2967_s24   ;;  %s107_s3 = sadd.s32 1, %s2963_s23 }
 0x106   : > { %s104_s18 = ssub.s32 %s2967_s24, %s3329_s25  ;;  %p114_p13 = scmp.ne.s32.totalorder %s2963_s23, %s2959_s22 }
 0x107   : > { %p105_p8 = scmp.eq.s32.totalorder %s104_s18, 0  ;;  %p115_p0 = scmp.eq.s32.totalorder %s2967_s24, 0 }
 0x108   : > { %p120_p1 = scmp.ne.s32.totalorder %s2959_s22, %s2955_s21  ;;  %p4027_p2 = scmp.eq.s32.totalorder %s3083_s27, 0 }
 0x109   : > { %s3340_s1 = scalar_select %p105_p8, %s2963_s23, %s107_s3  }
 0x10a   : > { %p3342_p4 = por %p115_p0, %p114_p13  ;;  %p3348_p6 = por %p4027_p2, %p120_p1 }
 0x10b   : > { %p291_p5 = scmp.eq.s32.totalorder %s3083_s27, 6  ;;  %p297_p7 = scmp.eq.s32.totalorder %s2154_s13, 6 }
 0x10c   : > { %p2402_p9 = scmp.lt.s32.totalorder %s2967_s24, 7  ;;  %s463_s14 = sand.u32 1, %s2967_s24  }
 0x10d   : > { %p3355_p3 = por %p291_p5, %p114_p13  ;;  %p3359_p10 = por %p297_p7, %p120_p1 }
 0x10e   : > { %s465_s26 = sand.u32 1, %s2963_s23   ;;  %s2168_s19 = sshll.u32 %s2967_s24, 7 }
 0x10f   : > { %s4029_s16 = scalar_select %p3355_p3, 1, 0 }
 0x110   : > { %s4030_s30 = scalar_select %p3359_p10, 1, 0 }
 0x111   : > { %s2167_s20 = sshll.u32 %s465_s26, 3  ;;  %s4031_s15 = sld [smem:[#allocation38_spill]] }
 0x112   : > { %s467_s13 = scalar_lea.vmem [#allocation10], %s2167_s20  ;;  %p3372_p11 = pnand %p2402_p9, %p3342_p4 }
 0x113   : > { %s474_s18 = sshll.u32 %s467_s13, 4  ;;  %s464_s26 = scalar_lea.sflag [#allocation11], %s463_s14  ;;  %s3376_s18 = int_to_ptr.vmem [resolvable:$true] %s474_s18 }
 0x114   : > { %p2817_p8 = pneg %p3372_p11 }
 0x117   : > { %s3368_s17 = scalar_lea.hbm %s4031_s15, %s2168_s19  ;;  %s2820_s29 = scalar_lea.hbm %s4031_s15, 896 }
 0x118   : > { %s2815_s0 = scalar_lea.hbm %s3368_s17, 128  ;;  %p2821_p1 = scmp.lt.u32.totalorder %s3368_s17, %s4031_s15 }
 0x119   : > { %p2816_p12 = scmp.ne.s32.totalorder %s3368_s17, %s2815_s0  ;;  %p2822_p4 = scmp.lt.u32.totalorder %s2820_s29, %s2815_s0 }
 0x11a   : > { %p2824_p5 = scmp.lt.u32.totalorder %s2815_s0, %s3368_s17 }
 0x11b   : > { %p2818_p13 = pnand %p2817_p8, %p2816_p12  ;;  %p2823_p2 = por %p2822_p4, %p2821_p1 }
 0x11d   : > { %p2819_p0 = pneg %p2818_p13  ;;  %p2825_p7 = por %p2824_p5, %p2823_p2 }
 0x11f   : > { %p2826_p9 = pnand %p2825_p7, %p2819_p0 }
 0x121   : > { %2829 = shalt.err (!%p2826_p9)
}
 0x122   : > { %s2830_s14 = scalar_lea.vmem %s3376_s18, 128  ;;  %s2983_s13 = smov [#allocation10]  }
 0x123   : > { %p2831_p12 = scmp.ne.s32.totalorder %s3376_s18, %s2830_s14  ;;  %s2835_s20 = sshll.u32 %s2983_s13, 4  ;;  %s2836_s20 = int_to_ptr.vmem [resolvable:$false] %s2835_s20 }
 0x124   : > { %s2837_s19 = scalar_lea.vmem %s2836_s20, 256  ;;  %p2838_p3 = scmp.lt.s32.totalorder %s3376_s18, %s2836_s20 }
 0x125   : > { %p2833_p13 = pnand %p2831_p12, %p2817_p8  ;;  %p2839_p1 = scmp.lt.s32.totalorder %s2837_s19, %s2830_s14 }
 0x127   : > { %p2834_p10 = pneg %p2833_p13  ;;  %p2840_p4 = por %p2839_p1, %p2838_p3 }
 0x129   : > { %p2841_p2 = pnand %p2840_p4, %p2834_p10 }
 0x12b   : > { %2844 = shalt.err (!%p2841_p2)
}
 0x12c   : > { %2384 = dma.hbm_to_vmem [thread:$0]  (!%p3372_p11), %s3368_s17, 128, %s3376_s18, %s464_s26  }
 0x12d   : > { %s4033_s0 = sld [smem:[#allocation34_spill]] }
 0x133   : > { %p4034_p0 = scmp.ne.s32.totalorder %s4033_s0, 0 }
 0x134   : > { %p4035_p8 = scmp.eq.s32.totalorder (!%p4034_p0), %s3083_s27, 0 }
 0x135   : > { %483 = sbr.rel (%p4034_p0) target bundleno = 2522 (0x9da), region = 64 }
 0x13c   : > { %2918 = dma.done.wait (%p4035_p8), [#allocation5], 128   ;;  %p4036_p5 = pmov %p4035_p8 }
 0x13e   : > { %2920 = vsyncadd (%p4036_p5), [#allocation5], 4294967168  ;;  %p4037_p7 = pmov %p4036_p5 }
 0x13f   : > { %p4038_p3 = pmov %p4036_p5 }
 0x140   : > { %2922 = dma.done.wait (%p4037_p7), [#allocation8], 2048  }
 0x141   : > { %2924 = vsyncadd (%p4038_p3), [#allocation8], 4294965248  ;;  %s497_s3 = sand.u32 1, %s3083_s27   ;;  %s3415_s17 = sand.u32 1, %s2959_s22  }
 0x142   : > { %s2173_s18 = sshll.u32 %s3415_s17, 3  ;;  %s498_s26 = scalar_lea.sflag [#allocation11], %s497_s3 }
 0x143   : > { %s3418_s29 = scalar_lea.vmem [#allocation10], %s2173_s18 }
 0x144   : > { %2926 = dma.done.wait (%p3348_p6), %s498_s26, 128  }
 0x145   : > { %2928 = vsyncadd (%p3348_p6), %s498_s26, 4294967168  ;;  %p4039_p10 = pmov %p4038_p3 }
 0x146   : > { %p4040_p11 = pmov %p4038_p3 }
 0x147   : > { %2930 = dma.done.wait (%p4039_p10), [#allocation11], 128  }
 0x148   : > { %2932 = vsyncadd (%p4040_p11), [#allocation11], 4294967168  ;;  %p4041_p9 = pmov %p4038_p3 }
 0x149   : > { %p4042_p12 = pmov %p4038_p3 }
 0x14a   : > { %2934 = dma.done.wait (%p4041_p9), [#allocation14], 640  }
 0x14b   : > { %2936 = vsyncadd (%p4042_p12), [#allocation14], 4294966656  ;;  %p4043_p13 = pmov %p4038_p3 }
 0x14c   : > { %p4044_p1 = pmov %p4038_p3 }
 0x14d   : > { %2938 = dma.done.wait (%p4043_p13), [#allocation17], 48  }
 0x14e   : > { %2940 = vsyncadd (%p4044_p1), [#allocation17], 4294967248  ;;  %p4045_p6 = pmov %p4044_p1 }
 0x14f   : > { %p4046_p4 = pmov %p4044_p1 }
 0x150   : > { %2942 = dma.done.wait (%p4045_p6), [#allocation20], 384  }
 0x151   : > { %2944 = vsyncadd (%p4046_p4), [#allocation20], 4294966912  ;;  %s2181_s12 = sshll.u32 %s3415_s17, 2  ;;  %s3443_s11 = scalar_lea.vmem [#allocation23], %s2173_s18 }
 0x152   : > { %s3441_s28 = scalar_lea.vmem [#allocation22], %s2181_s12  ;;  %p4047_p2 = scmp.ne.s32.totalorder %s3083_s27, 0 }
 0x153   : > { %v580_v0 = vld [vmem:[#allocation12] sm:$0xff] (!%p4047_p2)  ;;  %vm581_vm0 = vcmask (!%p4047_p2), 261120   ;;  %v583_v1 = vld [vmem:[#allocation13] sm:$0xff] (!%p4047_p2) }
 0x154   : > { %579 = sbr.rel (%p4047_p2) target bundleno = 347 (0x15b), region = 112  ;;  %582 = vst.msk [vmem:[#allocation2] sm:$0xff] (!%p4047_p2), %vm581_vm0, %v580_v0  ;;  %584 = vst.msk [vmem:[#allocation3] sm:$0xff] (!%p4047_p2), %vm581_vm0, %v583_v1 }
 0x15b PF: > { %v2473_v2 = vld [vmem:[#allocation15 + $0x4] ss:$8 sps:$4 sm:$0xff]   ;;  %v2475_v3 = vld [vmem:[#allocation15] ss:$8 sps:$4 sm:$0xff]   ;;  %v2984_v4 = vmov 0   ;;  %vm629_vm1 = vcmask 261120   ;;  %v599_v9 = vlaneseq }
 0x15c   : > { %665 = vmatprep.mubr.bf16.mxu0 %v2984_v4  ;;  %2472 = vset.pattern.permute.xlu0 %v2984_v4  ;;  %v2476_v5 = vld [vmem:[#allocation15 + $0x14] ss:$8 sps:$4 sm:$0xff]   ;;  %v2478_v6 = vld [vmem:[#allocation15 + $0x10] ss:$8 sps:$4 sm:$0xff]   ;;  %v590_v7 = vld [vmem:[#allocation2] sm:$0xff]  ;;  %vm851_vm2 = vcmask 195584  }
 0x15d   : > { %633 = vmatprep.subr.bf16.mxu0 %v2473_v2  ;;  %2471 = vset.pattern.permute.xlu1 %v2984_v4  ;;  %v592_v8 = vpack.c.bf16 %v590_v7, %v590_v7  ;;  %v3449_v10 = vshrl.u32 %v599_v9, 7  ;;  %v2985_v11 = vmov 1966171168   ;;  %v597_v14 = vld [vmem:[#allocation16] sm:$0x3]  ;;  %v2271_v26 = vld [vmem:[#allocation9 + $0x8] sm:$0xff]  }
 0x15e   : > { %634 = vmatpush1.bf16.msra.mxu0 %v2475_v3  ;;  %v693_v12 = vunpack.c.l.s4 %v2985_v11  ;;  %v2208_v21 = vld [vmem:[#allocation9] sm:$0xff]   ;;  %v2272_v32 = vld [vmem:[#allocation9 + $0x10] sm:$0xff]   ;;  %v2213_v33 = vunpack.c.l.bf16 %v2271_v26  ;;  %v2214_v34 = vunpack.c.h.bf16 %v2271_v26  ;;  %v2273_v54 = vld [vmem:[#allocation9 + $0x18] sm:$0xff]   ;;  %vm927_vm3 = vcmask 130112   ;;  %s2988_s14 = smov 24   ;;  %s2989_s13 = smov 56  }
 0x15f   : > { %635 = vmatprep.subr.bf16.mxu0 %v2476_v5  ;;  %v3452_v13 = vsub.s32 0, %v3449_v10  ;;  %v2209_v27 = vunpack.c.l.bf16 %v2208_v21  ;;  %v2210_v31 = vunpack.c.h.bf16 %v2208_v21  ;;  %v2274_v38 = vld [vmem:[#allocation9 + $0x20] sm:$0xff]   ;;  %v2217_v40 = vunpack.c.l.bf16 %v2272_v32  ;;  %v2275_v4 = vld [vmem:[#allocation9 + $0x28] sm:$0xff]   ;;  %s2990_s20 = smov 104   ;;  %s2991_s19 = smov 64  }
 0x160   : > { %v694_v15 = vunpack.c.0.s8 %v693_v12  ;;  %v2218_v41 = vunpack.c.h.bf16 %v2272_v32  ;;  %v3466_v46 = vld [vmem:[#allocation18] ss:$0 sm:$0xff]  ;;  %v2225_v47 = vunpack.c.l.bf16 %v2274_v38  ;;  %v2226_v56 = vunpack.c.h.bf16 %v2274_v38  ;;  %s2992_s0 = smov 88   ;;  %s2993_s3 = smov 32  }
 0x161   : > { %v602_v16 = vrot.slane %v597_v14, %v3452_v13  ;;  %v2221_v0 = vunpack.c.l.bf16 %v2273_v54  ;;  %v2222_v7 = vunpack.c.h.bf16 %v2273_v54  ;;  %vm992_vm4 = vcmask 1041409   ;;  %s2994_s18 = smov 40   ;;  %s2203_s26 = sshll.u32 %s3083_s27, 7 }
 0x162   : > { %636 = vmatpush1.bf16.msra.mxu0 %v2478_v6  ;;  %v697_v17 = vsub.s32 %v694_v15, %v3449_v10  ;;  %vm994_vm5 = vcmask 1042434   ;;  %vm996_vm6 = vcmask 1043459   ;;  %vm998_vm7 = vcmask 1044484   ;;  %p4050_p8 = scmp.ne.s32.totalorder %s4029_s16, 0 }
 0x163   : > { %vm1000_vm8 = vcmask 1045509   ;;  %vm1002_vm9 = vcmask 1046534   ;;  %vm1004_vm10 = vcmask 1047559   ;;  %vm1007_vm11 = vcmask 130048  }
 0x164   : > { %vm2987_vm12 = vmmov 0   ;;  %vm1683_vm14 = vcmask 523264  }
 0x165   : > { %2189 = vmatmul.mubr.msk.bf16.vlgmr.msra.gmra.mrb[0].mxu0 %vm629_vm1, %v592_v8 }
 0x238   : > { %v667_v18 = vpop.f32.mrb[0].mxu0 }
 0x239   : > { %v3456_v19 = vadd.f32 %v667_v18, %v602_v16  ;;  %v3458_v20 = vpop.f32.mrb[1].mxu0  ;;  %v2229_v18 = vunpack.c.l.bf16 %v2275_v4 }
 0x23a   : > { %v671_v22 = vpop.f32.mrb[2].mxu0 }
 0x23b   : > { %v691_v23 = vcombine.high %v3456_v19, %v3456_v19  ;;  %v698_v24 = vrot.slane %v3456_v19, %v697_v17  ;;  %v672_v25 = vpop.f32.mrb[3].mxu0 }
 0x23c   : > { %v2230_v25 = vunpack.c.h.bf16 %v2275_v4 }
 0x23d   : > { %v705_v28 = vrot.slane %v691_v23, %v697_v17  ;;  %v714_v29 = vrot.slane %v698_v24, %v697_v17  ;;  %v706_v30 = vcombine.high %v698_v24, %v698_v24  ;;  %v2276_v23 = vld [vmem:[#allocation9 + $0x30] sm:$0xff]  }
 0x23e   : > { %v2233_v32 = vunpack.c.l.bf16 %v2276_v23  ;;  %v2234_v38 = vunpack.c.h.bf16 %v2276_v23 }
 0x23f   : > { %v759_v35 = vrot.slane %v714_v29, %v3452_v13  ;;  %v728_v36 = vrot.slane %v706_v30, %v697_v17  ;;  %v736_v37 = vcombine.high %v714_v29, %v714_v29  ;;  %v721_v39 = vrot.slane %v705_v28, %v697_v17 }
 0x240   : > { %v707_v49 = vcombine.high %v705_v28, %v705_v28 }
 0x241   : > { %v796_v42 = vadd.f32 %v2209_v27, %v759_v35  ;;  %v763_v43 = vrot.slane %v728_v36, %v3452_v13  ;;  %v797_v44 = vadd.f32 %v2210_v31, %v759_v35  ;;  %v767_v45 = vrot.slane %v736_v37, %v3452_v13 }
 0x242   : > { %v775_v48 = vrot.slane %v721_v39, %v3452_v13  ;;  %v738_v57 = vcombine.high %v728_v36, %v728_v36  ;;  %v735_v5 = vrot.slane %v707_v49, %v697_v17  ;;  %v737_v24 = vcombine.high %v721_v39, %v721_v39  ;;  %v2277_v36 = vld [vmem:[#allocation9 + $0x38] sm:$0xff]  }
 0x243   : > { %v812_v50 = vmax.f32 %v796_v42, 0.0  ;;  %v798_v51 = vadd.f32 %v2213_v33, %v763_v43  ;;  %v813_v52 = vmax.f32 %v797_v44, 0.0  ;;  %v799_v53 = vadd.f32 %v2214_v34, %v763_v43 }
 0x244   : > { %v800_v55 = vadd.f32 %v2217_v40, %v767_v45  ;;  %v801_v61 = vadd.f32 %v2218_v41, %v767_v45  ;;  %v804_v63 = vadd.f32 %v2225_v47, %v775_v48  ;;  %v805_v6 = vadd.f32 %v2226_v56, %v775_v48 }
 0x245   : > { %v835_v58 = vmul.f32 %v3466_v46, %v812_v50  ;;  %v814_v59 = vmax.f32 %v798_v51, 0.0  ;;  %v815_v60 = vmax.f32 %v799_v53, 0.0  ;;  %v836_v3 = vmul.f32 %v3466_v46, %v813_v52 }
 0x246   : > { %v816_v62 = vmax.f32 %v800_v55, 0.0  ;;  %v817_v12 = vmax.f32 %v801_v61, 0.0  ;;  %v771_v14 = vrot.slane %v738_v57, %v3452_v13  ;;  %v820_v16 = vmax.f32 %v804_v63, 0.0 }
 0x247   : > { %v852_v1 = vsel %vm851_vm2, %v835_v58, 0.0  ;;  %v837_v2 = vmul.f32 %v3466_v46, %v814_v59  ;;  %v838_v11 = vmul.f32 %v3466_v46, %v815_v60  ;;  %v855_v21 = vsel %vm851_vm2, %v836_v3, 0.0 }
 0x248   : > { %853 = vadd.xlane.f32.xlu0 %v852_v1  ;;  %v839_v15 = vmul.f32 %v3466_v46, %v816_v62  ;;  %v802_v22 = vadd.f32 %v2221_v0, %v771_v14  ;;  %v779_v17 = vrot.slane %v735_v5, %v3452_v13  ;;  %v840_v27 = vmul.f32 %v3466_v46, %v817_v12 }
 0x249   : > { %v858_v8 = vsel %vm851_vm2, %v837_v2, 0.0  ;;  %v861_v26 = vsel %vm851_vm2, %v838_v11, 0.0  ;;  %v821_v28 = vmax.f32 %v805_v6, 0.0  ;;  %v803_v29 = vadd.f32 %v2222_v7, %v771_v14 }
 0x24a   : > { %859 = vadd.xlane.f32.xlu1 %v858_v8  ;;  %v864_v30 = vsel %vm851_vm2, %v839_v15, 0.0  ;;  %v843_v31 = vmul.f32 %v3466_v46, %v820_v16  ;;  %v818_v33 = vmax.f32 %v802_v22, 0.0  ;;  %v806_v34 = vadd.f32 %v2229_v18, %v779_v17 }
 0x24b   : > { %v783_v35 = vrot.slane %v737_v24, %v3452_v13  ;;  %v739_v37 = vcombine.high %v735_v5, %v735_v5  ;;  %v867_v39 = vsel %vm851_vm2, %v840_v27, 0.0  ;;  %v844_v40 = vmul.f32 %v3466_v46, %v821_v28 }
 0x24c   : > { %856 = vadd.xlane.f32.xlu0 %v855_v21  ;;  %v819_v41 = vmax.f32 %v803_v29, 0.0  ;;  %v807_v42 = vadd.f32 %v2230_v25, %v779_v17  ;;  %v876_v43 = vsel %vm851_vm2, %v843_v31, 0.0  ;;  %v2237_v44 = vunpack.c.l.bf16 %v2277_v36 }
 0x24d   : > { %v841_v45 = vmul.f32 %v3466_v46, %v818_v33  ;;  %v822_v47 = vmax.f32 %v806_v34, 0.0  ;;  %v808_v48 = vadd.f32 %v2233_v32, %v783_v35  ;;  %v787_v49 = vrot.slane %v739_v37, %v3452_v13 }
 0x24e   : > { %862 = vadd.xlane.f32.xlu1 %v861_v26  ;;  %v2238_v50 = vunpack.c.h.bf16 %v2277_v36  ;;  %v879_v51 = vsel %vm851_vm2, %v844_v40, 0.0  ;;  %v842_v52 = vmul.f32 %v3466_v46, %v819_v41  ;;  %v823_v53 = vmax.f32 %v807_v42, 0.0 }
 0x24f   : > { %v809_v54 = vadd.f32 %v2234_v38, %v783_v35  ;;  %v870_v55 = vsel %vm851_vm2, %v841_v45, 0.0  ;;  %v845_v56 = vmul.f32 %v3466_v46, %v822_v47  ;;  %v824_v57 = vmax.f32 %v808_v48, 0.0 }
 0x250   : > { %865 = vadd.xlane.f32.xlu0 %v864_v30  ;;  %v810_v58 = vadd.f32 %v2237_v44, %v787_v49  ;;  %v873_v59 = vsel %vm851_vm2, %v842_v52, 0.0  ;;  %v846_v60 = vmul.f32 %v3466_v46, %v823_v53  ;;  %v811_v62 = vadd.f32 %v2238_v50, %v787_v49 }
 0x251   : > { %v825_v61 = vmax.f32 %v809_v54, 0.0  ;;  %v882_v63 = vsel %vm851_vm2, %v845_v56, 0.0  ;;  %v847_v0 = vmul.f32 %v3466_v46, %v824_v57 }
 0x252   : > { %868 = vadd.xlane.f32.xlu1 %v867_v39  ;;  %v826_v1 = vmax.f32 %v810_v58, 0.0  ;;  %v885_v2 = vsel %vm851_vm2, %v846_v60, 0.0  ;;  %v827_v4 = vmax.f32 %v811_v62, 0.0 }
 0x253   : > { %v848_v3 = vmul.f32 %v3466_v46, %v825_v61  ;;  %v888_v5 = vsel %vm851_vm2, %v847_v0, 0.0 }
 0x254   : > { %877 = vadd.xlane.f32.xlu0 %v876_v43  ;;  %v849_v6 = vmul.f32 %v3466_v46, %v826_v1  ;;  %v850_v8 = vmul.f32 %v3466_v46, %v827_v4  ;;  %v917_v46 = vand.u32 127, %v599_v9 }
 0x255   : > { %v891_v7 = vsel %vm851_vm2, %v848_v3, 0.0  ;;  %v3593_v3 = vsub.s32 1, %v3449_v10 }
 0x256   : > { %880 = vadd.xlane.f32.xlu1 %v879_v51  ;;  %v894_v11 = vsel %vm851_vm2, %v849_v6, 0.0  ;;  %v897_v12 = vsel %vm851_vm2, %v850_v8, 0.0  ;;  %v922_v23 = vadd.s32 4294967288, %v917_v46  ;;  %v3530_v28 = vsub.s32 %v917_v46, %v3449_v10 }
 0x258   : > { %871 = vadd.xlane.f32.xlu0 %v870_v55  ;;  %v3525_v26 = vsub.s32 %v922_v23, %v3449_v10  ;;  %v3607_v23 = vsub.s32 6, %v3449_v10 }
 0x25a   : > { %874 = vadd.xlane.f32.xlu1 %v873_v59 }
 0x25c   : > { %883 = vadd.xlane.f32.xlu0 %v882_v63 }
 0x25e   : > { %886 = vadd.xlane.f32.xlu1 %v885_v2 }
 0x260   : > { %889 = vadd.xlane.f32.xlu0 %v888_v5 }
 0x262   : > { %892 = vadd.xlane.f32.xlu1 %v891_v7  ;;  %v3598_v7 = vsub.s32 5, %v3449_v10 }
 0x264   : > { %895 = vadd.xlane.f32.xlu0 %v894_v11 }
 0x266   : > { %898 = vadd.xlane.f32.xlu1 %v897_v12  ;;  %v3603_v12 = vsub.s32 2, %v3449_v10 }
 0x2d5   : > { %v3505_v14 = vpop.xlane.xlu0 %853 }
 0x2d6   : > { %v921_v36 = vrot.slane %v3505_v14, %v3530_v28 }
 0x2d7   : > { %v3507_v15 = vpop.xlane.xlu1 %859 }
 0x2d8   : > { %v932_v31 = vrot.slane %v3507_v15, %v3530_v28 }
 0x2d9   : > { %v3509_v16 = vpop.xlane.xlu0 %856 }
 0x2da   : > { %v926_v32 = vrot.slane %v3509_v16, %v3525_v26 }
 0x2db   : > { %v3511_v18 = vpop.xlane.xlu1 %862 }
 0x2dc   : > { %v936_v29 = vrot.slane %v3511_v18, %v3525_v26  ;;  %v928_v41 = vsel %vm927_vm3, %v926_v32, %v921_v36  ;;  %v3623_v36 = vsub.s32 3, %v3449_v10 }
 0x2dd   : > { %v3513_v21 = vpop.xlane.xlu0 %865 }
 0x2de   : > { %v941_v34 = vrot.slane %v3513_v21, %v3530_v28  ;;  %v937_v37 = vsel %vm927_vm3, %v936_v29, %v932_v31 }
 0x2df   : > { %v3515_v22 = vpop.xlane.xlu1 %868  ;;  %v993_v44 = vsel %vm992_vm4, %v937_v37, %v928_v41 }
 0x2e0   : > { %v945_v9 = vrot.slane %v3515_v22, %v3525_v26 }
 0x2e1   : > { %v3518_v17 = vpop.xlane.xlu0 %877 }
 0x2e2   : > { %v946_v39 = vsel %vm927_vm3, %v945_v9, %v941_v34  ;;  %v959_v51 = vrot.slane %v3518_v17, %v3530_v28 }
 0x2e3   : > { %v3520_v24 = vpop.xlane.xlu1 %880  ;;  %v995_v48 = vsel %vm994_vm5, %v946_v39, %v993_v44 }
 0x2e4   : > { %v963_v45 = vrot.slane %v3520_v24, %v3525_v26 }
 0x2e5   : > { %v3522_v25 = vpop.xlane.xlu0 %871 }
 0x2e6   : > { %v950_v38 = vrot.slane %v3522_v25, %v3530_v28  ;;  %v964_v56 = vsel %vm927_vm3, %v963_v45, %v959_v51 }
 0x2e7   : > { %v3527_v27 = vpop.xlane.xlu1 %874 }
 0x2e8   : > { %v954_v33 = vrot.slane %v3527_v27, %v3525_v26 }
 0x2e9   : > { %v3536_v30 = vpop.xlane.xlu0 %883 }
 0x2ea   : > { %v955_v42 = vsel %vm927_vm3, %v954_v33, %v950_v38  ;;  %v968_v49 = vrot.slane %v3536_v30, %v3530_v28 }
 0x2eb   : > { %v3546_v35 = vpop.xlane.xlu1 %886  ;;  %v997_v52 = vsel %vm996_vm6, %v955_v42, %v995_v48 }
 0x2ec   : > { %v972_v43 = vrot.slane %v3546_v35, %v3525_v26  ;;  %v999_v61 = vsel %vm998_vm7, %v964_v56, %v997_v52 }
 0x2ed   : > { %v3554_v40 = vpop.xlane.xlu0 %889 }
 0x2ee   : > { %v977_v53 = vrot.slane %v3554_v40, %v3530_v28  ;;  %v973_v55 = vsel %vm927_vm3, %v972_v43, %v968_v49  ;;  %v3638_v49 = vsub.s32 4, %v3449_v10 }
 0x2ef   : > { %v3563_v47 = vpop.xlane.xlu1 %892  ;;  %v1001_v62 = vsel %vm1000_vm8, %v973_v55, %v999_v61 }
 0x2f0   : > { %v981_v50 = vrot.slane %v3563_v47, %v3525_v26 }
 0x2f1   : > { %v3575_v54 = vpop.xlane.xlu0 %895 }
 0x2f2   : > { %v982_v58 = vsel %vm927_vm3, %v981_v50, %v977_v53  ;;  %v986_v59 = vrot.slane %v3575_v54, %v3530_v28 }
 0x2f3   : > { %v3579_v57 = vpop.xlane.xlu1 %898  ;;  %v1003_v0 = vsel %vm1002_vm9, %v982_v58, %v1001_v62 }
 0x2f4   : > { %v990_v60 = vrot.slane %v3579_v57, %v3525_v26 }
 0x2f6   : > { %v991_v63 = vsel %vm927_vm3, %v990_v60, %v986_v59 }
 0x2f7   : > { %v1005_v1 = vsel %vm1004_vm10, %v991_v63, %v1003_v0 }
 0x2f8   : > { %v1008_v2 = vsel %vm1007_vm11, %v1005_v1, -inf }
 0x2f9   : > { %1009 = vmax.xlane.f32.xlu0 %v1008_v2 }
 0x386   : > { %v1010_v4 = vpop.xlane.xlu0 %1009 }
 0x387   : > { %v1015_v5 = vrot.slane %v1010_v4, %v3452_v13  ;;  %v1019_v6 = vrot.slane %v1010_v4, %v3593_v3  ;;  %v3610_v29 = vrot.slane %v1010_v4, %v3598_v7  ;;  %v1023_v32 = vrot.slane %v1010_v4, %v3603_v12 }
 0x388   : > { %v1027_v42 = vrot.slane %v1010_v4, %v3623_v36  ;;  %v1031_v52 = vrot.slane %v1010_v4, %v3638_v49 }
 0x389   : > { %v1052_v8 = vsub.f32 %v3505_v14, %v1015_v5  ;;  %v1053_v11 = vsub.f32 %v3509_v16, %v1015_v5  ;;  %v1054_v46 = vsub.f32 %v3507_v15, %v1019_v6  ;;  %v1055_v33 = vsub.f32 %v3511_v18, %v1019_v6 }
 0x38a   : > { %v3615_v16 = vsub.s32 7, %v3449_v10  ;;  %v3618_v15 = vrot.slane %v1010_v4, %v3607_v23  ;;  %v1062_v34 = vsub.f32 %v3536_v30, %v3610_v29  ;;  %v1056_v37 = vsub.f32 %v3513_v21, %v1023_v32 }
 0x38b   : > { %v1068_v9 = vmul.f32 1.442695, %v1052_v8  ;;  %v1070_v31 = vmul.f32 1.442695, %v1053_v11  ;;  %v1072_v14 = vmul.f32 1.442695, %v1054_v46  ;;  %v1057_v43 = vsub.f32 %v3515_v22, %v1023_v32 }
 0x38c   : > { %v1074_v38 = vmul.f32 1.442695, %v1055_v33  ;;  %v1043_v18 = vrot.slane %v1010_v4, %v3615_v16  ;;  %v1064_v39 = vsub.f32 %v3554_v40, %v3618_v15  ;;  %v1088_v41 = vmul.f32 1.442695, %v1062_v34 }
 0x38d   : > { %2482 = vpow2.f32 %v1068_v9  ;;  %v1076_v44 = vmul.f32 1.442695, %v1056_v37  ;;  %v1058_v40 = vsub.f32 %v3522_v25, %v1027_v42  ;;  %v1078_v50 = vmul.f32 1.442695, %v1057_v43 }
 0x38e   : > { %2484 = vpow2.f32 %v1070_v31  ;;  %v1066_v45 = vsub.f32 %v3575_v54, %v1043_v18  ;;  %v1092_v21 = vmul.f32 1.442695, %v1064_v39  ;;  %v1059_v53 = vsub.f32 %v3527_v27, %v1027_v42 }
 0x38f   : > { %2486 = vpow2.f32 %v1072_v14  ;;  %v1080_v54 = vmul.f32 1.442695, %v1058_v40  ;;  %v1060_v55 = vsub.f32 %v3518_v17, %v1031_v52  ;;  %v1061_v59 = vsub.f32 %v3520_v24, %v1031_v52 }
 0x390   : > { %2488 = vpow2.f32 %v1074_v38  ;;  %v1096_v51 = vmul.f32 1.442695, %v1066_v45  ;;  %v1082_v56 = vmul.f32 1.442695, %v1059_v53  ;;  %v1063_v62 = vsub.f32 %v3546_v35, %v3610_v29 }
 0x391   : > { %2490 = vpow2.f32 %v1088_v41  ;;  %v1084_v60 = vmul.f32 1.442695, %v1060_v55  ;;  %v1086_v63 = vmul.f32 1.442695, %v1061_v59  ;;  %v1065_v24 = vsub.f32 %v3563_v47, %v3618_v15 }
 0x392   : > { %2492 = vpow2.f32 %v1076_v44  ;;  %v1090_v1 = vmul.f32 1.442695, %v1063_v62  ;;  %v1067_v4 = vsub.f32 %v3579_v57, %v1043_v18 }
 0x393   : > { %2494 = vpow2.f32 %v1092_v21  ;;  %v1094_v35 = vmul.f32 1.442695, %v1065_v24 }
 0x394   : > { %2496 = vpow2.f32 %v1078_v50  ;;  %v1098_v6 = vmul.f32 1.442695, %v1067_v4 }
 0x395   : > { %2498 = vpow2.f32 %v1096_v51 }
 0x396   : > { %2500 = vpow2.f32 %v1080_v54 }
 0x397   : > { %v3631_v30 = vpop.eup %2482  ;;  %2502 = vpow2.f32 %v1082_v56 }
 0x398   : > { %v3634_v48 = vpop.eup %2484  ;;  %1117 = vperm.xlu1 %2471, %v3631_v30   ;;  %2504 = vpow2.f32 %v1084_v60 }
 0x399   : > { %1120 = vperm.xlu0 %2472, %v3634_v48   ;;  %v3642_v22 = vpop.eup %2486  ;;  %2506 = vpow2.f32 %v1086_v63 }
 0x39a   : > { %v3647_v10 = vpop.eup %2488  ;;  %2508 = vpow2.f32 %v1090_v1 }
 0x39b   : > { %v3650_v25 = vpop.eup %2490  ;;  %2510 = vpow2.f32 %v1094_v35 }
 0x39c   : > { %1123 = vperm.xlu1 %2471, %v3642_v22   ;;  %v3654_v58 = vpop.eup %2492  ;;  %2512 = vpow2.f32 %v1098_v6 }
 0x39d   : > { %1147 = vperm.xlu0 %2472, %v3650_v25   ;;  %v3657_v27 = vpop.eup %2494 }
 0x39e   : > { %v3661_v61 = vpop.eup %2496 }
 0x39f   : > { %v3664_v17 = vpop.eup %2498 }
 0x3a0   : > { %1126 = vperm.xlu1 %2471, %v3647_v10   ;;  %v3669_v0 = vpop.eup %2500 }
 0x3a1   : > { %1153 = vperm.xlu0 %2472, %v3657_v27   ;;  %v3674_v2 = vpop.eup %2502 }
 0x3a2   : > { %v3678_v5 = vpop.eup %2504 }
 0x3a3   : > { %v3681_v8 = vpop.eup %2506 }
 0x3a4   : > { %1129 = vperm.xlu1 %2471, %v3654_v58   ;;  %v3684_v47 = vpop.eup %2508 }
 0x3a5   : > { %1159 = vperm.xlu0 %2472, %v3664_v17   ;;  %v3687_v11 = vpop.eup %2510 }
 0x3a6   : > { %v3690_v57 = vpop.eup %2512 }
 0x3a8   : > { %1132 = vperm.xlu1 %2471, %v3661_v61  }
 0x3ac   : > { %1135 = vperm.xlu1 %2471, %v3669_v0  }
 0x3b0   : > { %1138 = vperm.xlu1 %2471, %v3674_v2  }
 0x3b4   : > { %1141 = vperm.xlu1 %2471, %v3678_v5  }
 0x3b8   : > { %1144 = vperm.xlu1 %2471, %v3681_v8  }
 0x3bc   : > { %1150 = vperm.xlu1 %2471, %v3684_v47  }
 0x3c0   : > { %1156 = vperm.xlu1 %2471, %v3687_v11  }
 0x3c4   : > { %1162 = vperm.xlu1 %2471, %v3690_v57  }
 0x417   : > { %v1118_v46 = vpop.permute.xlu1 %1117 }
 0x418   : > { %v1121_v14 = vpop.permute.xlu0 %1120  ;;  %v1167_v44 = vrot.slane %v1118_v46, %v3530_v28 }
 0x419   : > { %v1171_v43 = vrot.slane %v1121_v14, %v3525_v26 }
 0x41b   : > { %v1124_v29 = vpop.permute.xlu1 %1123  ;;  %v1172_v59 = vsel %vm927_vm3, %v1171_v43, %v1167_v44 }
 0x41c   : > { %v1148_v37 = vpop.permute.xlu0 %1147  ;;  %v1176_v45 = vrot.slane %v1124_v29, %v3530_v28 }
 0x41d   : > { %v1212_v60 = vrot.slane %v1148_v37, %v3530_v28 }
 0x41f   : > { %v1127_v9 = vpop.permute.xlu1 %1126 }
 0x420   : > { %v1180_v18 = vrot.slane %v1127_v9, %v3525_v26  ;;  %v1154_v39 = vpop.permute.xlu0 %1153 }
 0x421   : > { %v1221_v24 = vrot.slane %v1154_v39, %v3530_v28  ;;  %v2479_v39 = vld [vmem:[#allocation19] sm:$0xff]  }
 0x422   : > { %v1181_v51 = vsel %vm927_vm3, %v1180_v18, %v1176_v45 }
 0x423   : > { %v1130_v31 = vpop.permute.xlu1 %1129  ;;  %v1236_v1 = vsel %vm992_vm4, %v1181_v51, %v1172_v59 }
 0x424   : > { %v1185_v40 = vrot.slane %v1130_v31, %v3530_v28  ;;  %v1160_v4 = vpop.permute.xlu0 %1159 }
 0x427   : > { %v1133_v32 = vpop.permute.xlu1 %1132 }
 0x428   : > { %v1189_v41 = vrot.slane %v1133_v32, %v3525_v26  ;;  %v1230_v32 = vrot.slane %v1160_v4, %v3530_v28 }
 0x42a   : > { %v1190_v54 = vsel %vm927_vm3, %v1189_v41, %v1185_v40  ;;  %v1530_v41 = vld [vmem:[%s3418_s29] sm:$0xff]  ;;  %s1955_s29 = sshll.u32 %s3443_s11, 4  ;;  %s3909_s29 = int_to_ptr.vmem [resolvable:$true] %s1955_s29 }
 0x42b   : > { %v1136_v33 = vpop.permute.xlu1 %1135  ;;  %v1237_v6 = vsel %vm994_vm5, %v1190_v54, %v1236_v1  ;;  %v1531_v43 = vpack.c.bf16 %v1530_v41, %v1530_v41 }
 0x42c   : > { %v1194_v52 = vrot.slane %v1136_v33, %v3530_v28 }
 0x42f   : > { %v1139_v15 = vpop.permute.xlu1 %1138 }
 0x430   : > { %v1198_v21 = vrot.slane %v1139_v15, %v3525_v26 }
 0x432   : > { %v1199_v62 = vsel %vm927_vm3, %v1198_v21, %v1194_v52 }
 0x433   : > { %v1142_v34 = vpop.permute.xlu1 %1141  ;;  %v1238_v29 = vsel %vm996_vm6, %v1199_v62, %v1237_v6 }
 0x434   : > { %v1203_v55 = vrot.slane %v1142_v34, %v3530_v28 }
 0x437   : > { %v1145_v38 = vpop.permute.xlu1 %1144 }
 0x438   : > { %v1207_v50 = vrot.slane %v1145_v38, %v3525_v26 }
 0x43a   : > { %v1208_v35 = vsel %vm927_vm3, %v1207_v50, %v1203_v55 }
 0x43b   : > { %v1151_v42 = vpop.permute.xlu1 %1150  ;;  %v1239_v33 = vsel %vm998_vm7, %v1208_v35, %v1238_v29 }
 0x43c   : > { %v1216_v53 = vrot.slane %v1151_v42, %v3525_v26  ;;  %v4009_v42 = vmov 0.0  }
 0x43d   : > { %2290 = vmatprep.subr.bf16.mxu1 %v4009_v42  ;;  %2292 = vmatprep.mubr.msk.bf16.mxu1 %vm2987_vm12, %v4009_v42 }
 0x43e   : > { %v1217_v46 = vsel %vm927_vm3, %v1216_v53, %v1212_v60  ;;  %2291 = vmatpush3.bf16.msra.mxu1 %v2479_v39 }
 0x43f   : > { %v1157_v56 = vpop.permute.xlu1 %1156  ;;  %v1240_v15 = vsel %vm1000_vm8, %v1217_v46, %v1239_v33  ;;  %2296 = vmatprep.subr.bf16.mxu1 %v4009_v42  ;;  %v2240_v33 = vld [vmem:[#allocation7] sm:$0xff]  }
 0x440   : > { %v1225_v63 = vrot.slane %v1157_v56, %v3525_v26  ;;  %v2241_v41 = vunpack.c.l.bf16 %v2240_v33 }
 0x441   : > { %2293 = vmatmul.mubr.msk.bf16.vlgmr.msra.gmra.mrb[0].mxu1 %vm1007_vm11, %v1531_v43 }
 0x442   : > { %v1226_v9 = vsel %vm927_vm3, %v1225_v63, %v1221_v24  ;;  %2300 = vmatprep.mubr.msk.bf16.mxu1 %vm2987_vm12, %v4009_v42 }
 0x443   : > { %v1163_v31 = vpop.permute.xlu1 %1162  ;;  %v1241_v37 = vsel %vm1002_vm9, %v1226_v9, %v1240_v15  ;;  %v2281_v15 = vld [vmem:[#allocation7 + $0x20] sm:$0xff]  }
 0x444   : > { %v1234_v14 = vrot.slane %v1163_v31, %v3525_v26 }
 0x446   : > { %v1235_v34 = vsel %vm927_vm3, %v1234_v14, %v1230_v32  ;;  %v2279_v32 = vld [vmem:[#allocation7 + $0x10] sm:$0xff]   ;;  %v2280_v14 = vld [vmem:[#allocation7 + $0x18] sm:$0xff]  }
 0x447   : > { %v1242_v38 = vsel %vm1004_vm10, %v1235_v34, %v1241_v37  ;;  %v2242_v34 = vunpack.c.h.bf16 %v2240_v33 }
 0x448   : > { %v1244_v18 = vsel %vm1007_vm11, %v1242_v38, 0.0  ;;  %v2254_v38 = vunpack.c.h.bf16 %v2280_v14 }
 0x449   : > { %1245 = vadd.xlane.f32.xlu0 %v1244_v18  ;;  %v2249_v18 = vunpack.c.l.bf16 %v2279_v32 }
 0x4d6   : > { %v1246_v44 = vpop.xlane.xlu0 %1245 }
 0x4d7   : > { %2514 = vrcp.f32 %v1246_v44  ;;  %v2253_v44 = vunpack.c.l.bf16 %v2280_v14 }
 0x4e1   : > { %v2515_v45 = vpop.eup %2514 }
 0x4e2   : > { %v1268_v21 = vrot.slane %v2515_v45, %v3638_v49  ;;  %v1252_v40 = vrot.slane %v2515_v45, %v3452_v13  ;;  %v1280_v52 = vrot.slane %v2515_v45, %v3615_v16  ;;  %v1256_v55 = vrot.slane %v2515_v45, %v3593_v3 }
 0x4e4   : > { %v3734_v50 = vmul.f32 %v3678_v5, %v1268_v21  ;;  %v3737_v51 = vmul.f32 %v3631_v30, %v1252_v40  ;;  %v3743_v53 = vmul.f32 %v3664_v17, %v1280_v52  ;;  %v3746_v54 = vmul.f32 %v3634_v48, %v1252_v40 }
 0x4e5   : > { %v3752_v30 = vmul.f32 %v3642_v22, %v1256_v55  ;;  %v3756_v5 = vmul.f32 %v3647_v10, %v1256_v55  ;;  %v1260_v17 = vrot.slane %v2515_v45, %v3603_v12  ;;  %v1264_v22 = vrot.slane %v2515_v45, %v3623_v36 }
 0x4e6   : > { %1379 = vperm.xlu0 %2472, %v3734_v50   ;;  %1339 = vperm.xlu1 %2471, %v3737_v51  }
 0x4e7   : > { %v3761_v48 = vmul.f32 %v3654_v58, %v1260_v17  ;;  %v3765_v56 = vmul.f32 %v3661_v61, %v1260_v17  ;;  %v3770_v59 = vmul.f32 %v3669_v0, %v1264_v22  ;;  %v3774_v10 = vmul.f32 %v3674_v2, %v1264_v22 }
 0x4e8   : > { %v3778_v58 = vmul.f32 %v3681_v8, %v1268_v21  ;;  %v1272_v61 = vrot.slane %v2515_v45, %v3598_v7  ;;  %v1276_v2 = vrot.slane %v2515_v45, %v3607_v23  ;;  %v2258_v45 = vunpack.c.h.bf16 %v2281_v15 }
 0x4e9   : > { %v2257_v21 = vunpack.c.l.bf16 %v2281_v15 }
 0x4ea   : > { %1409 = vperm.xlu0 %2472, %v3743_v53   ;;  %1344 = vperm.xlu1 %2471, %v3746_v54   ;;  %v3783_v60 = vmul.f32 %v3650_v25, %v1272_v61  ;;  %v3787_v0 = vmul.f32 %v3684_v47, %v1272_v61  ;;  %v3792_v62 = vmul.f32 %v3657_v27, %v1276_v2 }
 0x4eb   : > { %v3796_v8 = vmul.f32 %v3687_v11, %v1276_v2  ;;  %v3800_v25 = vmul.f32 %v3690_v57, %v1280_v52  ;;  %v2278_v11 = vld [vmem:[#allocation7 + $0x8] sm:$0xff]   ;;  %v2250_v57 = vunpack.c.h.bf16 %v2279_v32 }
 0x4ec   : > { %v2246_v31 = vunpack.c.h.bf16 %v2278_v11  ;;  %v2245_v37 = vunpack.c.l.bf16 %v2278_v11 }
 0x4ee   : > { %1349 = vperm.xlu1 %2471, %v3752_v30  }
 0x4f2   : > { %1354 = vperm.xlu1 %2471, %v3756_v5  }
 0x4f6   : > { %1359 = vperm.xlu1 %2471, %v3761_v48  }
 0x4fa   : > { %1364 = vperm.xlu1 %2471, %v3765_v56  }
 0x4fe   : > { %1369 = vperm.xlu1 %2471, %v3770_v59  }
 0x502   : > { %1374 = vperm.xlu1 %2471, %v3774_v10  }
 0x506   : > { %1384 = vperm.xlu1 %2471, %v3778_v58  }
 0x50a   : > { %1389 = vperm.xlu1 %2471, %v3783_v60  }
 0x50e   : > { %1394 = vperm.xlu1 %2471, %v3787_v0  }
 0x512   : > { %1399 = vperm.xlu1 %2471, %v3792_v62  }
 0x514   : > { %v3803_v47 = vpop.f32.mrb[0].mxu1 }
 0x515   : > { %v2294_v63 = vpop.f32.mrb[1].mxu1 }
 0x516   : > { %1404 = vperm.xlu1 %2471, %v3796_v8   ;;  %v1580_v24 = vpop.f32.mrb[2].mxu1  ;;  %v2282_v63 = vld [vmem:[#allocation7 + $0x28] sm:$0xff]  }
 0x517   : > { %v2295_v1 = vpop.f32.mrb[3].mxu1 }
 0x51a   : > { %1414 = vperm.xlu1 %2471, %v3800_v25  }
 0x565   : > { %v1340_v4 = vpop.permute.xlu1 %1339  ;;  %v1380_v52 = vpop.permute.xlu0 %1379 }
 0x566   : > { %v1417_v24 = vmul.f32 %v2241_v41, %v1340_v4  ;;  %v1425_v32 = vmul.f32 %v2257_v21, %v1380_v52 }
 0x568   : > { %v1433_v14 = vsel %vm629_vm1, %v1417_v24, 0.0 }
 0x569   : > { %v1345_v27 = vpop.permute.xlu1 %1344 }
 0x56a   : > { %v1418_v55 = vmul.f32 %v2242_v34, %v1345_v27  ;;  %v2261_v27 = vunpack.c.l.bf16 %v2282_v63  ;;  %v2262_v34 = vunpack.c.h.bf16 %v2282_v63 }
 0x56d   : > { %v1350_v35 = vpop.permute.xlu1 %1349 }
 0x56e   : > { %v1419_v17 = vmul.f32 %v2245_v37, %v1350_v35  ;;  %v1469_v37 = vsel %vm629_vm1, %v1425_v32, 0.0 }
 0x571   : > { %v1355_v6 = vpop.permute.xlu1 %1354 }
 0x572   : > { %v1420_v43 = vmul.f32 %v2246_v31, %v1355_v6  ;;  %v1434_v6 = vsel %vm629_vm1, %v1418_v55, 0.0  ;;  %v1442_v31 = vsel %vm629_vm1, %v1419_v17, 0.0 }
 0x574   : > { %v1443_v1 = vsel %vm629_vm1, %v1420_v43, 0.0 }
 0x575   : > { %v1360_v46 = vpop.permute.xlu1 %1359  ;;  %v1444_v35 = vadd.f32 %v1443_v1, %v1442_v31 }
 0x576   : > { %v1421_v61 = vmul.f32 %v2249_v18, %v1360_v46 }
 0x577   : > { %v1445_v43 = vrot.slane %v1444_v35, 4 }
 0x578   : > { %v1451_v46 = vsel %vm629_vm1, %v1421_v61, 0.0 }
 0x579   : > { %v1365_v29 = vpop.permute.xlu1 %1364  ;;  %v1446_v63 = vadd.f32 %v1445_v43, %v1444_v35 }
 0x57a   : > { %v1422_v40 = vmul.f32 %v2250_v57, %v1365_v29 }
 0x57c   : > { %v1452_v33 = vsel %vm629_vm1, %v1422_v40, 0.0 }
 0x57d   : > { %v1370_v9 = vpop.permute.xlu1 %1369 }
 0x57e   : > { %v1423_v11 = vmul.f32 %v2253_v44, %v1370_v9  ;;  %v1453_v9 = vadd.f32 %v1452_v33, %v1451_v46 }
 0x580   : > { %v1460_v15 = vsel %vm629_vm1, %v1423_v11, 0.0  ;;  %v1454_v21 = vrot.slane %v1453_v9, 4 }
 0x581   : > { %v1375_v39 = vpop.permute.xlu1 %1374 }
 0x582   : > { %v1424_v22 = vmul.f32 %v2254_v38, %v1375_v39  ;;  %v1435_v38 = vadd.f32 %v1434_v6, %v1433_v14  ;;  %v1455_v11 = vadd.f32 %v1454_v21, %v1453_v9 }
 0x584   : > { %v1461_v29 = vsel %vm629_vm1, %v1424_v22, 0.0  ;;  %v1436_v52 = vrot.slane %v1435_v38, 4 }
 0x585   : > { %v1385_v2 = vpop.permute.xlu1 %1384  ;;  %v1462_v18 = vadd.f32 %v1461_v29, %v1460_v15 }
 0x586   : > { %v1426_v42 = vmul.f32 %v2258_v45, %v1385_v2  ;;  %v2283_v45 = vld [vmem:[#allocation7 + $0x30] sm:$0xff]   ;;  %v2284_v2 = vld [vmem:[#allocation7 + $0x38] sm:$0xff]   ;;  %v1437_v33 = vadd.f32 %v1436_v52, %v1435_v38 }
 0x587   : > { %v2265_v61 = vunpack.c.l.bf16 %v2283_v45  ;;  %v2266_v32 = vunpack.c.h.bf16 %v2283_v45  ;;  %v2269_v29 = vunpack.c.l.bf16 %v2284_v2 }
 0x588   : > { %v1470_v57 = vsel %vm629_vm1, %v1426_v42, 0.0  ;;  %v1463_v42 = vrot.slane %v1462_v18, 4 }
 0x589   : > { %v1390_v4 = vpop.permute.xlu1 %1389  ;;  %v1471_v39 = vadd.f32 %v1470_v57, %v1469_v37  ;;  %v1410_v57 = vpop.permute.xlu0 %1409 }
 0x58a   : > { %v1427_v41 = vmul.f32 %v2261_v27, %v1390_v4  ;;  %v1464_v6 = vadd.f32 %v1463_v42, %v1462_v18  ;;  %v1447_v4 = vrot.slane %v1446_v63, 2  ;;  %v1431_v35 = vmul.f32 %v2269_v29, %v1410_v57 }
 0x58b   : > { %v1472_v55 = vrot.slane %v1471_v39, 4 }
 0x58c   : > { %v1478_v17 = vsel %vm629_vm1, %v1427_v41, 0.0  ;;  %v2270_v41 = vunpack.c.h.bf16 %v2284_v2  ;;  %v1448_v18 = vadd.f32 %v1447_v4, %v1446_v63 }
 0x58d   : > { %v1395_v44 = vpop.permute.xlu1 %1394  ;;  %v1473_v27 = vadd.f32 %v1472_v55, %v1471_v39 }
 0x58e   : > { %v1428_v40 = vmul.f32 %v2262_v34, %v1395_v44  ;;  %v1456_v34 = vrot.slane %v1455_v11, 2  ;;  %v1438_v44 = vrot.slane %v1437_v33, 2 }
 0x58f   : > { %v1474_v43 = vrot.slane %v1473_v27, 2 }
 0x590   : > { %v1479_v22 = vsel %vm629_vm1, %v1428_v40, 0.0  ;;  %v1465_v40 = vrot.slane %v1464_v6, 2  ;;  %v1457_v52 = vadd.f32 %v1456_v34, %v1455_v11  ;;  %v1439_v55 = vadd.f32 %v1438_v44, %v1437_v33 }
 0x591   : > { %v1480_v24 = vadd.f32 %v1479_v22, %v1478_v17  ;;  %v1400_v1 = vpop.permute.xlu1 %1399  ;;  %v1475_v2 = vadd.f32 %v1474_v43, %v1473_v27  ;;  %v2480_v43 = vld [vmem:[#allocation21] sm:$0xff]  }
 0x592   : > { %v1429_v46 = vmul.f32 %v2265_v61, %v1400_v1  ;;  %v1466_v17 = vadd.f32 %v1465_v40, %v1464_v6  ;;  %v1496_v61 = vsel %vm629_vm1, %v1431_v35, 0.0  ;;  %v1449_v1 = vrot.slane %v1448_v18, 1  ;;  %2297 = vmatpush3.bf16.msra.mxu1 %v2480_v43 }
 0x593   : > { %v1481_v31 = vrot.slane %v1480_v24, 4  ;;  %v1440_v57 = vrot.slane %v1439_v55, 1 }
 0x594   : > { %v1487_v9 = vsel %vm629_vm1, %v1429_v46, 0.0  ;;  %v1458_v46 = vrot.slane %v1457_v52, 1  ;;  %v1467_v63 = vrot.slane %v1466_v17, 1  ;;  %v1450_v11 = vadd.f32 %v1449_v1, %v1448_v18 }
 0x595   : > { %v1482_v14 = vadd.f32 %v1481_v31, %v1480_v24  ;;  %v1405_v15 = vpop.permute.xlu1 %1404  ;;  %v1441_v44 = vadd.f32 %v1440_v57, %v1439_v55  ;;  %v4048_v18 = vmov 0.0   ;;  %v2191_v1 = vmul.f32 -1.442695, %v3456_v19 }
 0x596   : > { %v1430_v37 = vmul.f32 %v2266_v32, %v1405_v15  ;;  %v1468_v40 = vadd.f32 %v1467_v63, %v1466_v17  ;;  %2298 = vmatprep.subr.bf16.mxu1 %v4048_v18 }
 0x597   : > { %v1483_v45 = vrot.slane %v1482_v14, 2  ;;  %2516 = vpow2.f32 %v2191_v1 }
 0x598   : > { %v1488_v38 = vsel %vm629_vm1, %v1430_v37, 0.0  ;;  %v1476_v37 = vrot.slane %v1475_v2, 1 }
 0x599   : > { %v1489_v21 = vadd.f32 %v1488_v38, %v1487_v9  ;;  %v1415_v39 = vpop.permute.xlu1 %1414  ;;  %v1484_v32 = vadd.f32 %v1483_v45, %v1482_v14  ;;  %v1519_v14 = vsel %vm992_vm4, %v1450_v11, %v1441_v44 }
 0x59a   : > { %v1432_v42 = vmul.f32 %v2270_v41, %v1415_v39  ;;  %v1459_v41 = vadd.f32 %v1458_v46, %v1457_v52  ;;  %v1477_v9 = vadd.f32 %v1476_v37, %v1475_v2 }
 0x59b   : > { %v1490_v22 = vrot.slane %v1489_v21, 4  ;;  %v1485_v34 = vrot.slane %v1484_v32, 1 }
 0x59c   : > { %v1497_v24 = vsel %vm629_vm1, %v1432_v42, 0.0  ;;  %v1520_v42 = vsel %vm994_vm5, %v1459_v41, %v1519_v14  ;;  %v585_v14 = vld [vmem:[#allocation4] sm:$0xff] }
 0x59d   : > { %v1491_v31 = vadd.f32 %v1490_v22, %v1489_v21  ;;  %v1498_v29 = vadd.f32 %v1497_v24, %v1496_v61  ;;  %v1486_v38 = vadd.f32 %v1485_v34, %v1484_v32  ;;  %v2481_v21 = vld [vmem:[#allocation21 + $0x8] sm:$0xff]   ;;  %v1521_v52 = vsel %vm996_vm6, %v1468_v40, %v1520_v42  ;;  %v2534_v34 = vld [vmem:[#allocation16] sm:$0x3] }
 0x59e   : > { %v1522_v55 = vsel %vm998_vm7, %v1477_v9, %v1521_v52  ;;  %2299 = vmatpush3.bf16.msra.mxu1 %v2481_v21 }
 0x59f   : > { %v1492_v4 = vrot.slane %v1491_v31, 2  ;;  %v1499_v15 = vrot.slane %v1498_v29, 4  ;;  %v1523_v61 = vsel %vm1000_vm8, %v1486_v38, %v1522_v55  ;;  %v586_v38 = vstv %s3083_s27 }
 0x5a0   : > { %vm587_vm13 = vcmp.gt.s32.totalorder %v585_v14, %v586_v38 }
 0x5a1   : > { %v1493_v33 = vadd.f32 %v1492_v4, %v1491_v31  ;;  %v1500_v6 = vadd.f32 %v1499_v15, %v1498_v29  ;;  %v2517_v32 = vpop.eup %2516 }
 0x5a2   : > { %v1508_v31 = vadd.f32 1.0, %v2517_v32 }
 0x5a3   : > { %v1494_v27 = vrot.slane %v1493_v33, 1  ;;  %v1501_v35 = vrot.slane %v1500_v6, 2 }
 0x5a4   : > { %2518 = vrcp.f32 %v1508_v31 }
 0x5a5   : > { %v1502_v45 = vadd.f32 %v1501_v35, %v1500_v6  ;;  %v1495_v39 = vadd.f32 %v1494_v27, %v1493_v33  ;;  %v606_v33 = vrot.slane %v2534_v34, %v3593_v3 }
 0x5a7   : > { %v1503_v22 = vrot.slane %v1502_v45, 1  ;;  %v1524_v2 = vsel %vm1002_vm9, %v1495_v39, %v1523_v61  ;;  %v670_v41 = vadd.f32 %v3458_v20, %v606_v33  ;;  %v591_v20 = vld [vmem:[#allocation3] sm:$0xff] }
 0x5a9   : > { %v1504_v17 = vadd.f32 %v1503_v22, %v1502_v45 }
 0x5ab   : > { %v1525_v24 = vsel %vm1004_vm10, %v1504_v17, %v1524_v2 }
 0x5ac   : > { %1526 = vrot.lane.b32.xlu0 %v1525_v24, %s2988_s14 }
 0x5ae   : > { %v2519_v29 = vpop.eup %2518 }
 0x5b0   : > { %1584 = vrot.lane.b32.xlu0 %v3803_v47, %s2989_s13 }
 0x61e   : > { %v1527_v46 = vpop.permute.xlu0 %1526 }
 0x61f   : > { %v1529_v57 = vmul.f32 %v2519_v29, %v1527_v46 }
 0x621   : > { %v1589_v63 = vpack.c.bf16 %v1529_v57, %v1529_v57 }
 0x622   : > { %v1585_v6 = vpop.permute.xlu0 %1584 }
 0x623   : > { %1595 = vrot.lane.b32.xlu1 %v1589_v63, %s2990_s20  ;;  %v1587_v44 = vadd.f32 %v1585_v6, %v3456_v19  ;;  %v1588_v40 = vadd.f32 %v1585_v6, %v670_v41  ;;  %v2184_v19 = vsel %vm587_vm13, 1.0, %v4048_v18 }
 0x695   : > { %v1596_v4 = vpop.permute.xlu1 %1595 }
 0x696   : > { %2301 = vmatmul.mubr.msk.bf16.vlgmr.msra.gmra.mrb[4].mxu1 %vm629_vm1, %v1596_v4 }
 0x769   : > { %v1646_v15 = vpop.f32.mrb[4].mxu1 }
 0x76a   : > { %1653 = vrot.lane.b32.xlu1 %v1646_v15, %s2989_s13  ;;  %v2302_v37 = vpop.f32.mrb[5].mxu1  ;;  %s4049_s13 = sld [smem:[#allocation40_spill]] }
 0x76b   : > { %v1649_v47 = vpop.f32.mrb[6].mxu1 }
 0x76c   : > { %v2303_v11 = vpop.f32.mrb[7].mxu1 }
 0x7dc   : > { %v1654_v27 = vpop.permute.xlu1 %1653 }
 0x7dd   : > { %v1656_v35 = vadd.f32 %v1654_v27, %v1587_v44  ;;  %v3836_v43 = vadd.f32 %v1654_v27, %v1588_v40 }
 0x7df   : > { %2520 = vtanh.f32 %v1656_v35  ;;  %v2197_v21 = vmul.f32 -1.442695, %v1656_v35 }
 0x7e0   : > { %2522 = vtanh.f32 %v3836_v43 }
 0x7e1   : > { %2524 = vpow2.f32 %v2197_v21 }
 0x7e9   : > { %v2521_v9 = vpop.eup %2520 }
 0x7ea   : > { %v2523_v45 = vpop.eup %2522  ;;  %1679 = vrot.lane.b32.xlu0 %v2521_v9, %s2991_s19 }
 0x7eb   : > { %1681 = vrot.lane.b32.xlu1 %v2523_v45, %s2991_s19  ;;  %v2525_v39 = vpop.eup %2524 }
 0x7ec   : > { %v1661_v42 = vadd.f32 1.0, %v2525_v39 }
 0x7ee   : > { %1673 = vrot.lane.b32.xlu0 %v591_v20, %s2992_s0  ;;  %2526 = vrcp.f32 %v1661_v42  ;;  %s2845_s0 = scalar_lea.vmem %s3909_s29, 128 }
 0x7ef   : > { %p2846_p0 = scmp.ne.s32.totalorder %s3909_s29, %s2845_s0 }
 0x7f1   : > { %p2847_p5 = pnand %p2846_p0, %p4050_p8 }
 0x7f2   : > { %1719 = vperm.xlu0 %2472, %v2184_v19  }
 0x7f3   : > { %p2848_p7 = pneg %p2847_p5 }
 0x7f8   : > { %v2527_v55 = vpop.eup %2526 }
 0x85c   : > { %v1680_v22 = vpop.permute.xlu0 %1679 }
 0x85d   : > { %v1682_v52 = vpop.permute.xlu1 %1681 }
 0x85e   : > { %v1684_v17 = vsel %vm1683_vm14, %v1680_v22, %v1682_v52 }
 0x85f   : > { %v1686_v61 = vmul.f32 %v2527_v55, %v1684_v17 }
 0x860   : > { %v1674_v2 = vpop.permute.xlu0 %1673 }
 0x861   : > { %v1676_v24 = vmul.f32 %v2527_v55, %v1674_v2  ;;  %1688 = vrot.lane.b32.xlu1 %v1686_v61, %s2993_s3  ;;  %s2995_s3 = smov [#allocation23]  }
 0x871   : > { %v1720_v1 = vpop.permute.xlu0 %1719 }
 0x872   : > { %v1724_v32 = vrot.slane %v1720_v1, %v3452_v13  ;;  %v1728_v31 = vrot.slane %v1720_v1, %v3593_v3  ;;  %v1732_v46 = vrot.slane %v1720_v1, %v3603_v12  ;;  %v1736_v63 = vrot.slane %v1720_v1, %v3623_v36 }
 0x873   : > { %v1740_v15 = vrot.slane %v1720_v1, %v3638_v49  ;;  %v1744_v3 = vrot.slane %v1720_v1, %v3598_v7  ;;  %v1748_v12 = vrot.slane %v1720_v1, %v3607_v23  ;;  %v1752_v36 = vrot.slane %v1720_v1, %v3615_v16 }
 0x874   : > { %v1761_v18 = vmul.f32 %v1724_v32, %v3737_v51  ;;  %v1763_v29 = vmul.f32 %v1728_v31, %v3752_v30  ;;  %v1765_v57 = vmul.f32 %v1732_v46, %v3761_v48  ;;  %v1767_v4 = vmul.f32 %v1736_v63, %v3770_v59 }
 0x875   : > { %v1769_v13 = vmul.f32 %v1740_v15, %v3734_v50  ;;  %v1771_v51 = vmul.f32 %v1744_v3, %v3783_v60  ;;  %v1773_v30 = vmul.f32 %v1748_v12, %v3792_v62  ;;  %v1775_v48 = vmul.f32 %v1752_v36, %v3743_v53 }
 0x876   : > { %1794 = vperm.xlu0 %2472, %v1761_v18   ;;  %v1762_v7 = vmul.f32 %v1724_v32, %v3746_v54  ;;  %v1764_v23 = vmul.f32 %v1728_v31, %v3756_v5  ;;  %v1766_v60 = vmul.f32 %v1732_v46, %v3765_v56  ;;  %v1768_v16 = vmul.f32 %v1736_v63, %v3774_v10 }
 0x877   : > { %v1770_v53 = vmul.f32 %v1740_v15, %v3778_v58  ;;  %v1772_v62 = vmul.f32 %v1744_v3, %v3787_v0  ;;  %v1774_v37 = vmul.f32 %v1748_v12, %v3796_v8  ;;  %v1776_v54 = vmul.f32 %v1752_v36, %v3800_v25 }
 0x878   : > { %v2198_v5 = vmul.f32 -1.442695, %v3836_v43 }
 0x87a   : > { %1800 = vperm.xlu0 %2472, %v1763_v29  }
 0x87e   : > { %1806 = vperm.xlu0 %2472, %v1765_v57  }
 0x882   : > { %1812 = vperm.xlu0 %2472, %v1767_v4  }
 0x886   : > { %1818 = vperm.xlu0 %2472, %v1769_v13  }
 0x88a   : > { %1824 = vperm.xlu0 %2472, %v1771_v51  }
 0x88e   : > { %1830 = vperm.xlu0 %2472, %v1773_v30  }
 0x892   : > { %1836 = vperm.xlu0 %2472, %v1775_v48  }
 0x8d3   : > { %v1689_v49 = vpop.permute.xlu1 %1688 }
 0x8d4   : > { %v1691_v59 = vadd.f32 %v1689_v49, %v1676_v24 }
 0x8d6   : > { %2528 = vtanh.f32 %v1691_v59 }
 0x8d7   : > { %2530 = vpow2.f32 %v2198_v5 }
 0x8e0   : > { %v2529_v50 = vpop.eup %2528 }
 0x8e1   : > { %1694 = vrot.lane.b32.xlu1 %v2529_v50, %s2991_s19  ;;  %v2531_v56 = vpop.eup %2530  ;;  %s1929_s19 = scalar_lea.sflag [#allocation24], %s3415_s17 }
 0x8e2   : > { %v1669_v47 = vadd.f32 1.0, %v2531_v56 }
 0x8e4   : > { %2532 = vrcp.f32 %v1669_v47 }
 0x8e5   : > { %1797 = vperm.xlu1 %2471, %v1762_v7  }
 0x8e9   : > { %1803 = vperm.xlu1 %2471, %v1764_v23  }
 0x8ed   : > { %1809 = vperm.xlu1 %2471, %v1766_v60  }
 0x8ee   : > { %v2533_v10 = vpop.eup %2532 }
 0x8f1   : > { %1815 = vperm.xlu1 %2471, %v1768_v16  }
 0x8f5   : > { %1821 = vperm.xlu1 %2471, %v1770_v53   ;;  %v1795_v34 = vpop.permute.xlu0 %1794 }
 0x8f6   : > { %v1844_v22 = vrot.slane %v1795_v34, %v3530_v28 }
 0x8f9   : > { %1827 = vperm.xlu1 %2471, %v1772_v62   ;;  %v1801_v0 = vpop.permute.xlu0 %1800 }
 0x8fa   : > { %v1853_v20 = vrot.slane %v1801_v0, %v3530_v28 }
 0x8fd   : > { %1833 = vperm.xlu1 %2471, %v1774_v37   ;;  %v1807_v8 = vpop.permute.xlu0 %1806 }
 0x8fe   : > { %v1862_v39 = vrot.slane %v1807_v8, %v3530_v28 }
 0x901   : > { %1839 = vperm.xlu1 %2471, %v1776_v54   ;;  %v1813_v6 = vpop.permute.xlu0 %1812 }
 0x902   : > { %v1871_v52 = vrot.slane %v1813_v6, %v3530_v28 }
 0x905   : > { %v1819_v44 = vpop.permute.xlu0 %1818 }
 0x906   : > { %v1880_v61 = vrot.slane %v1819_v44, %v3530_v28 }
 0x909   : > { %v1825_v35 = vpop.permute.xlu0 %1824 }
 0x90a   : > { %v1889_v1 = vrot.slane %v1825_v35, %v3530_v28 }
 0x90d   : > { %v1831_v14 = vpop.permute.xlu0 %1830 }
 0x90e   : > { %v1898_v29 = vrot.slane %v1831_v14, %v3530_v28 }
 0x911   : > { %v1837_v46 = vpop.permute.xlu0 %1836 }
 0x912   : > { %v1907_v12 = vrot.slane %v1837_v46, %v3530_v28 }
 0x953   : > { %v1695_v11 = vpop.permute.xlu1 %1694 }
 0x954   : > { %v1697_v58 = vmul.f32 %v2533_v10, %v1695_v11 }
 0x956   : > { %v2206_v33 = vpack.c.bf16 %v1697_v58, %v1697_v58  ;;  %1699 = vrot.lane.b32.xlu1 %v1697_v58, %s2990_s20 }
 0x958   : > { %1712 = vrot.lane.b32.xlu0 %v2206_v33, %s2990_s20  ;;  %s3907_s20 = scalar_lea.hbm %s4049_s13, %s2203_s26 }
 0x95c   : > { %1704 = vrot.lane.b32.xlu0 %v1691_v59, %s2994_s18  ;;  %s2849_s18 = sshll.u32 %s2995_s3, 4  ;;  %s2850_s18 = int_to_ptr.vmem [resolvable:$false] %s2849_s18 }
 0x95d   : > { %s2851_s12 = scalar_lea.vmem %s2850_s18, 256  ;;  %p2852_p3 = scmp.lt.s32.totalorder %s3909_s29, %s2850_s18 }
 0x95e   : > { %p2853_p10 = scmp.lt.s32.totalorder %s2851_s12, %s2845_s0 }
 0x960   : > { %p2854_p11 = por %p2853_p10, %p2852_p3 }
 0x962   : > { %p2855_p9 = pnand %p2854_p11, %p2848_p7 }
 0x964   : > { %v1798_v25 = vpop.permute.xlu1 %1797 }
 0x965   : > { %v1848_v19 = vrot.slane %v1798_v25, %v3525_v26 }
 0x967   : > { %v1849_v32 = vsel %vm927_vm3, %v1848_v19, %v1844_v22 }
 0x968   : > { %v1804_v41 = vpop.permute.xlu1 %1803 }
 0x969   : > { %v1857_v9 = vrot.slane %v1804_v41, %v3525_v26 }
 0x96b   : > { %v1858_v55 = vsel %vm927_vm3, %v1857_v9, %v1853_v20 }
 0x96c   : > { %v1810_v40 = vpop.permute.xlu1 %1809  ;;  %v1913_v57 = vsel %vm992_vm4, %v1858_v55, %v1849_v32 }
 0x96d   : > { %v1866_v38 = vrot.slane %v1810_v40, %v3525_v26 }
 0x96f   : > { %v1867_v2 = vsel %vm927_vm3, %v1866_v38, %v1862_v39 }
 0x970   : > { %v1816_v27 = vpop.permute.xlu1 %1815  ;;  %v1914_v4 = vsel %vm994_vm5, %v1867_v2, %v1913_v57 }
 0x971   : > { %v1875_v21 = vrot.slane %v1816_v27, %v3525_v26 }
 0x973   : > { %v1876_v18 = vsel %vm927_vm3, %v1875_v21, %v1871_v52 }
 0x974   : > { %v1822_v43 = vpop.permute.xlu1 %1821  ;;  %v1915_v13 = vsel %vm996_vm6, %v1876_v18, %v1914_v4 }
 0x975   : > { %v1884_v42 = vrot.slane %v1822_v43, %v3525_v26 }
 0x977   : > { %v1885_v63 = vsel %vm927_vm3, %v1884_v42, %v1880_v61 }
 0x978   : > { %v1828_v45 = vpop.permute.xlu1 %1827  ;;  %v1916_v30 = vsel %vm998_vm7, %v1885_v63, %v1915_v13 }
 0x979   : > { %v1893_v17 = vrot.slane %v1828_v45, %v3525_v26 }
 0x97b   : > { %v1894_v15 = vsel %vm927_vm3, %v1893_v17, %v1889_v1 }
 0x97c   : > { %v1834_v24 = vpop.permute.xlu1 %1833  ;;  %v1917_v48 = vsel %vm1000_vm8, %v1894_v15, %v1916_v30 }
 0x97d   : > { %v1902_v31 = vrot.slane %v1834_v24, %v3525_v26 }
 0x97f   : > { %v1903_v3 = vsel %vm927_vm3, %v1902_v31, %v1898_v29 }
 0x980   : > { %v1840_v51 = vpop.permute.xlu1 %1839  ;;  %v1918_v59 = vsel %vm1002_vm9, %v1903_v3, %v1917_v48 }
 0x981   : > { %v1911_v36 = vrot.slane %v1840_v51, %v3525_v26 }
 0x983   : > { %v1912_v49 = vsel %vm927_vm3, %v1911_v36, %v1907_v12 }
 0x984   : > { %v1919_v50 = vsel %vm1004_vm10, %v1912_v49, %v1918_v59 }
 0x985   : > { %v1921_v26 = vsel %vm1007_vm11, %v1919_v50, 0.0 }
 0x986   : > { %1922 = vst [vmem:[%s3443_s11] sm:$0xff] %v1921_v26 }
 0x987   : > { %2858 = shalt.err (!%p2855_p9)
}
 0x988   : > { %s2859_s11 = scalar_lea.hbm %s3907_s20, 128  ;;  %s2863_s3 = scalar_lea.hbm %s4049_s13, 896 }
 0x989   : > { %p2860_p12 = scmp.ne.s32.totalorder %s3907_s20, %s2859_s11  ;;  %p2864_p6 = scmp.lt.u32.totalorder %s3907_s20, %s4049_s13 }
 0x98a   : > { %p2865_p4 = scmp.lt.u32.totalorder %s2863_s3, %s2859_s11  ;;  %p2867_p0 = scmp.lt.u32.totalorder %s2859_s11, %s3907_s20 }
 0x98b   : > { %p2861_p13 = pnand %p2860_p12, %p4050_p8 }
 0x98c   : > { %p2866_p2 = por %p2865_p4, %p2864_p6 }
 0x98d   : > { %p2862_p1 = pneg %p2861_p13 }
 0x98e   : > { %p2868_p5 = por %p2867_p0, %p2866_p2 }
 0x990   : > { %p2869_p7 = pnand %p2868_p5, %p2862_p1 }
 0x992   : > { %2872 = shalt.err (!%p2869_p7)
}
 0x993   : > { %2347 = dma.vmem_to_hbm [thread:$0]  (%p4050_p8), %s3909_s29, 128, %s3907_s20, %s1929_s19   ;;  %vm1715_vm15 = vcmask 257024  }
 0x994   : > { %s2202_s0 = sshll.u32 %s3083_s27, 6  ;;  %s1942_s12 = sshll.u32 %s3441_s28, 4  ;;  %s3943_s12 = int_to_ptr.vmem [resolvable:$true] %s1942_s12 }
 0x995   : > { %s4051_s26 = sld [smem:[#allocation39_spill]]  ;;  %s1924_s3 = scalar_lea.sflag [#allocation6], %s3415_s17 }
 0x996   : > { %s2873_s29 = scalar_lea.vmem %s3943_s12, 64  ;;  %s2996_s27 = smov [#allocation22]  }
 0x997   : > { %p2874_p3 = scmp.ne.s32.totalorder %s3943_s12, %s2873_s29  ;;  %s2877_s20 = sshll.u32 %s2996_s27, 4  ;;  %s2878_s20 = int_to_ptr.vmem [resolvable:$false] %s2877_s20 }
 0x998   : > { %s2879_s19 = scalar_lea.vmem %s2878_s20, 128  ;;  %p2880_p9 = scmp.lt.s32.totalorder %s3943_s12, %s2878_s20 }
 0x999   : > { %p2875_p10 = pnand %p2874_p3, %p4050_p8  ;;  %p2881_p12 = scmp.lt.s32.totalorder %s2879_s19, %s2873_s29 }
 0x99b   : > { %s3941_s14 = scalar_lea.hbm %s4051_s26, %s2202_s0  ;;  %p2876_p11 = pneg %p2875_p10 }
 0x99c   : > { %p2882_p13 = por %p2881_p12, %p2880_p9 }
 0x99e   : > { %p2883_p1 = pnand %p2882_p13, %p2876_p11 }
 0x9c8   : > { %v1700_v28 = vpop.permute.xlu1 %1699 }
 0x9c9   : > { %1702 = vst.msk [vmem:[#allocation2] sm:$0xff] %vm629_vm1, %v1700_v28 }
 0x9ca   : > { %v1713_v7 = vpop.permute.xlu0 %1712 }
 0x9cb   : > { %1716 = vst.msk [vmem:[%s3441_s28] sm:$0xf] %vm1715_vm15, %v1713_v7 }
 0x9cc   : > { %2886 = shalt.err (!%p2883_p1)
}
 0x9cd   : > { %s2887_s17 = scalar_lea.hbm %s3941_s14, 64  ;;  %s2891_s0 = scalar_lea.hbm %s4051_s26, 448 }
 0x9ce   : > { %p2888_p6 = scmp.ne.s32.totalorder %s3941_s14, %s2887_s17  ;;  %p2892_p0 = scmp.lt.u32.totalorder %s3941_s14, %s4051_s26 }
 0x9cf   : > { %p2893_p5 = scmp.lt.u32.totalorder %s2891_s0, %s2887_s17  ;;  %p2895_p3 = scmp.lt.u32.totalorder %s2887_s17, %s3941_s14 }
 0x9d0   : > { %p2889_p4 = pnand %p2888_p6, %p4050_p8 }
 0x9d1   : > { %p2894_p7 = por %p2893_p5, %p2892_p0 }
 0x9d2   : > { %p2890_p2 = pneg %p2889_p4 }
 0x9d3   : > { %p2896_p10 = por %p2895_p3, %p2894_p7 }
 0x9d5   : > { %p2897_p11 = pnand %p2896_p10, %p2890_p2 }
 0x9d7   : > { %2900 = shalt.err (!%p2897_p11)
}
 0x9d8   : > { %2346 = dma.vmem_to_hbm [thread:$0]  (%p4050_p8), %s3943_s12, 64, %s3941_s14, %s1924_s3   ;;  %v1705_v23 = vpop.permute.xlu0 %1704 }
 0x9d9   : > { %1707 = vst.msk [vmem:[#allocation3] sm:$0xff] %vm629_vm1, %v1705_v23 }
 0x9da PF: > { %p2413_p9 = scmp.ge.s32.totalorder %s2967_s24, 2  ;;  %s1967_s29 = sand.u32 1, %s2955_s21  }
 0x9db   : > { %p4052_p12 = scmp.ne.s32.totalorder %s4030_s30, 0  ;;  %s1968_s27 = scalar_lea.sflag [#allocation6], %s1967_s29 }
 0x9dd   : > { %p2386_p13 = pnand %p2413_p9, %p4052_p12 }
 0x9df   : > { %2946 = dma.done.wait (!%p2386_p13), %s1968_s27, 64  }
 0x9e0   : > { %2948 = vsyncadd (!%p2386_p13), %s1968_s27, 4294967232  ;;  %s1977_s20 = scalar_lea.sflag [#allocation24], %s1967_s29 }
 0x9e1   : > { %2950 = dma.done.wait (!%p2386_p13), %s1977_s20, 128  }
 0x9e2   : > { %2952 = vsyncadd (!%p2386_p13), %s1977_s20, 4294967168  ;;  %p34_p8 = scmp.ge.s32.totalorder %s3329_s25, 9   ;;  %s4053_s21 = smov %s2959_s22 }
 0x9e3   : > { %s4054_s22 = smov %s2963_s23  ;;  %s4055_s23 = smov %s3340_s1 }
 0x9e4   : > { %s4056_s24 = smov %s3329_s25  ;;  %36 = sbr.rel (!%p34_p8) target bundleno = 19 (0x13), region = 171 }
 0x9eb   :  { %1982 = vsyncpa [#allocation5], 1 }
 0x9ec   :  { %1984 = vsyncpa [#allocation5 + $0x1], 1 }
 0x9ed   :  { %1985 = vsyncpa [#allocation8], 1 }
 0x9ee   :  { %1986 = vsyncpa [#allocation11], 1 }
 0x9ef   :  { %1988 = vsyncpa [#allocation11 + $0x1], 1 }
 0x9f0   :  { %1989 = vsyncpa [#allocation14], 1 }
 0x9f1   :  { %1990 = vsyncpa [#allocation17], 1 }
 0x9f2   :  { %1991 = vsyncpa [#allocation20], 1 }
 0x9f3   :  { %1992 = vsyncpa [#allocation6], 1 }
 0x9f4   :  { %1994 = vsyncpa [#allocation6 + $0x1], 1 }
 0x9f5   :  { %1995 = vsyncpa [#allocation24], 1 }
 0x9f6   :  { %1997 = vsyncpa [#allocation24 + $0x1], 1 }

</bundles_post_ra>
